<compile_context>
chip_gen: v7x
topology: tpu7x:2x2x1
jax: 0.10.0
libtpu: 0.0.40
codegen_flags: <defaults>
</compile_context>

<pallas_src>
import functools

import jax
import jax.numpy as jnp
from jax.experimental import pallas as pl
from jax.experimental.pallas import tpu as pltpu


# -----------------------------------------------------------------------------
# In-kernel helpers
# -----------------------------------------------------------------------------
def _leaky_relu(v):
    return jnp.where(v > 0, v, 0.2 * v)  # DGCNN uses negative_slope=0.2


def _neg_pdist(x, use_bf16):
    # neg squared pairwise distance with the row-constant -||x_i||^2 dropped
    # (top-k over j is invariant to it).
    xl = x.astype(jnp.bfloat16) if use_bf16 else x
    inner = jax.lax.dot_general(
        xl, xl, (((1,), (1,)), ((), ())), preferred_element_type=jnp.float32
    )                                               # (N, N)
    sq = jnp.sum(x * x, axis=-1, keepdims=True)     # (N, 1) f32
    return 2.0 * inner - jnp.transpose(sq)


def _project_vpu(x, w_t, b):
    # x: (N, Cin) with tiny Cin (=3); w_t: (Cin, Cout2); b: (1, Cout2)
    # Cin=3 would leave the MXU almost empty -> 3-term VPU FMA instead.
    out = None
    for c in range(x.shape[1]):                     # static, unrolled
        term = x[:, c:c + 1] * w_t[c:c + 1, :]
        out = term if out is None else out + term
    return out + b


def _project_mxu(x, w_t, b):
    # bf16 MXU operands, f32 accumulation.
    y = jax.lax.dot_general(
        x.astype(jnp.bfloat16), w_t.astype(jnp.bfloat16),
        (((1,), (0,)), ((), ())), preferred_element_type=jnp.float32,
    )
    return y + b


def _knn_channel_max(nd, p_vals, k):
    # For each row i: channel-wise max of p_vals over the k columns j with the
    # largest nd[i, j].  k passes of first-occurrence-argmax expressed as an
    # exact one-hot selection matmul (no dynamic gather needed).
    n = nd.shape[0]
    cols = jax.lax.broadcasted_iota(jnp.int32, nd.shape, 1)
    p_b = p_vals.astype(jnp.bfloat16)
    neg = jnp.float32(-1e30)
    m = None
    for _ in range(k):                              # k small & static: unrolled
        rmax = jnp.max(nd, axis=-1, keepdims=True)
        eq = nd >= rmax
        first = jnp.min(jnp.where(eq, cols, n), axis=-1, keepdims=True)
        one_hot = cols == first                     # exactly one True per row
        sel = jax.lax.dot_general(                  # (N, C): row i = p_vals[argmax_i]
            one_hot.astype(jnp.bfloat16), p_b,
            (((1,), (0,)), ((), ())), preferred_element_type=jnp.float32,
        )
        m = sel if m is None else jnp.maximum(m, sel)
        nd = jnp.where(one_hot, neg, nd)
    return m


# -----------------------------------------------------------------------------
# Single fused forward kernel (one grid step = one batch element)
# -----------------------------------------------------------------------------
def _fused_forward_kernel(x_ref, eps_ref,
                          w1t_ref, b1_ref, w2t_ref, b2_ref,
                          hwt_ref, hb_ref,
                          dw1t_ref, db1_ref, dw2t_ref, db2_ref,
                          out_ref, *, k, c1, emb, latent, pad):
    x = x_ref[0]                                            # (N, 3) f32

    # ---- EdgeConv-1: project once per point, then kNN channel-max ----
    p1 = _project_vpu(x, w1t_ref[...], b1_ref[...])         # (N, 2*c1)
    nbr1 = p1[:, :c1]                                       # W_n x
    base1 = p1[:, c1:] - nbr1                               # W_c x + b - W_n x
    nd1 = _neg_pdist(x, use_bf16=False)                     # (N, N)
    f1 = _leaky_relu(_knn_channel_max(nd1, nbr1, k) + base1)  # (N, c1)

    # ---- EdgeConv-2 (f1 never leaves VMEM) ----
    p2 = _project_mxu(f1, w2t_ref[...], b2_ref[...])        # (N, 2*emb)
    nbr2 = p2[:, :emb]
    base2 = p2[:, emb:] - nbr2
    nd2 = _neg_pdist(f1, use_bf16=True)
    f2 = _leaky_relu(_knn_channel_max(nd2, nbr2, k) + base2)  # (N, emb)

    # ---- global max pool over points ----
    feat = jnp.max(f2, axis=0, keepdims=True)               # (1, emb)

    # ---- fused heads [fc_mu | fc_logvar | fc_projection] + reparameterize ----
    y = _project_mxu(feat, hwt_ref[...], hb_ref[...])       # (1, 2L + P)
    mu = y[:, :latent]
    logvar = y[:, latent:2 * latent]
    z = mu + eps_ref[0] * jnp.exp(0.5 * logvar)             # (1, L)

    # ---- decoder: Linear -> ReLU -> Linear ----
    h = jnp.maximum(_project_mxu(z, dw1t_ref[...], db1_ref[...]), 0.0)
    recon = _project_mxu(h, dw2t_ref[...], db2_ref[...])    # (1, 3*num_points)

    # ---- one lane-dense store: [mu | logvar | proj | z | recon | pad] ----
    row = jnp.concatenate([y, z, recon], axis=-1)
    if pad:
        row = jnp.concatenate([row, jnp.zeros((1, pad), jnp.float32)], axis=-1)
    out_ref[0] = row


# -----------------------------------------------------------------------------
# Wrapper
# -----------------------------------------------------------------------------
def _const2d(arr):
    return pl.BlockSpec(arr.shape, lambda b: (0, 0))


def contrastive_vae_forward(params, x_bcn, eps, *, k):
    B, _, N = x_bcn.shape
    x = jnp.transpose(x_bcn, (0, 2, 1)).astype(jnp.float32)      # (B, N, 3)

    c1 = params["enc_w1t"].shape[1] // 2
    emb = params["enc_w2t"].shape[1] // 2
    latent = eps.shape[-1]
    proj_dim = params["heads_wt"].shape[1] - 2 * latent
    out3 = params["dec_w2t"].shape[1]                             # 3*num_points
    used = 3 * latent + proj_dim + out3
    out_w = ((used + 127) // 128) * 128                           # lane-dense slab
    pad = out_w - used

    eps3 = eps.reshape(B, 1, latent).astype(jnp.float32)

    kernel = functools.partial(_fused_forward_kernel, k=k, c1=c1, emb=emb,
                               latent=latent, pad=pad)
    slab = pl.pallas_call(
        kernel,
        out_shape=jax.ShapeDtypeStruct((B, 1, out_w), jnp.float32),
        grid=(B,),
        in_specs=[
            pl.BlockSpec((1, N, 3), lambda b: (b, 0, 0)),
            pl.BlockSpec((1, 1, latent), lambda b: (b, 0, 0)),
            _const2d(params["enc_w1t"]), _const2d(params["enc_b1"]),
            _const2d(params["enc_w2t"]), _const2d(params["enc_b2"]),
            _const2d(params["heads_wt"]), _const2d(params["heads_b"]),
            _const2d(params["dec_w1t"]), _const2d(params["dec_b1"]),
            _const2d(params["dec_w2t"]), _const2d(params["dec_b2"]),
        ],
        out_specs=pl.BlockSpec((1, 1, out_w), lambda b: (b, 0, 0)),
        compiler_params=pltpu.CompilerParams(dimension_semantics=("parallel",)),
    )(x, eps3, params["enc_w1t"], params["enc_b1"], params["enc_w2t"],
      params["enc_b2"], params["heads_wt"], params["heads_b"],
      params["dec_w1t"], params["dec_b1"], params["dec_w2t"], params["dec_b2"])

    slab = slab.reshape(B, out_w)
    L, P = latent, proj_dim
    mu = slab[:, :L]
    logvar = slab[:, L:2 * L]
    # fc_projection(encoder(x)); the encoder is deterministic so it is computed once.
    projected = slab[:, 2 * L:2 * L + P]
    z = slab[:, 2 * L + P:3 * L + P]
    recon = slab[:, 3 * L + P:3 * L + P + out3].reshape(B, -1, 3)
    return recon, mu, logvar, z, projected


# -----------------------------------------------------------------------------
# Parameter construction (PyTorch Linear-style init, pre-fused transposed layouts)
# -----------------------------------------------------------------------------
def _uniform(key, shape, fan_in):
    bound = 1.0 / float(fan_in) ** 0.5
    return jax.random.uniform(key, shape, jnp.float32, -bound, bound)


def init_params(key, emb_dims, latent_dim, projection_dim, num_points, dec_hidden=128):
    ks = jax.random.split(key, 14)
    p = {}
    # EdgeConv-1: Linear(2*3 -> 64) on concat([x_j - x_i, x_i]); stored transposed,
    # split (nbr | center) along columns, bias folded into the center half.
    w1 = _uniform(ks[0], (64, 6), 6)
    b1 = _uniform(ks[1], (64,), 6)
    p["enc_w1t"] = jnp.concatenate([w1[:, :3].T, w1[:, 3:].T], axis=1)          # (3, 128)
    p["enc_b1"] = jnp.concatenate([jnp.zeros((64,), jnp.float32), b1])[None]    # (1, 128)
    # EdgeConv-2: Linear(2*64 -> emb_dims)
    w2 = _uniform(ks[2], (emb_dims, 128), 128)
    b2 = _uniform(ks[3], (emb_dims,), 128)
    p["enc_w2t"] = jnp.concatenate([w2[:, :64].T, w2[:, 64:].T], axis=1)        # (64, 2*emb)
    p["enc_b2"] = jnp.concatenate([jnp.zeros((emb_dims,), jnp.float32), b2])[None]
    # fused heads: [fc_mu | fc_logvar | fc_projection], transposed
    mu_w = _uniform(ks[4], (latent_dim, emb_dims), emb_dims)
    mu_b = _uniform(ks[5], (latent_dim,), emb_dims)
    lv_w = _uniform(ks[6], (latent_dim, emb_dims), emb_dims)
    lv_b = _uniform(ks[7], (latent_dim,), emb_dims)
    pj_w = _uniform(ks[8], (projection_dim, emb_dims), emb_dims)
    pj_b = _uniform(ks[9], (projection_dim,), emb_dims)
    p["heads_wt"] = jnp.concatenate([mu_w, lv_w, pj_w], axis=0).T               # (emb, 2L+P)
    p["heads_b"] = jnp.concatenate([mu_b, lv_b, pj_b])[None]                    # (1, 2L+P)
    # decoder MLP (transposed)
    p["dec_w1t"] = _uniform(ks[10], (dec_hidden, latent_dim), latent_dim).T     # (L, hidden)
    p["dec_b1"] = _uniform(ks[11], (1, dec_hidden), latent_dim)
    p["dec_w2t"] = _uniform(ks[12], (num_points * 3, dec_hidden), dec_hidden).T  # (hidden, 3*num_pts)
    p["dec_b2"] = _uniform(ks[13], (1, num_points * 3), dec_hidden)
    return p


if __name__ == "__main__":
    B, N_PTS, K_NN = 2, 64, 4
    EMB_DIMS, LATENT, PROJ, NUM_POINTS = 64, 16, 16, 64

    key = jax.random.PRNGKey(0)
    k_x, k_eps, k_p = jax.random.split(key, 3)

    x = jax.random.normal(k_x, (B, 3, N_PTS), jnp.float32)    # PyTorch layout (B, 3, N)
    eps = jax.random.normal(k_eps, (B, LATENT), jnp.float32)  # randn_like(std)
    params = init_params(k_p, EMB_DIMS, LATENT, PROJ, NUM_POINTS)

    fwd = jax.jit(functools.partial(contrastive_vae_forward, k=K_NN))
    recon, mu, logvar, z, projected = jax.block_until_ready(fwd(params, x, eps))

    assert recon.shape == (B, NUM_POINTS, 3)
    assert mu.shape == (B, LATENT) and logvar.shape == (B, LATENT)
    assert z.shape == (B, LATENT)
    assert projected.shape == (B, PROJ)
    assert all(bool(jnp.all(jnp.isfinite(a))) for a in (recon, mu, logvar, z, projected))
    print("KERNEL_OK")
</pallas_src>

<mosaic_0001>
module attributes {stable_mosaic.version = 11 : i64} {
  func.func @_fused_forward_kernel(%arg0: i32, %arg1: memref<1x64x3xf32, #tpu.memory_space<vmem>>, %arg2: memref<1x1x16xf32, #tpu.memory_space<vmem>>, %arg3: memref<3x128xf32, #tpu.memory_space<vmem>>, %arg4: memref<1x128xf32, #tpu.memory_space<vmem>>, %arg5: memref<64x128xf32, #tpu.memory_space<vmem>>, %arg6: memref<1x128xf32, #tpu.memory_space<vmem>>, %arg7: memref<64x48xf32, #tpu.memory_space<vmem>>, %arg8: memref<1x48xf32, #tpu.memory_space<vmem>>, %arg9: memref<16x128xf32, #tpu.memory_space<vmem>>, %arg10: memref<1x128xf32, #tpu.memory_space<vmem>>, %arg11: memref<128x192xf32, #tpu.memory_space<vmem>>, %arg12: memref<1x192xf32, #tpu.memory_space<vmem>>, %arg13: memref<1x1x256xf32, #tpu.memory_space<vmem>>) attributes {dimension_semantics = [#tpu.dimension_semantics<parallel>], iteration_bounds = array<i64: 2>, scalar_prefetch = 0 : i64, scratch_operands = 0 : i64, tpu.core_type = #tpu.core_type<tc>, window_params = [{transform_indices = @transform_0, window_bounds = array<i64: 1, 64, 3>}, {transform_indices = @transform_1, window_bounds = array<i64: 1, 1, 16>}, {pipeline_mode = #tpu.pipeline_mode<synchronous>, transform_indices = @transform_2, window_bounds = array<i64: 3, 128>}, {pipeline_mode = #tpu.pipeline_mode<synchronous>, transform_indices = @transform_3, window_bounds = array<i64: 1, 128>}, {pipeline_mode = #tpu.pipeline_mode<synchronous>, transform_indices = @transform_4, window_bounds = array<i64: 64, 128>}, {pipeline_mode = #tpu.pipeline_mode<synchronous>, transform_indices = @transform_5, window_bounds = array<i64: 1, 128>}, {pipeline_mode = #tpu.pipeline_mode<synchronous>, transform_indices = @transform_6, window_bounds = array<i64: 64, 48>}, {pipeline_mode = #tpu.pipeline_mode<synchronous>, transform_indices = @transform_7, window_bounds = array<i64: 1, 48>}, {pipeline_mode = #tpu.pipeline_mode<synchronous>, transform_indices = @transform_8, window_bounds = array<i64: 16, 128>}, {pipeline_mode = #tpu.pipeline_mode<synchronous>, transform_indices = @transform_9, window_bounds = array<i64: 1, 128>}, {pipeline_mode = #tpu.pipeline_mode<synchronous>, transform_indices = @transform_10, window_bounds = array<i64: 128, 192>}, {pipeline_mode = #tpu.pipeline_mode<synchronous>, transform_indices = @transform_11, window_bounds = array<i64: 1, 192>}, {transform_indices = @transform_12, window_bounds = array<i64: 1, 1, 256>}]} {
    %c0 = arith.constant 0 : index
    %c0_0 = arith.constant 0 : index
    %c0_1 = arith.constant 0 : index
    %0 = vector.load %arg1[%c0, %c0_0, %c0_1] : memref<1x64x3xf32, #tpu.memory_space<vmem>>, vector<1x64x3xf32>
    %1 = vector.shape_cast %0 : vector<1x64x3xf32> to vector<64x3xf32>
    %c0_2 = arith.constant 0 : index
    %c0_3 = arith.constant 0 : index
    %2 = vector.load %arg3[%c0_2, %c0_3] : memref<3x128xf32, #tpu.memory_space<vmem>>, vector<3x128xf32>
    %c0_4 = arith.constant 0 : index
    %c0_5 = arith.constant 0 : index
    %3 = vector.load %arg4[%c0_4, %c0_5] : memref<1x128xf32, #tpu.memory_space<vmem>>, vector<1x128xf32>
    %4 = vector.extract_strided_slice %1 {offsets = [0, 0], sizes = [64, 1], strides = [1, 1]} : vector<64x3xf32> to vector<64x1xf32>
    %5 = vector.extract_strided_slice %2 {offsets = [0, 0], sizes = [1, 128], strides = [1, 1]} : vector<3x128xf32> to vector<1x128xf32>
    %6 = vector.broadcast %4 : vector<64x1xf32> to vector<64x128xf32>
    %7 = vector.broadcast %5 : vector<1x128xf32> to vector<64x128xf32>
    %8 = arith.mulf %6, %7 : vector<64x128xf32>
    %9 = vector.extract_strided_slice %1 {offsets = [0, 1], sizes = [64, 1], strides = [1, 1]} : vector<64x3xf32> to vector<64x1xf32>
    %10 = vector.extract_strided_slice %2 {offsets = [1, 0], sizes = [1, 128], strides = [1, 1]} : vector<3x128xf32> to vector<1x128xf32>
    %11 = vector.broadcast %9 : vector<64x1xf32> to vector<64x128xf32>
    %12 = vector.broadcast %10 : vector<1x128xf32> to vector<64x128xf32>
    %13 = arith.mulf %11, %12 : vector<64x128xf32>
    %14 = arith.addf %8, %13 : vector<64x128xf32>
    %15 = vector.extract_strided_slice %1 {offsets = [0, 2], sizes = [64, 1], strides = [1, 1]} : vector<64x3xf32> to vector<64x1xf32>
    %16 = vector.extract_strided_slice %2 {offsets = [2, 0], sizes = [1, 128], strides = [1, 1]} : vector<3x128xf32> to vector<1x128xf32>
    %17 = vector.broadcast %15 : vector<64x1xf32> to vector<64x128xf32>
    %18 = vector.broadcast %16 : vector<1x128xf32> to vector<64x128xf32>
    %19 = arith.mulf %17, %18 : vector<64x128xf32>
    %20 = arith.addf %14, %19 : vector<64x128xf32>
    %21 = vector.broadcast %3 : vector<1x128xf32> to vector<64x128xf32>
    %22 = arith.addf %20, %21 : vector<64x128xf32>
    %23 = vector.extract_strided_slice %22 {offsets = [0, 0], sizes = [64, 64], strides = [1, 1]} : vector<64x128xf32> to vector<64x64xf32>
    %24 = vector.extract_strided_slice %22 {offsets = [0, 64], sizes = [64, 64], strides = [1, 1]} : vector<64x128xf32> to vector<64x64xf32>
    %25 = arith.subf %24, %23 : vector<64x64xf32>
    %cst = arith.constant dense<0.000000e+00> : vector<64x64xf32>
    %26 = tpu.matmul %1, %1, %cst {dimension_numbers = #tpu.dot_dimension_numbers<[1], [1], [0], [0], [0, 0, 1, 0], [], []>} : vector<64x3xf32>, vector<64x3xf32>, vector<64x64xf32> -> vector<64x64xf32>
    %27 = arith.mulf %1, %1 : vector<64x3xf32>
    %cst_6 = arith.constant dense<0.000000e+00> : vector<64xf32>
    %28 = vector.multi_reduction <add>, %27, %cst_6 [1] : vector<64x3xf32> to vector<64xf32>
    %29 = vector.shape_cast %28 : vector<64xf32> to vector<64x1xf32>
    %cst_7 = arith.constant 2.000000e+00 : f32
    %30 = vector.broadcast %cst_7 : f32 to vector<64x64xf32>
    %31 = arith.mulf %30, %26 : vector<64x64xf32>
    %32 = tpu.transpose %29, [1, 0] : vector<64x1xf32> -> vector<1x64xf32>
    %33 = vector.broadcast %32 : vector<1x64xf32> to vector<64x64xf32>
    %34 = arith.subf %31, %33 : vector<64x64xf32>
    %35 = tpu.iota {dimensions = array<i32: 1>} : vector<64x64xi32>
    %36 = arith.truncf %23 : vector<64x64xf32> to vector<64x64xbf16>
    %cst_8 = arith.constant dense<0xFF800000> : vector<64xf32>
    %37 = vector.multi_reduction <maximumf>, %34, %cst_8 [1] : vector<64x64xf32> to vector<64xf32>
    %38 = vector.shape_cast %37 : vector<64xf32> to vector<64x1xf32>
    %39 = vector.broadcast %38 : vector<64x1xf32> to vector<64x64xf32>
    %40 = arith.cmpf oge, %34, %39 : vector<64x64xf32>
    %c64_i32 = arith.constant 64 : i32
    %41 = vector.broadcast %c64_i32 : i32 to vector<64x64xi32>
    %42 = arith.select %40, %35, %41 : vector<64x64xi1>, vector<64x64xi32>
    %cst_9 = arith.constant dense<2147483647> : vector<64xi32>
    %43 = vector.multi_reduction <minsi>, %42, %cst_9 [1] : vector<64x64xi32> to vector<64xi32>
    %44 = vector.shape_cast %43 : vector<64xi32> to vector<64x1xi32>
    %45 = vector.broadcast %44 : vector<64x1xi32> to vector<64x64xi32>
    %46 = arith.cmpi eq, %35, %45 : vector<64x64xi32>
    %47 = arith.extui %46 : vector<64x64xi1> to vector<64x64xi32>
    %48 = arith.sitofp %47 : vector<64x64xi32> to vector<64x64xf32>
    %49 = arith.truncf %48 : vector<64x64xf32> to vector<64x64xbf16>
    %cst_10 = arith.constant dense<0.000000e+00> : vector<64x64xf32>
    %50 = tpu.matmul %49, %36, %cst_10 {dimension_numbers = #tpu.dot_dimension_numbers<[1], [0], [0], [1], [0, 0, 1, 1], [], []>} : vector<64x64xbf16>, vector<64x64xbf16>, vector<64x64xf32> -> vector<64x64xf32>
    %cst_11 = arith.constant -1.000000e+30 : f32
    %51 = vector.broadcast %cst_11 : f32 to vector<64x64xf32>
    %52 = arith.select %46, %51, %34 : vector<64x64xi1>, vector<64x64xf32>
    %cst_12 = arith.constant dense<0xFF800000> : vector<64xf32>
    %53 = vector.multi_reduction <maximumf>, %52, %cst_12 [1] : vector<64x64xf32> to vector<64xf32>
    %54 = vector.shape_cast %53 : vector<64xf32> to vector<64x1xf32>
    %55 = vector.broadcast %54 : vector<64x1xf32> to vector<64x64xf32>
    %56 = arith.cmpf oge, %52, %55 : vector<64x64xf32>
    %c64_i32_13 = arith.constant 64 : i32
    %57 = vector.broadcast %c64_i32_13 : i32 to vector<64x64xi32>
    %58 = arith.select %56, %35, %57 : vector<64x64xi1>, vector<64x64xi32>
    %cst_14 = arith.constant dense<2147483647> : vector<64xi32>
    %59 = vector.multi_reduction <minsi>, %58, %cst_14 [1] : vector<64x64xi32> to vector<64xi32>
    %60 = vector.shape_cast %59 : vector<64xi32> to vector<64x1xi32>
    %61 = vector.broadcast %60 : vector<64x1xi32> to vector<64x64xi32>
    %62 = arith.cmpi eq, %35, %61 : vector<64x64xi32>
    %63 = arith.extui %62 : vector<64x64xi1> to vector<64x64xi32>
    %64 = arith.sitofp %63 : vector<64x64xi32> to vector<64x64xf32>
    %65 = arith.truncf %64 : vector<64x64xf32> to vector<64x64xbf16>
    %cst_15 = arith.constant dense<0.000000e+00> : vector<64x64xf32>
    %66 = tpu.matmul %65, %36, %cst_15 {dimension_numbers = #tpu.dot_dimension_numbers<[1], [0], [0], [1], [0, 0, 1, 1], [], []>} : vector<64x64xbf16>, vector<64x64xbf16>, vector<64x64xf32> -> vector<64x64xf32>
    %67 = arith.maximumf %50, %66 : vector<64x64xf32>
    %cst_16 = arith.constant -1.000000e+30 : f32
    %68 = vector.broadcast %cst_16 : f32 to vector<64x64xf32>
    %69 = arith.select %62, %68, %52 : vector<64x64xi1>, vector<64x64xf32>
    %cst_17 = arith.constant dense<0xFF800000> : vector<64xf32>
    %70 = vector.multi_reduction <maximumf>, %69, %cst_17 [1] : vector<64x64xf32> to vector<64xf32>
    %71 = vector.shape_cast %70 : vector<64xf32> to vector<64x1xf32>
    %72 = vector.broadcast %71 : vector<64x1xf32> to vector<64x64xf32>
    %73 = arith.cmpf oge, %69, %72 : vector<64x64xf32>
    %c64_i32_18 = arith.constant 64 : i32
    %74 = vector.broadcast %c64_i32_18 : i32 to vector<64x64xi32>
    %75 = arith.select %73, %35, %74 : vector<64x64xi1>, vector<64x64xi32>
    %cst_19 = arith.constant dense<2147483647> : vector<64xi32>
    %76 = vector.multi_reduction <minsi>, %75, %cst_19 [1] : vector<64x64xi32> to vector<64xi32>
    %77 = vector.shape_cast %76 : vector<64xi32> to vector<64x1xi32>
    %78 = vector.broadcast %77 : vector<64x1xi32> to vector<64x64xi32>
    %79 = arith.cmpi eq, %35, %78 : vector<64x64xi32>
    %80 = arith.extui %79 : vector<64x64xi1> to vector<64x64xi32>
    %81 = arith.sitofp %80 : vector<64x64xi32> to vector<64x64xf32>
    %82 = arith.truncf %81 : vector<64x64xf32> to vector<64x64xbf16>
    %cst_20 = arith.constant dense<0.000000e+00> : vector<64x64xf32>
    %83 = tpu.matmul %82, %36, %cst_20 {dimension_numbers = #tpu.dot_dimension_numbers<[1], [0], [0], [1], [0, 0, 1, 1], [], []>} : vector<64x64xbf16>, vector<64x64xbf16>, vector<64x64xf32> -> vector<64x64xf32>
    %84 = arith.maximumf %67, %83 : vector<64x64xf32>
    %cst_21 = arith.constant -1.000000e+30 : f32
    %85 = vector.broadcast %cst_21 : f32 to vector<64x64xf32>
    %86 = arith.select %79, %85, %69 : vector<64x64xi1>, vector<64x64xf32>
    %cst_22 = arith.constant dense<0xFF800000> : vector<64xf32>
    %87 = vector.multi_reduction <maximumf>, %86, %cst_22 [1] : vector<64x64xf32> to vector<64xf32>
    %88 = vector.shape_cast %87 : vector<64xf32> to vector<64x1xf32>
    %89 = vector.broadcast %88 : vector<64x1xf32> to vector<64x64xf32>
    %90 = arith.cmpf oge, %86, %89 : vector<64x64xf32>
    %c64_i32_23 = arith.constant 64 : i32
    %91 = vector.broadcast %c64_i32_23 : i32 to vector<64x64xi32>
    %92 = arith.select %90, %35, %91 : vector<64x64xi1>, vector<64x64xi32>
    %cst_24 = arith.constant dense<2147483647> : vector<64xi32>
    %93 = vector.multi_reduction <minsi>, %92, %cst_24 [1] : vector<64x64xi32> to vector<64xi32>
    %94 = vector.shape_cast %93 : vector<64xi32> to vector<64x1xi32>
    %95 = vector.broadcast %94 : vector<64x1xi32> to vector<64x64xi32>
    %96 = arith.cmpi eq, %35, %95 : vector<64x64xi32>
    %97 = arith.extui %96 : vector<64x64xi1> to vector<64x64xi32>
    %98 = arith.sitofp %97 : vector<64x64xi32> to vector<64x64xf32>
    %99 = arith.truncf %98 : vector<64x64xf32> to vector<64x64xbf16>
    %cst_25 = arith.constant dense<0.000000e+00> : vector<64x64xf32>
    %100 = tpu.matmul %99, %36, %cst_25 {dimension_numbers = #tpu.dot_dimension_numbers<[1], [0], [0], [1], [0, 0, 1, 1], [], []>} : vector<64x64xbf16>, vector<64x64xbf16>, vector<64x64xf32> -> vector<64x64xf32>
    %101 = arith.maximumf %84, %100 : vector<64x64xf32>
    %102 = arith.addf %101, %25 : vector<64x64xf32>
    %cst_26 = arith.constant 0.000000e+00 : f32
    %103 = vector.broadcast %cst_26 : f32 to vector<64x64xf32>
    %104 = arith.cmpf ogt, %102, %103 : vector<64x64xf32>
    %cst_27 = arith.constant 2.000000e-01 : f32
    %105 = vector.broadcast %cst_27 : f32 to vector<64x64xf32>
    %106 = arith.mulf %105, %102 : vector<64x64xf32>
    %107 = arith.select %104, %102, %106 : vector<64x64xi1>, vector<64x64xf32>
    %c0_28 = arith.constant 0 : index
    %c0_29 = arith.constant 0 : index
    %108 = vector.load %arg5[%c0_28, %c0_29] : memref<64x128xf32, #tpu.memory_space<vmem>>, vector<64x128xf32>
    %c0_30 = arith.constant 0 : index
    %c0_31 = arith.constant 0 : index
    %109 = vector.load %arg6[%c0_30, %c0_31] : memref<1x128xf32, #tpu.memory_space<vmem>>, vector<1x128xf32>
    %110 = arith.truncf %107 : vector<64x64xf32> to vector<64x64xbf16>
    %111 = arith.truncf %108 : vector<64x128xf32> to vector<64x128xbf16>
    %cst_32 = arith.constant dense<0.000000e+00> : vector<64x128xf32>
    %112 = tpu.matmul %110, %111, %cst_32 {dimension_numbers = #tpu.dot_dimension_numbers<[1], [0], [0], [1], [0, 0, 1, 1], [], []>} : vector<64x64xbf16>, vector<64x128xbf16>, vector<64x128xf32> -> vector<64x128xf32>
    %113 = vector.broadcast %109 : vector<1x128xf32> to vector<64x128xf32>
    %114 = arith.addf %112, %113 : vector<64x128xf32>
    %115 = vector.extract_strided_slice %114 {offsets = [0, 0], sizes = [64, 64], strides = [1, 1]} : vector<64x128xf32> to vector<64x64xf32>
    %116 = vector.extract_strided_slice %114 {offsets = [0, 64], sizes = [64, 64], strides = [1, 1]} : vector<64x128xf32> to vector<64x64xf32>
    %117 = arith.subf %116, %115 : vector<64x64xf32>
    %118 = arith.truncf %107 : vector<64x64xf32> to vector<64x64xbf16>
    %cst_33 = arith.constant dense<0.000000e+00> : vector<64x64xf32>
    %119 = tpu.matmul %118, %118, %cst_33 {dimension_numbers = #tpu.dot_dimension_numbers<[1], [1], [0], [0], [0, 0, 1, 0], [], []>} : vector<64x64xbf16>, vector<64x64xbf16>, vector<64x64xf32> -> vector<64x64xf32>
    %120 = arith.mulf %107, %107 : vector<64x64xf32>
    %cst_34 = arith.constant dense<0.000000e+00> : vector<64xf32>
    %121 = vector.multi_reduction <add>, %120, %cst_34 [1] : vector<64x64xf32> to vector<64xf32>
    %122 = vector.shape_cast %121 : vector<64xf32> to vector<64x1xf32>
    %cst_35 = arith.constant 2.000000e+00 : f32
    %123 = vector.broadcast %cst_35 : f32 to vector<64x64xf32>
    %124 = arith.mulf %123, %119 : vector<64x64xf32>
    %125 = tpu.transpose %122, [1, 0] : vector<64x1xf32> -> vector<1x64xf32>
    %126 = vector.broadcast %125 : vector<1x64xf32> to vector<64x64xf32>
    %127 = arith.subf %124, %126 : vector<64x64xf32>
    %128 = tpu.iota {dimensions = array<i32: 1>} : vector<64x64xi32>
    %129 = arith.truncf %115 : vector<64x64xf32> to vector<64x64xbf16>
    %cst_36 = arith.constant dense<0xFF800000> : vector<64xf32>
    %130 = vector.multi_reduction <maximumf>, %127, %cst_36 [1] : vector<64x64xf32> to vector<64xf32>
    %131 = vector.shape_cast %130 : vector<64xf32> to vector<64x1xf32>
    %132 = vector.broadcast %131 : vector<64x1xf32> to vector<64x64xf32>
    %133 = arith.cmpf oge, %127, %132 : vector<64x64xf32>
    %c64_i32_37 = arith.constant 64 : i32
    %134 = vector.broadcast %c64_i32_37 : i32 to vector<64x64xi32>
    %135 = arith.select %133, %128, %134 : vector<64x64xi1>, vector<64x64xi32>
    %cst_38 = arith.constant dense<2147483647> : vector<64xi32>
    %136 = vector.multi_reduction <minsi>, %135, %cst_38 [1] : vector<64x64xi32> to vector<64xi32>
    %137 = vector.shape_cast %136 : vector<64xi32> to vector<64x1xi32>
    %138 = vector.broadcast %137 : vector<64x1xi32> to vector<64x64xi32>
    %139 = arith.cmpi eq, %128, %138 : vector<64x64xi32>
    %140 = arith.extui %139 : vector<64x64xi1> to vector<64x64xi32>
    %141 = arith.sitofp %140 : vector<64x64xi32> to vector<64x64xf32>
    %142 = arith.truncf %141 : vector<64x64xf32> to vector<64x64xbf16>
    %cst_39 = arith.constant dense<0.000000e+00> : vector<64x64xf32>
    %143 = tpu.matmul %142, %129, %cst_39 {dimension_numbers = #tpu.dot_dimension_numbers<[1], [0], [0], [1], [0, 0, 1, 1], [], []>} : vector<64x64xbf16>, vector<64x64xbf16>, vector<64x64xf32> -> vector<64x64xf32>
    %cst_40 = arith.constant -1.000000e+30 : f32
    %144 = vector.broadcast %cst_40 : f32 to vector<64x64xf32>
    %145 = arith.select %139, %144, %127 : vector<64x64xi1>, vector<64x64xf32>
    %cst_41 = arith.constant dense<0xFF800000> : vector<64xf32>
    %146 = vector.multi_reduction <maximumf>, %145, %cst_41 [1] : vector<64x64xf32> to vector<64xf32>
    %147 = vector.shape_cast %146 : vector<64xf32> to vector<64x1xf32>
    %148 = vector.broadcast %147 : vector<64x1xf32> to vector<64x64xf32>
    %149 = arith.cmpf oge, %145, %148 : vector<64x64xf32>
    %c64_i32_42 = arith.constant 64 : i32
    %150 = vector.broadcast %c64_i32_42 : i32 to vector<64x64xi32>
    %151 = arith.select %149, %128, %150 : vector<64x64xi1>, vector<64x64xi32>
    %cst_43 = arith.constant dense<2147483647> : vector<64xi32>
    %152 = vector.multi_reduction <minsi>, %151, %cst_43 [1] : vector<64x64xi32> to vector<64xi32>
    %153 = vector.shape_cast %152 : vector<64xi32> to vector<64x1xi32>
    %154 = vector.broadcast %153 : vector<64x1xi32> to vector<64x64xi32>
    %155 = arith.cmpi eq, %128, %154 : vector<64x64xi32>
    %156 = arith.extui %155 : vector<64x64xi1> to vector<64x64xi32>
    %157 = arith.sitofp %156 : vector<64x64xi32> to vector<64x64xf32>
    %158 = arith.truncf %157 : vector<64x64xf32> to vector<64x64xbf16>
    %cst_44 = arith.constant dense<0.000000e+00> : vector<64x64xf32>
    %159 = tpu.matmul %158, %129, %cst_44 {dimension_numbers = #tpu.dot_dimension_numbers<[1], [0], [0], [1], [0, 0, 1, 1], [], []>} : vector<64x64xbf16>, vector<64x64xbf16>, vector<64x64xf32> -> vector<64x64xf32>
    %160 = arith.maximumf %143, %159 : vector<64x64xf32>
    %cst_45 = arith.constant -1.000000e+30 : f32
    %161 = vector.broadcast %cst_45 : f32 to vector<64x64xf32>
    %162 = arith.select %155, %161, %145 : vector<64x64xi1>, vector<64x64xf32>
    %cst_46 = arith.constant dense<0xFF800000> : vector<64xf32>
    %163 = vector.multi_reduction <maximumf>, %162, %cst_46 [1] : vector<64x64xf32> to vector<64xf32>
    %164 = vector.shape_cast %163 : vector<64xf32> to vector<64x1xf32>
    %165 = vector.broadcast %164 : vector<64x1xf32> to vector<64x64xf32>
    %166 = arith.cmpf oge, %162, %165 : vector<64x64xf32>
    %c64_i32_47 = arith.constant 64 : i32
    %167 = vector.broadcast %c64_i32_47 : i32 to vector<64x64xi32>
    %168 = arith.select %166, %128, %167 : vector<64x64xi1>, vector<64x64xi32>
    %cst_48 = arith.constant dense<2147483647> : vector<64xi32>
    %169 = vector.multi_reduction <minsi>, %168, %cst_48 [1] : vector<64x64xi32> to vector<64xi32>
    %170 = vector.shape_cast %169 : vector<64xi32> to vector<64x1xi32>
    %171 = vector.broadcast %170 : vector<64x1xi32> to vector<64x64xi32>
    %172 = arith.cmpi eq, %128, %171 : vector<64x64xi32>
    %173 = arith.extui %172 : vector<64x64xi1> to vector<64x64xi32>
    %174 = arith.sitofp %173 : vector<64x64xi32> to vector<64x64xf32>
    %175 = arith.truncf %174 : vector<64x64xf32> to vector<64x64xbf16>
    %cst_49 = arith.constant dense<0.000000e+00> : vector<64x64xf32>
    %176 = tpu.matmul %175, %129, %cst_49 {dimension_numbers = #tpu.dot_dimension_numbers<[1], [0], [0], [1], [0, 0, 1, 1], [], []>} : vector<64x64xbf16>, vector<64x64xbf16>, vector<64x64xf32> -> vector<64x64xf32>
    %177 = arith.maximumf %160, %176 : vector<64x64xf32>
    %cst_50 = arith.constant -1.000000e+30 : f32
    %178 = vector.broadcast %cst_50 : f32 to vector<64x64xf32>
    %179 = arith.select %172, %178, %162 : vector<64x64xi1>, vector<64x64xf32>
    %cst_51 = arith.constant dense<0xFF800000> : vector<64xf32>
    %180 = vector.multi_reduction <maximumf>, %179, %cst_51 [1] : vector<64x64xf32> to vector<64xf32>
    %181 = vector.shape_cast %180 : vector<64xf32> to vector<64x1xf32>
    %182 = vector.broadcast %181 : vector<64x1xf32> to vector<64x64xf32>
    %183 = arith.cmpf oge, %179, %182 : vector<64x64xf32>
    %c64_i32_52 = arith.constant 64 : i32
    %184 = vector.broadcast %c64_i32_52 : i32 to vector<64x64xi32>
    %185 = arith.select %183, %128, %184 : vector<64x64xi1>, vector<64x64xi32>
    %cst_53 = arith.constant dense<2147483647> : vector<64xi32>
    %186 = vector.multi_reduction <minsi>, %185, %cst_53 [1] : vector<64x64xi32> to vector<64xi32>
    %187 = vector.shape_cast %186 : vector<64xi32> to vector<64x1xi32>
    %188 = vector.broadcast %187 : vector<64x1xi32> to vector<64x64xi32>
    %189 = arith.cmpi eq, %128, %188 : vector<64x64xi32>
    %190 = arith.extui %189 : vector<64x64xi1> to vector<64x64xi32>
    %191 = arith.sitofp %190 : vector<64x64xi32> to vector<64x64xf32>
    %192 = arith.truncf %191 : vector<64x64xf32> to vector<64x64xbf16>
    %cst_54 = arith.constant dense<0.000000e+00> : vector<64x64xf32>
    %193 = tpu.matmul %192, %129, %cst_54 {dimension_numbers = #tpu.dot_dimension_numbers<[1], [0], [0], [1], [0, 0, 1, 1], [], []>} : vector<64x64xbf16>, vector<64x64xbf16>, vector<64x64xf32> -> vector<64x64xf32>
    %194 = arith.maximumf %177, %193 : vector<64x64xf32>
    %195 = arith.addf %194, %117 : vector<64x64xf32>
    %cst_55 = arith.constant 0.000000e+00 : f32
    %196 = vector.broadcast %cst_55 : f32 to vector<64x64xf32>
    %197 = arith.cmpf ogt, %195, %196 : vector<64x64xf32>
    %cst_56 = arith.constant 2.000000e-01 : f32
    %198 = vector.broadcast %cst_56 : f32 to vector<64x64xf32>
    %199 = arith.mulf %198, %195 : vector<64x64xf32>
    %200 = arith.select %197, %195, %199 : vector<64x64xi1>, vector<64x64xf32>
    %cst_57 = arith.constant dense<0xFF800000> : vector<64xf32>
    %201 = vector.multi_reduction <maximumf>, %200, %cst_57 [0] : vector<64x64xf32> to vector<64xf32>
    %202 = vector.shape_cast %201 : vector<64xf32> to vector<1x64xf32>
    %c0_58 = arith.constant 0 : index
    %c0_59 = arith.constant 0 : index
    %203 = vector.load %arg7[%c0_58, %c0_59] : memref<64x48xf32, #tpu.memory_space<vmem>>, vector<64x48xf32>
    %c0_60 = arith.constant 0 : index
    %c0_61 = arith.constant 0 : index
    %204 = vector.load %arg8[%c0_60, %c0_61] : memref<1x48xf32, #tpu.memory_space<vmem>>, vector<1x48xf32>
    %205 = arith.truncf %202 : vector<1x64xf32> to vector<1x64xbf16>
    %206 = arith.truncf %203 : vector<64x48xf32> to vector<64x48xbf16>
    %cst_62 = arith.constant dense<0.000000e+00> : vector<1x48xf32>
    %207 = tpu.matmul %205, %206, %cst_62 {dimension_numbers = #tpu.dot_dimension_numbers<[1], [0], [0], [1], [0, 0, 1, 1], [], []>} : vector<1x64xbf16>, vector<64x48xbf16>, vector<1x48xf32> -> vector<1x48xf32>
    %208 = arith.addf %207, %204 : vector<1x48xf32>
    %209 = vector.extract_strided_slice %208 {offsets = [0, 0], sizes = [1, 16], strides = [1, 1]} : vector<1x48xf32> to vector<1x16xf32>
    %210 = vector.extract_strided_slice %208 {offsets = [0, 16], sizes = [1, 16], strides = [1, 1]} : vector<1x48xf32> to vector<1x16xf32>
    %c0_63 = arith.constant 0 : index
    %c0_64 = arith.constant 0 : index
    %c0_65 = arith.constant 0 : index
    %211 = vector.load %arg2[%c0_63, %c0_64, %c0_65] : memref<1x1x16xf32, #tpu.memory_space<vmem>>, vector<1x1x16xf32>
    %212 = vector.shape_cast %211 : vector<1x1x16xf32> to vector<1x16xf32>
    %cst_66 = arith.constant 5.000000e-01 : f32
    %213 = vector.broadcast %cst_66 : f32 to vector<1x16xf32>
    %214 = arith.mulf %213, %210 : vector<1x16xf32>
    %215 = math.exp %214 : vector<1x16xf32>
    %216 = arith.mulf %212, %215 : vector<1x16xf32>
    %217 = arith.addf %209, %216 : vector<1x16xf32>
    %c0_67 = arith.constant 0 : index
    %c0_68 = arith.constant 0 : index
    %218 = vector.load %arg9[%c0_67, %c0_68] : memref<16x128xf32, #tpu.memory_space<vmem>>, vector<16x128xf32>
    %c0_69 = arith.constant 0 : index
    %c0_70 = arith.constant 0 : index
    %219 = vector.load %arg10[%c0_69, %c0_70] : memref<1x128xf32, #tpu.memory_space<vmem>>, vector<1x128xf32>
    %220 = arith.truncf %217 : vector<1x16xf32> to vector<1x16xbf16>
    %221 = arith.truncf %218 : vector<16x128xf32> to vector<16x128xbf16>
    %cst_71 = arith.constant dense<0.000000e+00> : vector<1x128xf32>
    %222 = tpu.matmul %220, %221, %cst_71 {dimension_numbers = #tpu.dot_dimension_numbers<[1], [0], [0], [1], [0, 0, 1, 1], [], []>} : vector<1x16xbf16>, vector<16x128xbf16>, vector<1x128xf32> -> vector<1x128xf32>
    %223 = arith.addf %222, %219 : vector<1x128xf32>
    %cst_72 = arith.constant 0.000000e+00 : f32
    %224 = vector.broadcast %cst_72 : f32 to vector<1x128xf32>
    %225 = arith.maximumf %223, %224 : vector<1x128xf32>
    %c0_73 = arith.constant 0 : index
    %c0_74 = arith.constant 0 : index
    %226 = vector.load %arg11[%c0_73, %c0_74] : memref<128x192xf32, #tpu.memory_space<vmem>>, vector<128x192xf32>
    %c0_75 = arith.constant 0 : index
    %c0_76 = arith.constant 0 : index
    %227 = vector.load %arg12[%c0_75, %c0_76] : memref<1x192xf32, #tpu.memory_space<vmem>>, vector<1x192xf32>
    %228 = arith.truncf %225 : vector<1x128xf32> to vector<1x128xbf16>
    %229 = arith.truncf %226 : vector<128x192xf32> to vector<128x192xbf16>
    %cst_77 = arith.constant dense<0.000000e+00> : vector<1x192xf32>
    %230 = tpu.matmul %228, %229, %cst_77 {dimension_numbers = #tpu.dot_dimension_numbers<[1], [0], [0], [1], [0, 0, 1, 1], [], []>} : vector<1x128xbf16>, vector<128x192xbf16>, vector<1x192xf32> -> vector<1x192xf32>
    %231 = arith.addf %230, %227 : vector<1x192xf32>
    %232 = tpu.concatenate %208, %217, %231 in 1 : vector<1x48xf32>, vector<1x16xf32>, vector<1x192xf32> -> vector<1x256xf32>
    %c0_78 = arith.constant 0 : index
    %c0_79 = arith.constant 0 : index
    %c0_80 = arith.constant 0 : index
    %233 = vector.load %arg13[%c0_78, %c0_79, %c0_80] : memref<1x1x256xf32, #tpu.memory_space<vmem>>, vector<1x1x256xf32>
    %234 = vector.shape_cast %233 : vector<1x1x256xf32> to vector<1x256xf32>
    %235 = vector.shape_cast %232 : vector<1x256xf32> to vector<1x1x256xf32>
    tpu.vector_store %arg13[%c0_78, %c0_79, %c0_80], %235 {strides = array<i32>} : memref<1x1x256xf32, #tpu.memory_space<vmem>>, vector<1x1x256xf32>,
    return
  }
  func.func @transform_0(%arg0: i32) -> (i32, i32, i32) {
    %c0_i32 = arith.constant 0 : i32
    %c0_i32_0 = arith.constant 0 : i32
    %c0_i32_1 = arith.constant 0 : i32
    return %arg0, %c0_i32, %c0_i32_0 : i32, i32, i32
  }
  func.func @transform_1(%arg0: i32) -> (i32, i32, i32) {
    %c0_i32 = arith.constant 0 : i32
    %c0_i32_0 = arith.constant 0 : i32
    %c0_i32_1 = arith.constant 0 : i32
    return %arg0, %c0_i32, %c0_i32_0 : i32, i32, i32
  }
  func.func @transform_2(%arg0: i32) -> (i32, i32) {
    %c0_i32 = arith.constant 0 : i32
    %c0_i32_0 = arith.constant 0 : i32
    %c0_i32_1 = arith.constant 0 : i32
    return %c0_i32, %c0_i32_0 : i32, i32
  }
  func.func @transform_3(%arg0: i32) -> (i32, i32) {
    %c0_i32 = arith.constant 0 : i32
    %c0_i32_0 = arith.constant 0 : i32
    %c0_i32_1 = arith.constant 0 : i32
    return %c0_i32, %c0_i32_0 : i32, i32
  }
  func.func @transform_4(%arg0: i32) -> (i32, i32) {
    %c0_i32 = arith.constant 0 : i32
    %c0_i32_0 = arith.constant 0 : i32
    %c0_i32_1 = arith.constant 0 : i32
    return %c0_i32, %c0_i32_0 : i32, i32
  }
  func.func @transform_5(%arg0: i32) -> (i32, i32) {
    %c0_i32 = arith.constant 0 : i32
    %c0_i32_0 = arith.constant 0 : i32
    %c0_i32_1 = arith.constant 0 : i32
    return %c0_i32, %c0_i32_0 : i32, i32
  }
  func.func @transform_6(%arg0: i32) -> (i32, i32) {
    %c0_i32 = arith.constant 0 : i32
    %c0_i32_0 = arith.constant 0 : i32
    %c0_i32_1 = arith.constant 0 : i32
    return %c0_i32, %c0_i32_0 : i32, i32
  }
  func.func @transform_7(%arg0: i32) -> (i32, i32) {
    %c0_i32 = arith.constant 0 : i32
    %c0_i32_0 = arith.constant 0 : i32
    %c0_i32_1 = arith.constant 0 : i32
    return %c0_i32, %c0_i32_0 : i32, i32
  }
  func.func @transform_8(%arg0: i32) -> (i32, i32) {
    %c0_i32 = arith.constant 0 : i32
    %c0_i32_0 = arith.constant 0 : i32
    %c0_i32_1 = arith.constant 0 : i32
    return %c0_i32, %c0_i32_0 : i32, i32
  }
  func.func @transform_9(%arg0: i32) -> (i32, i32) {
    %c0_i32 = arith.constant 0 : i32
    %c0_i32_0 = arith.constant 0 : i32
    %c0_i32_1 = arith.constant 0 : i32
    return %c0_i32, %c0_i32_0 : i32, i32
  }
  func.func @transform_10(%arg0: i32) -> (i32, i32) {
    %c0_i32 = arith.constant 0 : i32
    %c0_i32_0 = arith.constant 0 : i32
    %c0_i32_1 = arith.constant 0 : i32
    return %c0_i32, %c0_i32_0 : i32, i32
  }
  func.func @transform_11(%arg0: i32) -> (i32, i32) {
    %c0_i32 = arith.constant 0 : i32
    %c0_i32_0 = arith.constant 0 : i32
    %c0_i32_1 = arith.constant 0 : i32
    return %c0_i32, %c0_i32_0 : i32, i32
  }
  func.func @transform_12(%arg0: i32) -> (i32, i32, i32) {
    %c0_i32 = arith.constant 0 : i32
    %c0_i32_0 = arith.constant 0 : i32
    %c0_i32_1 = arith.constant 0 : i32
    return %arg0, %c0_i32, %c0_i32_0 : i32, i32, i32
  }
}

</mosaic_0001>

<bundles_post_ra>
// kernel: contrastive_vae_forward.1
= control target key start
LH: loop header
LB: loop body
LE: loop exit
PB: predicated region body
PF: predicated region fallthrough
CT: control target
= control target key end

     0   :  { %s4446_s21 = smov 0   ;;  %s6370_s0 = inlined_call_operand.vmem [shape: f32[2,64,3], index: 0, kind: input, shape index: {}]   ;;  %s6371_s1 = inlined_call_operand.vmem [shape: f32[2,1,16], index: 1, kind: input, shape index: {}]   ;;  %s6372_s2 = inlined_call_operand.vmem [shape: f32[3,128], index: 2, kind: input, shape index: {}]   ;;  %s6373_s3 = inlined_call_operand.vmem [shape: f32[1,128], index: 3, kind: input, shape index: {}]   ;;  %s6374_s4 = inlined_call_operand.vmem [shape: f32[64,128], index: 4, kind: input, shape index: {}]   ;;  %s6375_s5 = inlined_call_operand.vmem [shape: f32[1,128], index: 5, kind: input, shape index: {}]   ;;  %s6376_s6 = inlined_call_operand.vmem [shape: f32[64,48], index: 6, kind: input, shape index: {}]   ;;  %s6377_s7 = inlined_call_operand.vmem [shape: f32[1,48], index: 7, kind: input, shape index: {}]   ;;  %s6378_s8 = inlined_call_operand.vmem [shape: f32[16,128], index: 8, kind: input, shape index: {}]   ;;  %s6379_s9 = inlined_call_operand.vmem [shape: f32[1,128], index: 9, kind: input, shape index: {}]   ;;  %s6380_s10 = inlined_call_operand.vmem [shape: f32[128,192], index: 10, kind: input, shape index: {}]   ;;  %s6381_s11 = inlined_call_operand.vmem [shape: f32[1,192], index: 11, kind: input, shape index: {}]   ;;  %s6382_s12 = inlined_call_operand.vmem [shape: f32[2,1,256], index: 12, kind: output, shape index: {}]  }
   0x1 LB: > { %s3850_s22 = sadd.s32 4294967295, %s4370_s21   ;;  %p3854_p0 = scmp.ge.s32.totalorder %s4370_s21, 1  ;;  %s4370_s21 = sphi %s4446_s21, %s22_s21  }
   0x2   : > { %p370_p1 = scmp.lt.s32.totalorder %s4370_s21, 3 }
   0x4   : > { %p371_p2 = pnand %p3854_p0, %p370_p1 }
   0x6   : > { %374 = sbr.rel (%p371_p2) target bundleno = 5641 (0x1609), region = 68 }
   0xd   : > { %p414_p3 = scmp.lt.s32.totalorder %s3850_s22, 1  ;;  %vm647_vm0 = vcmask 23552   ;;  %v6383_v45 = vlaneseq  ;;  %vm859_vm2 = vcmask 523264   ;;  %s4376_s13 = smov 64  }
   0xe   : > { %vm4464_vm1 = vmpackc.low %vm647_vm0, %vm647_vm0  ;;  %s4380_s19 = smov 48  }
   0xf   : > { %s6432_s22 = smov (!%p414_p3, %s3850_s22), 1  ;;  %v4521_v46 = vshrl.u32 %v6383_v45, 7 }
  0x10   : > { %s3984_s23 = sshll.u32 %s6432_s22, 6  ;;  %s421_s15 = scalar_lea.vmem %s6371_s1, %s6432_s22 }
  0x11   : > { %s4460_s26 = scalar_lea.vmem %s6370_s0, %s3984_s23  ;;  %6400 = vst [vmem:[#allocation2_spill] sm:$0xff] %v4521_v46  ;;  %v4524_v47 = vsub.s32 0, %v4521_v46  ;;  %s3857_s24 = sshll.u32 %s6432_s22, 1 }
  0x12   : > { %v4469_v1 = vld [vmem:[%s4460_s26] sm:$0xff]  ;;  %v4472_v2 = vld [vmem:[%s4460_s26 + $0x8] sm:$0xff]  ;;  %v429_v3 = vld [vmem:[%s4460_s26 + $0x10] sm:$0xff]  ;;  %s425_s27 = scalar_lea.vmem %s6382_s12, %s3857_s24 }
  0x13   : > { %v769_v4 = vmul.f32 %v4469_v1, %v4469_v1  ;;  %v770_v5 = vmul.f32 %v4472_v2, %v4472_v2  ;;  %v771_v6 = vmul.f32 %v429_v3, %v429_v3  ;;  %v430_v7 = vld [vmem:[%s4460_s26 + $0x18] sm:$0xff]  ;;  %v4294_v8 = vpack.c.bf16 %v4472_v2, %v4469_v1  ;;  %4104 = vmatprep.mubr.msk.f32.mxu0 %vm647_vm0, %v4469_v1  ;;  %v431_v10 = vld [vmem:[%s4460_s26 + $0x20] sm:$0xff]  ;;  %v432_v11 = vld [vmem:[%s4460_s26 + $0x28] sm:$0xff] }
  0x14   : > { %v772_v9 = vmul.f32 %v430_v7, %v430_v7  ;;  %v4300_v12 = vpack.c.bf16 %v430_v7, %v429_v3  ;;  %v773_v17 = vmul.f32 %v431_v10, %v431_v10  ;;  %v774_v18 = vmul.f32 %v432_v11, %v432_v11  ;;  %v433_v19 = vld [vmem:[%s4460_s26 + $0x30] sm:$0xff]  ;;  %v434_v20 = vld [vmem:[%s4460_s26 + $0x38] sm:$0xff]  ;;  %6401 = vst [vmem:[#allocation3_spill] sm:$0xff] %v4524_v47 }
  0x15   : > { %v777_v13 = vsel %vm647_vm0, %v769_v4, 0.0  ;;  %v783_v14 = vsel %vm647_vm0, %v771_v6, 0.0  ;;  %4296 = vmatprep.subr.msk.bf16.mxu0 %vm4464_vm1, %v4294_v8  ;;  %v780_v15 = vsel %vm647_vm0, %v770_v5, 0.0  ;;  %v775_v23 = vmul.f32 %v433_v19, %v433_v19 }
  0x16   : > { %778 = vadd.xlane.f32.xlu0 %v777_v13  ;;  %784 = vadd.xlane.f32.xlu1 %v783_v14  ;;  %v786_v16 = vsel %vm647_vm0, %v772_v9, 0.0  ;;  %v789_v21 = vsel %vm647_vm0, %v773_v17, 0.0  ;;  %v792_v22 = vsel %vm647_vm0, %v774_v18, 0.0  ;;  %v776_v24 = vmul.f32 %v434_v20, %v434_v20 }
  0x17   : > { %4299 = vmatpush3.bf16.xpose.msk.msra.mxu0 %vm4464_vm1, %v4294_v8  ;;  %v4306_v25 = vpack.c.bf16 %v432_v11, %v431_v10  ;;  %v795_v26 = vsel %vm647_vm0, %v775_v23, 0.0  ;;  %v4312_v28 = vpack.c.bf16 %v434_v20, %v433_v19 }
  0x18   : > { %4302 = vmatprep.subr.msk.bf16.mxu0 %vm4464_vm1, %v4300_v12  ;;  %v798_v27 = vsel %vm647_vm0, %v776_v24, 0.0 }
  0x1a   : > { %781 = vadd.xlane.f32.xlu0 %v780_v15  ;;  %787 = vadd.xlane.f32.xlu1 %v786_v16 }
  0x1e   : > { %790 = vadd.xlane.f32.xlu0 %v789_v21  ;;  %793 = vadd.xlane.f32.xlu1 %v792_v22 }
  0x1f   : > { %4305 = vmatpush3.bf16.xpose.msk.msra.mxu0 %vm4464_vm1, %v4300_v12  ;;  %v4560_v12 = vand.u32 127, %v6383_v45 }
  0x20   : > { %4308 = vmatprep.subr.msk.bf16.mxu0 %vm4464_vm1, %v4306_v25 }
  0x22   : > { %796 = vadd.xlane.f32.xlu0 %v795_v26  ;;  %799 = vadd.xlane.f32.xlu1 %v798_v27 }
  0x27   : > { %4311 = vmatpush3.bf16.xpose.msk.msra.mxu0 %vm4464_vm1, %v4306_v25 }
  0x28   : > { %4314 = vmatprep.subr.msk.bf16.mxu0 %vm4464_vm1, %v4312_v28 }
  0x2f   : > { %4317 = vmatpush3.bf16.xpose.msk.msra.mxu0 %vm4464_vm1, %v4312_v28 }
  0x36   : > { %4105 = vmatmul.mubr.msk.f32.vlgmr.msra.gmra.mrb[0].mxu0 %vm647_vm0, %v4472_v2 }
  0x37   : > { %4107 = vmatprep.mubr.msk.f32.mxu0 %vm647_vm0, %v429_v3 }
  0x3a   : > { %4108 = vmatmul.mubr.msk.f32.gmra.mrb[2].mxu0 %vm647_vm0, %v430_v7 }
  0x3b   : > { %4110 = vmatprep.mubr.msk.f32.mxu0 %vm647_vm0, %v431_v10 }
  0x3e   : > { %4111 = vmatmul.mubr.msk.f32.gmra.mrb[4].mxu0 %vm647_vm0, %v432_v11 }
  0x3f   : > { %4113 = vmatprep.mubr.msk.f32.mxu0 %vm647_vm0, %v433_v19 }
  0x42   : > { %4114 = vmatmul.mubr.msk.f32.gmra.mrb[6].mxu0 %vm647_vm0, %v434_v20 }
  0xa3   : > { %v779_v29 = vpop.xlane.xlu0 %778  ;;  %v785_v31 = vpop.xlane.xlu1 %784 }
  0xa4   : > { %809 = vxpose.xlu0.b32.start [1/8] (short) (narrow) %v779_v29, 8 }
  0xa7   : > { %v782_v30 = vpop.xlane.xlu0 %781  ;;  %v788_v32 = vpop.xlane.xlu1 %787 }
  0xa8   : > { %810 = vxpose.xlu0.b32.cont [2/8] (short) (narrow) %v782_v30, 8 }
  0xab   : > { %v791_v33 = vpop.xlane.xlu0 %790  ;;  %v794_v34 = vpop.xlane.xlu1 %793 }
  0xac   : > { %811 = vxpose.xlu0.b32.cont [3/8] (short) (narrow) %v785_v31, 8 }
  0xaf   : > { %v797_v35 = vpop.xlane.xlu0 %796  ;;  %v800_v36 = vpop.xlane.xlu1 %799 }
  0xb0   : > { %812 = vxpose.xlu0.b32.cont [4/8] (short) (narrow) %v788_v32, 8 }
  0xb4   : > { %813 = vxpose.xlu0.b32.cont [5/8] (short) (narrow) %v791_v33, 8 }
  0xb8   : > { %814 = vxpose.xlu0.b32.cont [6/8] (short) (narrow) %v794_v34, 8 }
  0xbc   : > { %815 = vxpose.xlu0.b32.cont [7/8] (short) (narrow) %v797_v35, 8 }
  0xc0   : > { %816 = vxpose.xlu0.b32.end [8/8] (short) (narrow) %v800_v36, 8 }
 0x109   : > { %v4106_v37 = vpop.f32.mrb[0].mxu0 }
 0x10a   : > { %v730_v38 = vpop.f32.mrb[1].mxu0  ;;  %v802_v48 = vmul.f32 2.0, %v4106_v37 }
 0x10b   : > { %v801_v50 = vmul.f32 2.0, %v730_v38 }
 0x10d   : > { %v4109_v39 = vpop.f32.mrb[2].mxu0 }
 0x10e   : > { %v740_v40 = vpop.f32.mrb[3].mxu0  ;;  %v804_v53 = vmul.f32 2.0, %v4109_v39 }
 0x10f   : > { %v803_v56 = vmul.f32 2.0, %v740_v40 }
 0x111   : > { %v4112_v41 = vpop.f32.mrb[4].mxu0 }
 0x112   : > { %v750_v42 = vpop.f32.mrb[5].mxu0  ;;  %v806_v59 = vmul.f32 2.0, %v4112_v41 }
 0x113   : > { %v805_v62 = vmul.f32 2.0, %v750_v42 }
 0x115   : > { %v4115_v43 = vpop.f32.mrb[6].mxu0 }
 0x116   : > { %v760_v44 = vpop.f32.mrb[7].mxu0  ;;  %v808_v6 = vmul.f32 2.0, %v4115_v43 }
 0x117   : > { %v807_v3 = vmul.f32 2.0, %v760_v44 }
 0x124   : > { %v825_v49 = vpop.trf.xlu0 }
 0x125   : > { %v844_v51 = vrot.slane %v825_v49, %v4524_v47 }
 0x127   : > { %v4527_v52 = vsub.f32 %v802_v48, %v844_v51  ;;  %v4531_v55 = vsub.f32 %v801_v50, %v844_v51  ;;  %v4535_v58 = vsub.f32 %v804_v53, %v844_v51  ;;  %v4539_v61 = vsub.f32 %v803_v56, %v844_v51 }
 0x128   : > { %v4543_v0 = vsub.f32 %v806_v59, %v844_v51  ;;  %v4547_v5 = vsub.f32 %v805_v62, %v844_v51  ;;  %v4549_v7 = vsub.f32 %v807_v3, %v844_v51  ;;  %v4555_v10 = vsub.f32 %v808_v6, %v844_v51 }
 0x129   : > { %v863_v54 = vsel %vm859_vm2, %v4527_v52, -inf  ;;  %v860_v57 = vsel %vm859_vm2, %v4531_v55, -inf  ;;  %v869_v60 = vsel %vm859_vm2, %v4535_v58, -inf  ;;  %v866_v63 = vsel %vm859_vm2, %v4539_v61, -inf }
 0x12a   : > { %864 = vmax.xlane.f32.xlu1 %v863_v54  ;;  %v875_v4 = vsel %vm859_vm2, %v4543_v0, -inf  ;;  %v872_v8 = vsel %vm859_vm2, %v4547_v5, -inf  ;;  %v878_v9 = vsel %vm859_vm2, %v4549_v7, -inf  ;;  %v881_v11 = vsel %vm859_vm2, %v4555_v10, -inf }
 0x12e   : > { %861 = vmax.xlane.f32.xlu1 %v860_v57 }
 0x132   : > { %870 = vmax.xlane.f32.xlu1 %v869_v60 }
 0x136   : > { %867 = vmax.xlane.f32.xlu1 %v866_v63 }
 0x13a   : > { %876 = vmax.xlane.f32.xlu1 %v875_v4 }
 0x13e   : > { %873 = vmax.xlane.f32.xlu1 %v872_v8 }
 0x142   : > { %879 = vmax.xlane.f32.xlu1 %v878_v9 }
 0x146   : > { %882 = vmax.xlane.f32.xlu1 %v881_v11 }
 0x1b7   : > { %v865_v13 = vpop.xlane.xlu1 %864 }
 0x1b8   : > { %vm885_vm3 = vcmp.ge.f32.partialorder %v4527_v52, %v865_v13 }
 0x1b9   : > { %v893_v14 = vsel %vm885_vm3, %v4560_v12, 64 }
 0x1ba   : > { %v915_v15 = vsel %vm859_vm2, %v893_v14, 2147483647 }
 0x1bb   : > { %v862_v16 = vpop.xlane.xlu1 %861  ;;  %v917_v17 = vshra.s32 %v915_v15, 16  ;;  %v916_v59 = vand.u32 65535, %v915_v15 }
 0x1bc   : > { %vm884_vm4 = vcmp.ge.f32.partialorder %v4531_v55, %v862_v16 }
 0x1bd   : > { %v892_v18 = vsel %vm884_vm4, %v4560_v12, 64  ;;  %v919_v19 = vcvt.s32.f32 %v917_v17  ;;  %v918_v62 = vcvt.s32.f32 %v916_v59  ;;  %v6390_v59 = vmov 0.0  }
 0x1be   : > { %v900_v20 = vsel %vm859_vm2, %v892_v18, 2147483647 }
 0x1bf   : > { %v871_v21 = vpop.xlane.xlu1 %870  ;;  %920 = vmin.xlane.f32.xlu1 %v919_v19  ;;  %v902_v22 = vshra.s32 %v900_v20, 16  ;;  %v901_v63 = vand.u32 65535, %v900_v20 }
 0x1c0   : > { %vm887_vm5 = vcmp.ge.f32.partialorder %v4535_v58, %v871_v21 }
 0x1c1   : > { %v895_v23 = vsel %vm887_vm5, %v4560_v12, 64  ;;  %v904_v24 = vcvt.s32.f32 %v902_v22  ;;  %v903_v6 = vcvt.s32.f32 %v901_v63 }
 0x1c2   : > { %v945_v25 = vsel %vm859_vm2, %v895_v23, 2147483647 }
 0x1c3   : > { %v868_v26 = vpop.xlane.xlu1 %867  ;;  %905 = vmin.xlane.f32.xlu1 %v904_v24  ;;  %v947_v27 = vshra.s32 %v945_v25, 16  ;;  %v946_v8 = vand.u32 65535, %v945_v25 }
 0x1c4   : > { %vm886_vm6 = vcmp.ge.f32.partialorder %v4539_v61, %v868_v26 }
 0x1c5   : > { %v894_v28 = vsel %vm886_vm6, %v4560_v12, 64  ;;  %v949_v29 = vcvt.s32.f32 %v947_v27  ;;  %v948_v13 = vcvt.s32.f32 %v946_v8 }
 0x1c6   : > { %v930_v30 = vsel %vm859_vm2, %v894_v28, 2147483647 }
 0x1c7   : > { %v877_v31 = vpop.xlane.xlu1 %876  ;;  %950 = vmin.xlane.f32.xlu1 %v949_v29  ;;  %v932_v32 = vshra.s32 %v930_v30, 16  ;;  %v931_v14 = vand.u32 65535, %v930_v30 }
 0x1c8   : > { %vm889_vm7 = vcmp.ge.f32.partialorder %v4543_v0, %v877_v31 }
 0x1c9   : > { %v897_v33 = vsel %vm889_vm7, %v4560_v12, 64  ;;  %v934_v34 = vcvt.s32.f32 %v932_v32  ;;  %v933_v15 = vcvt.s32.f32 %v931_v14 }
 0x1ca   : > { %v975_v35 = vsel %vm859_vm2, %v897_v33, 2147483647 }
 0x1cb   : > { %v874_v36 = vpop.xlane.xlu1 %873  ;;  %935 = vmin.xlane.f32.xlu1 %v934_v34  ;;  %v977_v37 = vshra.s32 %v975_v35, 16  ;;  %v976_v18 = vand.u32 65535, %v975_v35 }
 0x1cc   : > { %vm888_vm8 = vcmp.ge.f32.partialorder %v4547_v5, %v874_v36 }
 0x1cd   : > { %v896_v38 = vsel %vm888_vm8, %v4560_v12, 64  ;;  %v979_v39 = vcvt.s32.f32 %v977_v37  ;;  %v978_v21 = vcvt.s32.f32 %v976_v18 }
 0x1ce   : > { %v960_v40 = vsel %vm859_vm2, %v896_v38, 2147483647 }
 0x1cf   : > { %980 = vmin.xlane.f32.xlu1 %v979_v39  ;;  %v880_v41 = vpop.xlane.xlu1 %879  ;;  %v962_v42 = vshra.s32 %v960_v40, 16  ;;  %v961_v22 = vand.u32 65535, %v960_v40 }
 0x1d0   : > { %vm890_vm9 = vcmp.ge.f32.partialorder %v4549_v7, %v880_v41 }
 0x1d1   : > { %v898_v43 = vsel %vm890_vm9, %v4560_v12, 64  ;;  %v964_v44 = vcvt.s32.f32 %v962_v42  ;;  %v963_v25 = vcvt.s32.f32 %v961_v22 }
 0x1d2   : > { %v990_v48 = vsel %vm859_vm2, %v898_v43, 2147483647 }
 0x1d3   : > { %965 = vmin.xlane.f32.xlu1 %v964_v44  ;;  %v883_v49 = vpop.xlane.xlu1 %882  ;;  %v992_v50 = vshra.s32 %v990_v48, 16  ;;  %v991_v26 = vand.u32 65535, %v990_v48 }
 0x1d4   : > { %vm891_vm10 = vcmp.ge.f32.partialorder %v4555_v10, %v883_v49 }
 0x1d5   : > { %v899_v51 = vsel %vm891_vm10, %v4560_v12, 64  ;;  %v994_v53 = vcvt.s32.f32 %v992_v50 }
 0x1d6   : > { %v1005_v54 = vsel %vm859_vm2, %v899_v51, 2147483647 }
 0x1d7   : > { %995 = vmin.xlane.f32.xlu1 %v994_v53  ;;  %v1007_v56 = vshra.s32 %v1005_v54, 16  ;;  %v1006_v30 = vand.u32 65535, %v1005_v54 }
 0x1d9   : > { %v1009_v57 = vcvt.s32.f32 %v1007_v56  ;;  %v1008_v33 = vcvt.s32.f32 %v1006_v30 }
 0x1db   : > { %1010 = vmin.xlane.f32.xlu1 %v1009_v57 }
 0x24c   : > { %v921_v60 = vpop.xlane.xlu1 %920 }
 0x24d   : > { %vm922_vm11 = vcmp.eq.f32.partialorder %v919_v19, %v921_v60  ;;  %v927_v35 = vcvt.f32.s32 %v921_v60 }
 0x24e   : > { %v923_v3 = vsel %vm922_vm11, %v918_v62, inf }
 0x24f   : > { %924 = vmin.xlane.f32.xlu1 %v923_v3  ;;  %v928_v37 = vshll.u32 %v927_v35, 16 }
 0x250   : > { %v906_v4 = vpop.xlane.xlu1 %905 }
 0x251   : > { %vm907_vm12 = vcmp.eq.f32.partialorder %v904_v24, %v906_v4  ;;  %v912_v38 = vcvt.f32.s32 %v906_v4 }
 0x252   : > { %v908_v9 = vsel %vm907_vm12, %v903_v6, inf }
 0x253   : > { %909 = vmin.xlane.f32.xlu1 %v908_v9  ;;  %v913_v42 = vshll.u32 %v912_v38, 16 }
 0x254   : > { %v951_v11 = vpop.xlane.xlu1 %950 }
 0x255   : > { %vm952_vm13 = vcmp.eq.f32.partialorder %v949_v29, %v951_v11  ;;  %v993_v29 = vcvt.s32.f32 %v991_v26  ;;  %v957_v43 = vcvt.f32.s32 %v951_v11 }
 0x256   : > { %v953_v16 = vsel %vm952_vm13, %v948_v13, inf }
 0x257   : > { %954 = vmin.xlane.f32.xlu0 %v953_v16 }
 0x258   : > { %v936_v17 = vpop.xlane.xlu1 %935 }
 0x259   : > { %vm937_vm14 = vcmp.eq.f32.partialorder %v934_v34, %v936_v17  ;;  %v942_v54 = vcvt.f32.s32 %v936_v17 }
 0x25a   : > { %v938_v20 = vsel %vm937_vm14, %v933_v15, inf }
 0x25b   : > { %939 = vmin.xlane.f32.xlu1 %v938_v20  ;;  %v943_v6 = vshll.u32 %v942_v54, 16 }
 0x25c   : > { %v981_v19 = vpop.xlane.xlu1 %980 }
 0x25d   : > { %vm982_vm15 = vcmp.eq.f32.partialorder %v979_v39, %v981_v19  ;;  %v987_v8 = vcvt.f32.s32 %v981_v19 }
 0x25e   : > { %v983_v23 = vsel %vm982_vm15, %v978_v21, inf }
 0x25f   : > { %984 = vmin.xlane.f32.xlu1 %v983_v23  ;;  %v988_v13 = vshll.u32 %v987_v8, 16 }
 0x260   : > { %v4586_v24 = vpop.xlane.xlu1 %965 }
 0x261   : > { %vm967_vm0 = vcmp.eq.f32.partialorder %v964_v44, %v4586_v24  ;;  %v972_v14 = vcvt.f32.s32 %v4586_v24 }
 0x262   : > { %v968_v27 = vsel %vm967_vm0, %v963_v25, inf }
 0x263   : > { %969 = vmin.xlane.f32.xlu1 %v968_v27 }
 0x264   : > { %v4589_v28 = vpop.xlane.xlu1 %995 }
 0x265   : > { %vm997_vm1 = vcmp.eq.f32.partialorder %v994_v53, %v4589_v28  ;;  %v958_v53 = vshll.u32 %v957_v43, 16  ;;  %v1002_v24 = vcvt.f32.s32 %v4589_v28 }
 0x266   : > { %v998_v31 = vsel %vm997_vm1, %v993_v29, inf }
 0x267   : > { %999 = vmin.xlane.f32.xlu1 %v998_v31  ;;  %v1003_v31 = vshll.u32 %v1002_v24, 16 }
 0x268   : > { %v4592_v32 = vpop.xlane.xlu1 %1010 }
 0x269   : > { %vm1012_vm3 = vcmp.eq.f32.partialorder %v1009_v57, %v4592_v32 }
 0x26a   : > { %v1013_v34 = vsel %vm1012_vm3, %v1008_v33, inf  ;;  %v1017_v33 = vcvt.f32.s32 %v4592_v32 }
 0x26b   : > { %1014 = vmin.xlane.f32.xlu1 %v1013_v34 }
 0x26c   : > { %v1018_v38 = vshll.u32 %v1017_v33, 16 }
 0x2dc   : > { %v925_v36 = vpop.xlane.xlu1 %924 }
 0x2dd   : > { %v926_v39 = vcvt.f32.s32 %v925_v36 }
 0x2df   : > { %v929_v40 = vadd.s32 %v928_v37, %v926_v39 }
 0x2e0   : > { %v910_v41 = vpop.xlane.xlu1 %909 }
 0x2e1   : > { %v911_v44 = vcvt.f32.s32 %v910_v41  ;;  %vm1021_vm4 = vcmp.eq.s32.totalorder %v4560_v12, %v929_v40 }
 0x2e2   : > { %v4597_v48 = vsel %vm1021_vm4, -1e+30, %v4527_v52  ;;  %v3876_v52 = vsel %vm1021_vm4, 1.0, %v6390_v59 }
 0x2e3   : > { %v914_v49 = vadd.s32 %v913_v42, %v911_v44  ;;  %v1136_v50 = vsel %vm859_vm2, %v4597_v48, -inf }
 0x2e4   : > { %v955_v51 = vpop.xlane.xlu0 %954  ;;  %1137 = vmax.xlane.f32.xlu1 %v1136_v50 }
 0x2e5   : > { %v956_v56 = vcvt.f32.s32 %v955_v51  ;;  %vm1020_vm5 = vcmp.eq.s32.totalorder %v4560_v12, %v914_v49 }
 0x2e6   : > { %v4603_v57 = vsel %vm1020_vm5, -1e+30, %v4531_v55  ;;  %v3875_v60 = vsel %vm1020_vm5, 1.0, %v6390_v59 }
 0x2e7   : > { %v959_v62 = vadd.s32 %v958_v53, %v956_v56  ;;  %v1133_v63 = vsel %vm859_vm2, %v4603_v57, -inf  ;;  %v1044_v3 = vpack.c.bf16 %v3876_v52, %v3875_v60 }
 0x2e8   : > { %1134 = vmax.xlane.f32.xlu1 %v1133_v63  ;;  %v940_v4 = vpop.xlane.xlu1 %939 }
 0x2e9   : > { %v941_v9 = vcvt.f32.s32 %v940_v4  ;;  %4124 = vmatprep.mubr.msk.bf16.mxu1 %vm859_vm2, %v1044_v3  ;;  %vm1023_vm6 = vcmp.eq.s32.totalorder %v4560_v12, %v959_v62 }
 0x2ea   : > { %v4620_v18 = vsel %vm1023_vm6, 1.0, %v6390_v59  ;;  %v4627_v23 = vsel %vm1023_vm6, -1e+30, %v4535_v58 }
 0x2eb   : > { %v944_v11 = vadd.s32 %v943_v6, %v941_v9  ;;  %v1142_v27 = vsel %vm859_vm2, %v4627_v23, -inf }
 0x2ec   : > { %v985_v55 = vpop.xlane.xlu1 %984 }
 0x2ed   : > { %v986_v16 = vcvt.f32.s32 %v985_v55  ;;  %vm1022_vm7 = vcmp.eq.s32.totalorder %v4560_v12, %v944_v11 }
 0x2ee   : > { %v4614_v17 = vsel %vm1022_vm7, -1e+30, %v4539_v61  ;;  %v4617_v15 = vsel %vm1022_vm7, 1.0, %v6390_v59  ;;  %v973_v61 = vshll.u32 %v972_v14, 16 }
 0x2ef   : > { %v989_v20 = vadd.s32 %v988_v13, %v986_v16  ;;  %v1139_v19 = vsel %vm859_vm2, %v4614_v17, -inf }
 0x2f0   : > { %1140 = vmax.xlane.f32.xlu1 %v1139_v19  ;;  %v970_v22 = vpop.xlane.xlu1 %969 }
 0x2f1   : > { %v971_v25 = vcvt.f32.s32 %v970_v22  ;;  %vm1025_vm8 = vcmp.eq.s32.totalorder %v4560_v12, %v989_v20 }
 0x2f2   : > { %v4634_v30 = vsel %vm1025_vm8, -1e+30, %v4543_v0  ;;  %v4639_v28 = vsel %vm1025_vm8, 1.0, %v6390_v59 }
 0x2f3   : > { %v974_v26 = vadd.s32 %v973_v61, %v971_v25  ;;  %v1148_v36 = vsel %vm859_vm2, %v4634_v30, -inf }
 0x2f4   : > { %1143 = vmax.xlane.f32.xlu1 %v1142_v27  ;;  %v1000_v29 = vpop.xlane.xlu1 %999 }
 0x2f5   : > { %v1001_v58 = vcvt.f32.s32 %v1000_v29  ;;  %vm1024_vm9 = vcmp.eq.s32.totalorder %v4560_v12, %v974_v26 }
 0x2f6   : > { %v4642_v34 = vsel %vm1024_vm9, 1.0, %v6390_v59  ;;  %v4649_v32 = vsel %vm1024_vm9, -1e+30, %v4547_v5 }
 0x2f7   : > { %v1004_v35 = vadd.s32 %v1003_v31, %v1001_v58  ;;  %v1145_v41 = vsel %vm859_vm2, %v4649_v32, -inf }
 0x2f8   : > { %1149 = vmax.xlane.f32.xlu1 %v1148_v36  ;;  %v1015_v37 = vpop.xlane.xlu1 %1014 }
 0x2f9   : > { %v1016_v39 = vcvt.f32.s32 %v1015_v37  ;;  %vm1026_vm10 = vcmp.eq.s32.totalorder %v4560_v12, %v1004_v35 }
 0x2fa   : > { %v4655_v42 = vsel %vm1026_vm10, -1e+30, %v4549_v7  ;;  %v4659_v43 = vsel %vm1026_vm10, 1.0, %v6390_v59 }
 0x2fb   : > { %v1019_v40 = vadd.s32 %v1018_v38, %v1016_v39  ;;  %v1151_v49 = vsel %vm859_vm2, %v4655_v42, -inf }
 0x2fc   : > { %1146 = vmax.xlane.f32.xlu1 %v1145_v41 }
 0x2fd   : > { %vm1027_vm11 = vcmp.eq.s32.totalorder %v4560_v12, %v1019_v40 }
 0x2fe   : > { %v4662_v5 = vsel %vm1027_vm11, -1e+30, %v4555_v10  ;;  %v4665_v44 = vsel %vm1027_vm11, 1.0, %v6390_v59 }
 0x2ff   : > { %v1154_v50 = vsel %vm859_vm2, %v4662_v5, -inf }
 0x300   : > { %1152 = vmax.xlane.f32.xlu1 %v1151_v49  ;;  %1155 = vmax.xlane.f32.xlu0 %v1154_v50 }
 0x371   : > { %v1138_v51 = vpop.xlane.xlu1 %1137 }
 0x372   : > { %vm1158_vm12 = vcmp.ge.f32.partialorder %v4597_v48, %v1138_v51  ;;  %v6384_v51 = vmov 0  }
 0x373   : > { %v1166_v10 = vsel %vm1158_vm12, %v4560_v12, 64  ;;  %4339 = vset.pattern.permute.xlu1 %v6384_v51 }
 0x374   : > { %v1188_v53 = vsel %vm859_vm2, %v1166_v10, 2147483647  ;;  %v6386_v10 = vmov 2  }
 0x375   : > { %v1135_v54 = vpop.xlane.xlu1 %1134  ;;  %v1190_v56 = vshra.s32 %v1188_v53, 16  ;;  %4342 = vset.pattern.permute.xlu0 %v6386_v10 }
 0x376   : > { %vm1157_vm13 = vcmp.ge.f32.partialorder %v4603_v57, %v1135_v54  ;;  %v1189_v54 = vand.u32 65535, %v1188_v53 }
 0x377   : > { %v1165_v60 = vsel %vm1157_vm13, %v4560_v12, 64  ;;  %v1192_v52 = vcvt.s32.f32 %v1190_v56 }
 0x378   : > { %v1173_v62 = vsel %vm859_vm2, %v1165_v60, 2147483647  ;;  %v1191_v60 = vcvt.s32.f32 %v1189_v54 }
 0x379   : > { %1193 = vmin.xlane.f32.xlu0 %v1192_v52  ;;  %v1175_v63 = vshra.s32 %v1173_v62, 16 }
 0x37b   : > { %v1177_v3 = vcvt.s32.f32 %v1175_v63  ;;  %v1174_v63 = vand.u32 65535, %v1173_v62 }
 0x37d   : > { %1178 = vmin.xlane.f32.xlu1 %v1177_v3  ;;  %v1141_v4 = vpop.xlane.xlu1 %1140 }
 0x37e   : > { %vm1159_vm14 = vcmp.ge.f32.partialorder %v4614_v17, %v1141_v4 }
 0x37f   : > { %v1167_v6 = vsel %vm1159_vm14, %v4560_v12, 64 }
 0x380   : > { %v1203_v8 = vsel %vm859_vm2, %v1167_v6, 2147483647 }
 0x381   : > { %v1144_v9 = vpop.xlane.xlu1 %1143  ;;  %v1205_v11 = vshra.s32 %v1203_v8, 16 }
 0x382   : > { %vm1160_vm15 = vcmp.ge.f32.partialorder %v4627_v23, %v1144_v9  ;;  %v1176_v9 = vcvt.s32.f32 %v1174_v63 }
 0x383   : > { %v1168_v55 = vsel %vm1160_vm15, %v4560_v12, 64  ;;  %v1207_v13 = vcvt.s32.f32 %v1205_v11 }
 0x384   : > { %v1218_v14 = vsel %vm859_vm2, %v1168_v55, 2147483647  ;;  %v1204_v55 = vand.u32 65535, %v1203_v8 }
 0x385   : > { %1208 = vmin.xlane.f32.xlu1 %v1207_v13  ;;  %v1150_v16 = vpop.xlane.xlu1 %1149  ;;  %v1220_v20 = vshra.s32 %v1218_v14, 16 }
 0x386   : > { %vm1162_vm0 = vcmp.ge.f32.partialorder %v4634_v30, %v1150_v16 }
 0x387   : > { %v1170_v19 = vsel %vm1162_vm0, %v4560_v12, 64  ;;  %v1222_v22 = vcvt.s32.f32 %v1220_v20  ;;  %v1206_v20 = vcvt.s32.f32 %v1204_v55 }
 0x388   : > { %v1248_v61 = vsel %vm859_vm2, %v1170_v19, 2147483647  ;;  %v1219_v19 = vand.u32 65535, %v1218_v14 }
 0x389   : > { %1223 = vmin.xlane.f32.xlu0 %v1222_v22  ;;  %v1147_v24 = vpop.xlane.xlu1 %1146  ;;  %v1250_v25 = vshra.s32 %v1248_v61, 16 }
 0x38a   : > { %vm1161_vm1 = vcmp.ge.f32.partialorder %v4649_v32, %v1147_v24  ;;  %v1221_v62 = vcvt.s32.f32 %v1219_v19 }
 0x38b   : > { %v1169_v26 = vsel %vm1161_vm1, %v4560_v12, 64  ;;  %v1252_v27 = vcvt.s32.f32 %v1250_v25 }
 0x38c   : > { %v1233_v29 = vsel %vm859_vm2, %v1169_v26, 2147483647 }
 0x38d   : > { %v1156_v31 = vpop.xlane.xlu0 %1155  ;;  %1253 = vmin.xlane.f32.xlu0 %v1252_v27  ;;  %v1153_v33 = vpop.xlane.xlu1 %1152  ;;  %v1235_v58 = vshra.s32 %v1233_v29, 16  ;;  %v1234_v8 = vand.u32 65535, %v1233_v29 }
 0x38e   : > { %vm1164_vm3 = vcmp.ge.f32.partialorder %v4662_v5, %v1156_v31  ;;  %vm1163_vm4 = vcmp.ge.f32.partialorder %v4655_v42, %v1153_v33 }
 0x38f   : > { %v1172_v35 = vsel %vm1164_vm3, %v4560_v12, 64  ;;  %v1171_v36 = vsel %vm1163_vm4, %v4560_v12, 64  ;;  %v1237_v37 = vcvt.s32.f32 %v1235_v58 }
 0x390   : > { %v1278_v38 = vsel %vm859_vm2, %v1172_v35, 2147483647  ;;  %v4697_v39 = vsel %vm859_vm2, %v1171_v36, 2147483647 }
 0x391   : > { %1238 = vmin.xlane.f32.xlu1 %v1237_v37  ;;  %v1280_v40 = vshra.s32 %v1278_v38, 16  ;;  %v1265_v41 = vshra.s32 %v4697_v39, 16  ;;  %v1279_v33 = vand.u32 65535, %v1278_v38  ;;  %v1264_v36 = vand.u32 65535, %v4697_v39 }
 0x393   : > { %v1282_v49 = vcvt.s32.f32 %v1280_v40  ;;  %v1267_v50 = vcvt.s32.f32 %v1265_v41 }
 0x395   : > { %1283 = vmin.xlane.f32.xlu0 %v1282_v49  ;;  %1268 = vmin.xlane.f32.xlu1 %v1267_v50 }
 0x406   : > { %v1194_v56 = vpop.xlane.xlu0 %1193 }
 0x407   : > { %vm1195_vm5 = vcmp.eq.f32.partialorder %v1192_v52, %v1194_v56  ;;  %v1249_v52 = vand.u32 65535, %v1248_v61  ;;  %v1200_v40 = vcvt.f32.s32 %v1194_v56 }
 0x408   : > { %v1196_v4 = vsel %vm1195_vm5, %v1191_v60, inf }
 0x409   : > { %1197 = vmin.xlane.f32.xlu0 %v1196_v4  ;;  %v1251_v26 = vcvt.s32.f32 %v1249_v52 }
 0x40a   : > { %v1179_v6 = vpop.xlane.xlu1 %1178 }
 0x40b   : > { %vm1180_vm6 = vcmp.eq.f32.partialorder %v1177_v3, %v1179_v6  ;;  %v1185_v54 = vcvt.f32.s32 %v1179_v6 }
 0x40c   : > { %v1181_v11 = vsel %vm1180_vm6, %v1176_v9, inf }
 0x40d   : > { %1182 = vmin.xlane.f32.xlu1 %v1181_v11  ;;  %v1186_v4 = vshll.u32 %v1185_v54, 16 }
 0x412   : > { %v4702_v16 = vpop.xlane.xlu1 %1208 }
 0x413   : > { %vm1210_vm7 = vcmp.eq.f32.partialorder %v1207_v13, %v4702_v16  ;;  %v1236_v13 = vcvt.s32.f32 %v1234_v8  ;;  %v1215_v56 = vcvt.f32.s32 %v4702_v16 }
 0x414   : > { %v1211_v24 = vsel %vm1210_vm7, %v1206_v20, inf }
 0x415   : > { %1212 = vmin.xlane.f32.xlu1 %v1211_v24  ;;  %v1216_v16 = vshll.u32 %v1215_v56, 16 }
 0x416   : > { %v4705_v53 = vpop.xlane.xlu0 %1223 }
 0x417   : > { %vm1225_vm8 = vcmp.eq.f32.partialorder %v1222_v22, %v4705_v53  ;;  %v1281_v22 = vcvt.s32.f32 %v1279_v33  ;;  %v1230_v24 = vcvt.f32.s32 %v4705_v53 }
 0x418   : > { %v1226_v25 = vsel %vm1225_vm8, %v1221_v62, inf }
 0x419   : > { %1227 = vmin.xlane.f32.xlu0 %v1226_v25 }
 0x41a   : > { %v4708_v3 = vpop.xlane.xlu0 %1253 }
 0x41b   : > { %vm1255_vm9 = vcmp.eq.f32.partialorder %v1252_v27, %v4708_v3  ;;  %v6388_v27 = vmov 1  }
 0x41c   : > { %v1256_v31 = vsel %vm1255_vm9, %v1251_v26, inf  ;;  %v1231_v26 = vshll.u32 %v1230_v24, 16 }
 0x41d   : > { %1257 = vmin.xlane.f32.xlu0 %v1256_v31 }
 0x41e   : > { %v4711_v14 = vpop.xlane.xlu1 %1238 }
 0x41f   : > { %vm1240_vm10 = vcmp.eq.f32.partialorder %v1237_v37, %v4711_v14  ;;  %v1266_v37 = vcvt.s32.f32 %v1264_v36  ;;  %v1245_v53 = vcvt.f32.s32 %v4711_v14 }
 0x420   : > { %v1241_v58 = vsel %vm1240_vm10, %v1236_v13, inf }
 0x421   : > { %1242 = vmin.xlane.f32.xlu1 %v1241_v58 }
 0x422   : > { %v4714_v61 = vpop.xlane.xlu0 %1283  ;;  %v4722_v29 = vpop.xlane.xlu1 %1268 }
 0x423   : > { %vm1285_vm11 = vcmp.eq.f32.partialorder %v1282_v49, %v4714_v61  ;;  %vm1270_vm12 = vcmp.eq.f32.partialorder %v1267_v50, %v4722_v29  ;;  %v1201_v49 = vshll.u32 %v1200_v40, 16  ;;  %v575_v40 = vsub.s32 2, %v4521_v46 }
 0x424   : > { %v1286_v35 = vsel %vm1285_vm11, %v1281_v22, inf  ;;  %v1271_v38 = vsel %vm1270_vm12, %v1266_v37, inf }
 0x425   : > { %1287 = vmin.xlane.f32.xlu0 %v1286_v35 }
 0x432   : > { %439 = vperm.xlu1 %4339, %v4469_v1  }
 0x436   : > { %4340 = vset.pattern.permute.xlu1 %v6388_v27 }
 0x437   : > { %490 = vperm.xlu1 %4340, %v4469_v1  }
 0x43b   : > { %494 = vperm.xlu1 %4340, %v4472_v2  }
 0x43f   : > { %4341 = vset.pattern.permute.xlu1 %v6386_v10 }
 0x45f   : > { %1272 = vmin.xlane.f32.xlu1 %v1271_v38 }
 0x470   : > { %542 = vperm.xlu1 %4341, %v4469_v1  }
 0x474   : > { %4344 = vset.pattern.permute.xlu1 %v6384_v51 }
 0x496   : > { %v1198_v41 = vpop.xlane.xlu0 %1197 }
 0x497   : > { %v1199_v2 = vcvt.f32.s32 %v1198_v41  ;;  %v1246_v41 = vshll.u32 %v1245_v53, 16 }
 0x499   : > { %v1202_v60 = vadd.s32 %v1201_v49, %v1199_v2  ;;  %v1290_v49 = vcvt.f32.s32 %v4714_v61 }
 0x49a   : > { %v1183_v63 = vpop.xlane.xlu1 %1182 }
 0x49b   : > { %v1184_v9 = vcvt.f32.s32 %v1183_v63  ;;  %vm1294_vm13 = vcmp.eq.s32.totalorder %v4560_v12, %v1202_v60 }
 0x49c   : > { %v4730_v39 = vsel %vm1294_vm13, -1e+30, %v4597_v48  ;;  %v4737_v6 = vsel %vm1294_vm13, 1.0, %v6390_v59 }
 0x49d   : > { %v1187_v50 = vadd.s32 %v1186_v4, %v1184_v9  ;;  %v1417_v1 = vsel %vm859_vm2, %v4730_v39, -inf  ;;  %v1291_v4 = vshll.u32 %v1290_v49, 16 }
 0x49e   : > { %1418 = vmax.xlane.f32.xlu0 %v1417_v1 }
 0x49f   : > { %vm1293_vm14 = vcmp.eq.s32.totalorder %v4560_v12, %v1187_v50 }
 0x4a0   : > { %v4740_v11 = vsel %vm1293_vm14, -1e+30, %v4603_v57  ;;  %v4743_v55 = vsel %vm1293_vm14, 1.0, %v6390_v59  ;;  %v1260_v57 = vcvt.f32.s32 %v4708_v3 }
 0x4a1   : > { %v1414_v48 = vsel %vm859_vm2, %v4740_v11, -inf }
 0x4a2   : > { %1415 = vmax.xlane.f32.xlu1 %v1414_v48  ;;  %v1213_v19 = vpop.xlane.xlu1 %1212  ;;  %v1261_v22 = vshll.u32 %v1260_v57, 16 }
 0x4a3   : > { %v1214_v62 = vcvt.f32.s32 %v1213_v19 }
 0x4a5   : > { %v1217_v52 = vadd.s32 %v1216_v16, %v1214_v62 }
 0x4a6   : > { %v1228_v25 = vpop.xlane.xlu0 %1227 }
 0x4a7   : > { %v1229_v8 = vcvt.f32.s32 %v1228_v25  ;;  %vm1295_vm15 = vcmp.eq.s32.totalorder %v4560_v12, %v1217_v52  ;;  %v1275_v52 = vcvt.f32.s32 %v4722_v29 }
 0x4a8   : > { %v4753_v31 = vsel %vm1295_vm15, -1e+30, %v4614_v17  ;;  %v4760_v3 = vsel %vm1295_vm15, 1.0, %v6390_v59 }
 0x4a9   : > { %v1232_v13 = vadd.s32 %v1231_v26, %v1229_v8  ;;  %v1420_v33 = vsel %vm859_vm2, %v4753_v31, -inf  ;;  %v1276_v26 = vshll.u32 %v1275_v52, 16 }
 0x4aa   : > { %v1258_v58 = vpop.xlane.xlu0 %1257  ;;  %1421 = vmax.xlane.f32.xlu1 %v1420_v33 }
 0x4ab   : > { %v1259_v35 = vcvt.f32.s32 %v1258_v58  ;;  %vm1296_vm0 = vcmp.eq.s32.totalorder %v4560_v12, %v1232_v13 }
 0x4ac   : > { %v4763_v36 = vsel %vm1296_vm0, 1.0, %v6390_v59  ;;  %v4766_v17 = vsel %vm1296_vm0, -1e+30, %v4627_v23 }
 0x4ad   : > { %v1262_v37 = vadd.s32 %v1261_v22, %v1259_v35  ;;  %v1423_v38 = vsel %vm859_vm2, %v4766_v17, -inf }
 0x4ae   : > { %1424 = vmax.xlane.f32.xlu0 %v1423_v38  ;;  %v1243_v14 = vpop.xlane.xlu1 %1242 }
 0x4af   : > { %v1244_v54 = vcvt.f32.s32 %v1243_v14  ;;  %vm1298_vm1 = vcmp.eq.s32.totalorder %v4560_v12, %v1262_v37 }
 0x4b0   : > { %v4775_v2 = vsel %vm1298_vm1, -1e+30, %v4634_v30  ;;  %v4781_v50 = vsel %vm1298_vm1, 1.0, %v6390_v59 }
 0x4b1   : > { %v1247_v23 = vadd.s32 %v1246_v41, %v1244_v54  ;;  %v1429_v60 = vsel %vm859_vm2, %v4775_v2, -inf }
 0x4b2   : > { %1430 = vmax.xlane.f32.xlu0 %v1429_v60  ;;  %v1288_v63 = vpop.xlane.xlu0 %1287  ;;  %v4799_v16 = vpop.permute.xlu1 %439 }
 0x4b3   : > { %v1289_v9 = vcvt.f32.s32 %v1288_v63  ;;  %vm1297_vm3 = vcmp.eq.s32.totalorder %v4560_v12, %v1247_v23 }
 0x4b4   : > { %v4784_v61 = vsel %vm1297_vm3, -1e+30, %v4649_v32  ;;  %v4787_v1 = vsel %vm1297_vm3, 1.0, %v6390_v59 }
 0x4b5   : > { %v1292_v30 = vadd.s32 %v1291_v4, %v1289_v9  ;;  %v1426_v56 = vsel %vm859_vm2, %v4784_v61, -inf }
 0x4b6   : > { %1427 = vmax.xlane.f32.xlu1 %v1426_v56  ;;  %v4801_v24 = vpop.permute.xlu1 %490 }
 0x4b7   : > { %vm1300_vm4 = vcmp.eq.s32.totalorder %v4560_v12, %v1292_v30 }
 0x4b8   : > { %v4795_v19 = vsel %vm1300_vm4, -1e+30, %v4662_v5  ;;  %v4808_v5 = vsel %vm1300_vm4, 1.0, %v6390_v59 }
 0x4b9   : > { %v1435_v32 = vsel %vm859_vm2, %v4795_v19, -inf }
 0x4ba   : > { %1436 = vmax.xlane.f32.xlu0 %v1435_v32  ;;  %v4803_v62 = vpop.permute.xlu1 %494 }
 0x4ec   : > { %v1273_v25 = vpop.xlane.xlu1 %1272 }
 0x4ed   : > { %v1274_v57 = vcvt.f32.s32 %v1273_v25 }
 0x4ef   : > { %v1277_v8 = vadd.s32 %v1276_v26, %v1274_v57 }
 0x4f0   : > { %v4820_v22 = vpop.permute.xlu1 %542 }
 0x4f1   : > { %vm1299_vm5 = vcmp.eq.s32.totalorder %v4560_v12, %v1277_v8 }
 0x4f2   : > { %v4811_v13 = vsel %vm1299_vm5, -1e+30, %v4655_v42  ;;  %v4814_v33 = vsel %vm1299_vm5, 1.0, %v6390_v59 }
 0x4f3   : > { %v1432_v58 = vsel %vm859_vm2, %v4811_v13, -inf }
 0x4f4   : > { %1433 = vmax.xlane.f32.xlu1 %v1432_v58 }
 0x52b   : > { %v1419_v53 = vpop.xlane.xlu0 %1418 }
 0x52c   : > { %vm1439_vm6 = vcmp.ge.f32.partialorder %v4730_v39, %v1419_v53 }
 0x52d   : > { %v1447_v35 = vsel %vm1439_vm6, %v4560_v12, 64 }
 0x52e   : > { %v4825_v42 = vsel %vm859_vm2, %v1447_v35, 2147483647 }
 0x52f   : > { %v1416_v37 = vpop.xlane.xlu1 %1415  ;;  %v1471_v38 = vshra.s32 %v4825_v42, 16 }
 0x530   : > { %vm1438_vm7 = vcmp.ge.f32.partialorder %v4740_v11, %v1416_v37  ;;  %v4357_v37 = vld [vmem:[%s4460_s26 + $0x8] sm:$0xff] }
 0x531   : > { %v1446_v14 = vsel %vm1438_vm7, %v4560_v12, 64  ;;  %v4830_v41 = vcvt.s32.f32 %v1471_v38  ;;  %v4358_v38 = vld [vmem:[%s4460_s26 + $0x10] sm:$0xff] }
 0x532   : > { %v4833_v49 = vsel %vm859_vm2, %v1446_v14, 2147483647  ;;  %v4359_v14 = vld [vmem:[%s4460_s26 + $0x18] sm:$0xff] }
 0x533   : > { %1474 = vmin.xlane.f32.xlu0 %v4830_v41  ;;  %v1456_v54 = vshra.s32 %v4833_v49, 16 }
 0x535   : > { %v4837_v23 = vcvt.s32.f32 %v1456_v54 }
 0x537   : > { %1459 = vmin.xlane.f32.xlu1 %v4837_v23  ;;  %v1422_v60 = vpop.xlane.xlu1 %1421 }
 0x538   : > { %vm1440_vm8 = vcmp.ge.f32.partialorder %v4753_v31, %v1422_v60 }
 0x539   : > { %v1448_v63 = vsel %vm1440_vm8, %v4560_v12, 64 }
 0x53a   : > { %v4843_v4 = vsel %vm859_vm2, %v1448_v63, 2147483647 }
 0x53b   : > { %v1425_v9 = vpop.xlane.xlu0 %1424  ;;  %v1486_v30 = vshra.s32 %v4843_v4, 16 }
 0x53c   : > { %vm1441_vm9 = vcmp.ge.f32.partialorder %v4766_v17, %v1425_v9 }
 0x53d   : > { %v1449_v56 = vsel %vm1441_vm9, %v4560_v12, 64  ;;  %v4848_v32 = vcvt.s32.f32 %v1486_v30 }
 0x53e   : > { %v4851_v52 = vsel %vm859_vm2, %v1449_v56, 2147483647 }
 0x53f   : > { %1489 = vmin.xlane.f32.xlu1 %v4848_v32  ;;  %v1501_v25 = vshra.s32 %v4851_v52, 16  ;;  %v1431_v54 = vpop.xlane.xlu0 %1430 }
 0x540   : > { %vm1443_vm11 = vcmp.ge.f32.partialorder %v4775_v2, %v1431_v54 }
 0x541   : > { %v4855_v26 = vcvt.s32.f32 %v1501_v25  ;;  %v1451_v63 = vsel %vm1443_vm11, %v4560_v12, 64 }
 0x542   : > { %v1529_v9 = vsel %vm859_vm2, %v1451_v63, 2147483647 }
 0x543   : > { %1504 = vmin.xlane.f32.xlu0 %v4855_v26  ;;  %v1428_v57 = vpop.xlane.xlu1 %1427  ;;  %v1531_v56 = vshra.s32 %v1529_v9, 16 }
 0x544   : > { %vm1442_vm10 = vcmp.ge.f32.partialorder %v4784_v61, %v1428_v57 }
 0x545   : > { %v1450_v8 = vsel %vm1442_vm10, %v4560_v12, 64  ;;  %v1533_v57 = vcvt.s32.f32 %v1531_v56 }
 0x546   : > { %v4861_v58 = vsel %vm859_vm2, %v1450_v8, 2147483647 }
 0x547   : > { %v1516_v53 = vshra.s32 %v4861_v58, 16  ;;  %v1437_v60 = vpop.xlane.xlu0 %1436 }
 0x548   : > { %vm1445_vm12 = vcmp.ge.f32.partialorder %v4795_v19, %v1437_v60 }
 0x549   : > { %v4864_v35 = vcvt.s32.f32 %v1516_v53  ;;  %v1453_v30 = vsel %vm1445_vm12, %v4560_v12, 64  ;;  %v4360_v53 = vld [vmem:[%s4460_s26 + $0x20] sm:$0xff] }
 0x54a   : > { %v4879_v25 = vsel %vm859_vm2, %v1453_v30, 2147483647 }
 0x54b   : > { %1519 = vmin.xlane.f32.xlu1 %v4864_v35  ;;  %v1561_v8 = vshra.s32 %v4879_v25, 16 }
 0x54d   : > { %v4884_v54 = vcvt.s32.f32 %v1561_v8  ;;  %v1470_v8 = vand.u32 65535, %v4825_v42  ;;  %v1455_v42 = vand.u32 65535, %v4833_v49 }
 0x54f   : > { %v1472_v29 = vcvt.s32.f32 %v1470_v8 }
 0x559   : > { %546 = vperm.xlu0 %4342, %v4357_v37  }
 0x55c   : > { %449 = vperm.xlu1 %4344, %v4358_v38  }
 0x55d   : > { %4343 = vset.pattern.permute.xlu0 %v6384_v51 }
 0x560   : > { %454 = vperm.xlu1 %4344, %v4359_v14  }
 0x564   : > { %4345 = vset.pattern.permute.xlu1 %v6388_v27 }
 0x565   : > { %498 = vperm.xlu1 %4345, %v4358_v38  }
 0x569   : > { %502 = vperm.xlu1 %4345, %v4359_v14  }
 0x56d   : > { %4346 = vset.pattern.permute.xlu1 %v6386_v10 }
 0x56e   : > { %550 = vperm.xlu1 %4346, %v4358_v38   ;;  %v4887_v38 = vld [vmem:[%s4460_s26 + $0x28] sm:$0xff] }
 0x572   : > { %554 = vperm.xlu1 %4346, %v4359_v14  }
 0x576   : > { %4347 = vset.pattern.permute.xlu1 %v6384_v51 }
 0x577   : > { %459 = vperm.xlu1 %4347, %v4360_v53  }
 0x578   : > { %1534 = vmin.xlane.f32.xlu0 %v1533_v57 }
 0x57b   : > { %464 = vperm.xlu1 %4347, %v4887_v38  }
 0x57c   : > { %1564 = vmin.xlane.f32.xlu0 %v4884_v54 }
 0x57f   : > { %4348 = vset.pattern.permute.xlu1 %v6388_v27 }
 0x580   : > { %506 = vperm.xlu1 %4348, %v4360_v53  }
 0x581   : > { %v1434_v14 = vpop.xlane.xlu1 %1433 }
 0x582   : > { %vm1444_vm13 = vcmp.ge.f32.partialorder %v4811_v13, %v1434_v14  ;;  %v1500_v14 = vand.u32 65535, %v4851_v52  ;;  %v1485_v52 = vand.u32 65535, %v4843_v4  ;;  %v1530_v4 = vand.u32 65535, %v1529_v9 }
 0x583   : > { %v1452_v60 = vsel %vm1444_vm13, %v4560_v12, 64 }
 0x584   : > { %4349 = vset.pattern.permute.xlu1 %v6386_v10  ;;  %v4896_v63 = vsel %vm859_vm2, %v1452_v60, 2147483647  ;;  %v1502_v48 = vcvt.s32.f32 %v1500_v14 }
 0x585   : > { %v1546_v30 = vshra.s32 %v4896_v63, 16 }
 0x587   : > { %v4899_v56 = vcvt.s32.f32 %v1546_v30 }
 0x592   : > { %444 = vperm.xlu0 %4343, %v4357_v37  }
 0x5a4   : > { %1549 = vmin.xlane.f32.xlu1 %v4899_v56 }
 0x5b5   : > { %558 = vperm.xlu1 %4349, %v4360_v53  }
 0x5c0   : > { %v4903_v45 = vpop.xlane.xlu0 %1474 }
 0x5c1   : > { %vm1476_vm14 = vcmp.eq.f32.partialorder %v4830_v41, %v4903_v45 }
 0x5c2   : > { %v1477_v37 = vsel %vm1476_vm14, %v1472_v29, inf  ;;  %v1457_v29 = vcvt.s32.f32 %v1455_v42 }
 0x5c3   : > { %1478 = vmin.xlane.f32.xlu0 %v1477_v37 }
 0x5c4   : > { %v4912_v30 = vpop.xlane.xlu1 %1459 }
 0x5c5   : > { %vm1461_vm0 = vcmp.eq.f32.partialorder %v4837_v23, %v4912_v30 }
 0x5c6   : > { %v1462_v8 = vsel %vm1461_vm0, %v1457_v29, inf  ;;  %v6385_v29 = vsub.s32 1, %v4521_v46 }
 0x5cc   : > { %v4917_v41 = vpop.xlane.xlu1 %1489 }
 0x5cd   : > { %vm1491_vm1 = vcmp.eq.f32.partialorder %v4848_v32, %v4917_v41  ;;  %v1532_v32 = vcvt.s32.f32 %v1530_v4 }
 0x5d0   : > { %v4908_v60 = vpop.xlane.xlu0 %1504 }
 0x5d1   : > { %vm1506_vm15 = vcmp.eq.f32.partialorder %v4855_v26, %v4908_v60  ;;  %v1487_v26 = vcvt.s32.f32 %v1485_v52  ;;  %v1560_v52 = vand.u32 65535, %v4879_v25 }
 0x5d2   : > { %v1507_v53 = vsel %vm1506_vm15, %v1502_v48, inf }
 0x5d3   : > { %1508 = vmin.xlane.f32.xlu0 %v1507_v53  ;;  %v1492_v37 = vsel %vm1491_vm1, %v1487_v26, inf  ;;  %v435_v26 = vld [vmem:[%s6372_s2] sm:$0x7]  ;;  %v1562_v25 = vcvt.s32.f32 %v1560_v52 }
 0x5d4   : > { %v4936_v9 = vrot.slane %v435_v26, %v4524_v47  ;;  %v4940_v20 = vrot.slane %v435_v26, %v6385_v29 }
 0x5d6   : > { %v525_v0 = vmul.f32 %v4940_v20, %v4801_v24  ;;  %v526_v24 = vmul.f32 %v4940_v20, %v4803_v62 }
 0x5d8   : > { %v4922_v48 = vpop.xlane.xlu1 %1519  ;;  %v547_v53 = vpop.permute.xlu0 %546 }
 0x5d9   : > { %1463 = vmin.xlane.f32.xlu1 %v1462_v8  ;;  %vm1521_vm5 = vcmp.eq.f32.partialorder %v4864_v35, %v4922_v48 }
 0x5dc   : > { %v450_v49 = vpop.permute.xlu1 %449 }
 0x5dd   : > { %1493 = vmin.xlane.f32.xlu1 %v1492_v37  ;;  %v483_v35 = vmul.f32 %v4936_v9, %v450_v49 }
 0x5e0   : > { %v455_v23 = vpop.permute.xlu1 %454 }
 0x5e4   : > { %v499_v14 = vpop.permute.xlu1 %498 }
 0x5e8   : > { %v503_v42 = vpop.permute.xlu1 %502 }
 0x5e9   : > { %v528_v21 = vmul.f32 %v4940_v20, %v503_v42 }
 0x5ed   : > { %v551_v37 = vpop.permute.xlu1 %550 }
 0x5ee   : > { %562 = vperm.xlu1 %4349, %v4887_v38  }
 0x5f1   : > { %v555_v29 = vpop.permute.xlu1 %554 }
 0x5f2   : > { %4351 = vset.pattern.permute.xlu1 %v6384_v51 }
 0x605   : > { %v4927_v8 = vpop.xlane.xlu0 %1534 }
 0x606   : > { %vm1536_vm3 = vcmp.eq.f32.partialorder %v1533_v57, %v4927_v8  ;;  %v1515_v57 = vand.u32 65535, %v4861_v58 }
 0x607   : > { %v1537_v51 = vsel %vm1536_vm3, %v1532_v32, inf  ;;  %v4947_v32 = vrot.slane %v435_v26, %v575_v40  ;;  %v484_v40 = vmul.f32 %v4936_v9, %v455_v23 }
 0x608   : > { %1538 = vmin.xlane.f32.xlu0 %v1537_v51  ;;  %v481_v51 = vmul.f32 %v4936_v9, %v4799_v16  ;;  %v1517_v52 = vcvt.s32.f32 %v1515_v57 }
 0x609   : > { %v4942_v4 = vpop.xlane.xlu0 %1564  ;;  %v580_v58 = vmul.f32 %v4947_v32, %v555_v29  ;;  %v578_v26 = vmul.f32 %v4947_v32, %v547_v53  ;;  %v536_v57 = vadd.f32 %v528_v21, %v484_v40  ;;  %v579_v10 = vmul.f32 %v4947_v32, %v551_v37 }
 0x60a   : > { %vm1566_vm4 = vcmp.eq.f32.partialorder %v4884_v54, %v4942_v4  ;;  %v577_v54 = vmul.f32 %v4947_v32, %v4820_v22  ;;  %v533_v16 = vadd.f32 %v525_v0, %v481_v51  ;;  %v4970_v0 = vld [vmem:[%s6373_s3] ss:$0 sm:$0xff] }
 0x60b   : > { %v1567_v7 = vsel %vm1566_vm4, %v1562_v25, inf  ;;  %v1522_v25 = vsel %vm1521_vm5, %v1517_v52, inf  ;;  %v588_v27 = vadd.f32 %v580_v58, %v536_v57 }
 0x60c   : > { %1568 = vmin.xlane.f32.xlu0 %v1567_v7  ;;  %v527_v7 = vmul.f32 %v4940_v20, %v499_v14  ;;  %v585_v23 = vadd.f32 %v577_v54, %v533_v16 }
 0x60d   : > { %v4976_v21 = vadd.f32 %v4970_v0, %v588_v27  ;;  %v4995_v27 = vpop.permute.xlu1 %459 }
 0x60e   : > { %v535_v14 = vadd.f32 %v527_v7, %v483_v35  ;;  %v4973_v51 = vadd.f32 %v4970_v0, %v585_v23  ;;  %v1545_v7 = vand.u32 65535, %v4896_v63 }
 0x610   : > { %v587_v62 = vadd.f32 %v579_v10, %v535_v14  ;;  %v1547_v16 = vcvt.s32.f32 %v1545_v7 }
 0x611   : > { %v445_v42 = vpop.permute.xlu0 %444  ;;  %v4998_v54 = vpop.permute.xlu1 %464 }
 0x612   : > { %v482_v22 = vmul.f32 %v4936_v9, %v445_v42  ;;  %1523 = vmin.xlane.f32.xlu1 %v1522_v25  ;;  %v4982_v37 = vadd.f32 %v4970_v0, %v587_v62  ;;  %v1466_v62 = vcvt.f32.s32 %v4912_v30 }
 0x614   : > { %v534_v29 = vadd.f32 %v526_v24, %v482_v22  ;;  %v4990_v10 = vpack.c.bf16 %v4976_v21, %v4982_v37 }
 0x615   : > { %v5000_v40 = vpop.permute.xlu1 %506 }
 0x616   : > { %v586_v53 = vadd.f32 %v578_v26, %v534_v29  ;;  %v1481_v26 = vcvt.f32.s32 %v4903_v45 }
 0x618   : > { %v4979_v49 = vadd.f32 %v4970_v0, %v586_v53  ;;  %v1482_v25 = vshll.u32 %v1481_v26, 16 }
 0x61a   : > { %v4986_v52 = vpack.c.bf16 %v4979_v49, %v4973_v51 }
 0x61c   : > { %4116 = vmatprep.subr.bf16.mxu1 %v4986_v52 }
 0x61d   : > { %4117 = vmatpush3.bf16.msra.mxu1 %v4986_v52 }
 0x61e   : > { %4118 = vmatprep.subr.bf16.mxu1 %v4990_v10 }
 0x621   : > { %4119 = vmatpush3.bf16.msra.mxu1 %v4990_v10 }
 0x631   : > { %v5003_v58 = vpop.xlane.xlu1 %1549 }
 0x632   : > { %vm1551_vm6 = vcmp.eq.f32.partialorder %v4899_v56, %v5003_v58  ;;  %v1511_v56 = vcvt.f32.s32 %v4908_v60 }
 0x633   : > { %v1552_v24 = vsel %vm1551_vm6, %v1547_v16, inf  ;;  %v1467_v16 = vshll.u32 %v1466_v62, 16 }
 0x634   : > { %1553 = vmin.xlane.f32.xlu1 %v1552_v24  ;;  %v1512_v14 = vshll.u32 %v1511_v56, 16  ;;  %v1496_v24 = vcvt.f32.s32 %v4917_v41 }
 0x635   : > { %v5017_v29 = vpop.permute.xlu1 %558 }
 0x636   : > { %v1497_v30 = vshll.u32 %v1496_v24, 16  ;;  %v1541_v24 = vcvt.f32.s32 %v4927_v8  ;;  %v1526_v8 = vcvt.f32.s32 %v4922_v48 }
 0x650   : > { %v1479_v42 = vpop.xlane.xlu0 %1478 }
 0x651   : > { %v1480_v35 = vcvt.f32.s32 %v1479_v42 }
 0x653   : > { %v1483_v57 = vadd.s32 %v1482_v25, %v1480_v35 }
 0x655   : > { %vm1575_vm7 = vcmp.eq.s32.totalorder %v4560_v12, %v1483_v57 }
 0x656   : > { %v5012_v63 = vsel %vm1575_vm7, -1e+30, %v4730_v39 }
 0x657   : > { %v1698_v22 = vsel %vm859_vm2, %v5012_v63, -inf }
 0x658   : > { %1699 = vmax.xlane.f32.xlu0 %v1698_v22 }
 0x660   : > { %v1509_v23 = vpop.xlane.xlu0 %1508 }
 0x661   : > { %v1510_v45 = vcvt.f32.s32 %v1509_v23 }
 0x663   : > { %v1513_v53 = vadd.s32 %v1512_v14, %v1510_v45 }
 0x665   : > { %vm1577_vm8 = vcmp.eq.s32.totalorder %v4560_v12, %v1513_v53  ;;  %v6402_v53 = vmov 1  }
 0x666   : > { %v1464_v7 = vpop.xlane.xlu1 %1463  ;;  %v5024_v39 = vsel %vm1577_vm8, -1e+30, %v4766_v17  ;;  %v5033_v17 = vsel %vm1575_vm7, 1.0, %v6390_v59  ;;  %v5049_v57 = vsel %vm1577_vm8, 1.0, %v6390_v59 }
 0x667   : > { %v1465_v60 = vcvt.f32.s32 %v1464_v7  ;;  %v1704_v26 = vsel %vm859_vm2, %v5024_v39, -inf }
 0x668   : > { %1705 = vmax.xlane.f32.xlu0 %v1704_v26  ;;  %v1571_v26 = vcvt.f32.s32 %v4942_v4 }
 0x669   : > { %v1468_v42 = vadd.s32 %v1467_v16, %v1465_v60  ;;  %v5062_v16 = vld [vmem:[%s4460_s26 + $0x30] sm:$0xff]  ;;  %v1542_v60 = vshll.u32 %v1541_v24, 16 }
 0x66a   : > { %v1494_v25 = vpop.xlane.xlu1 %1493 }
 0x66b   : > { %v1495_v35 = vcvt.f32.s32 %v1494_v25  ;;  %vm1574_vm9 = vcmp.eq.s32.totalorder %v4560_v12, %v1468_v42 }
 0x66c   : > { %v5036_v22 = vsel %vm1574_vm9, -1e+30, %v4740_v11  ;;  %v5039_v41 = vsel %vm1574_vm9, 1.0, %v6390_v59 }
 0x66d   : > { %v1498_v56 = vadd.s32 %v1497_v30, %v1495_v35  ;;  %v1695_v23 = vsel %vm859_vm2, %v5036_v22, -inf  ;;  %v1572_v35 = vshll.u32 %v1571_v26, 16 }
 0x66e   : > { %1696 = vmax.xlane.f32.xlu1 %v1695_v23  ;;  %v5069_v23 = vpop.permute.xlu1 %562 }
 0x66f   : > { %vm1576_vm10 = vcmp.eq.s32.totalorder %v4560_v12, %v1498_v56 }
 0x670   : > { %v5052_v11 = vsel %vm1576_vm10, -1e+30, %v4753_v31  ;;  %v5055_v45 = vsel %vm1576_vm10, 1.0, %v6390_v59 }
 0x671   : > { %v1701_v62 = vsel %vm859_vm2, %v5052_v11, -inf }
 0x672   : > { %1702 = vmax.xlane.f32.xlu1 %v1701_v62 }
 0x67e   : > { %469 = vperm.xlu0 %4343, %v5062_v16  }
 0x682   : > { %4350 = vset.pattern.permute.xlu0 %v6402_v53 }
 0x695   : > { %v1539_v31 = vpop.xlane.xlu0 %1538 }
 0x696   : > { %v1540_v42 = vcvt.f32.s32 %v1539_v31 }
 0x698   : > { %v1543_v25 = vadd.s32 %v1542_v60, %v1540_v42  ;;  %v1527_v60 = vshll.u32 %v1526_v8, 16  ;;  %v5105_v8 = vld [vmem:[%s4460_s26 + $0x38] sm:$0xff]  ;;  %s4379_s26 = smov 112  }
 0x699   : > { %v1569_v30 = vpop.xlane.xlu0 %1568 }
 0x69a   : > { %v1570_v56 = vcvt.f32.s32 %v1569_v30  ;;  %vm1579_vm11 = vcmp.eq.s32.totalorder %v4560_v12, %v1543_v25 }
 0x69b   : > { %v5074_v62 = vsel %vm1579_vm11, -1e+30, %v4775_v2  ;;  %v5091_v42 = vsel %vm1579_vm11, 1.0, %v6390_v59 }
 0x69c   : > { %v1573_v7 = vadd.s32 %v1572_v35, %v1570_v56  ;;  %v1710_v4 = vsel %vm859_vm2, %v5074_v62, -inf }
 0x69d   : > { %1711 = vmax.xlane.f32.xlu0 %v1710_v4  ;;  %v6403_v4 = vmov 2  }
 0x69e   : > { %vm1581_vm12 = vcmp.eq.s32.totalorder %v4560_v12, %v1573_v7 }
 0x69f   : > { %v1524_v24 = vpop.xlane.xlu1 %1523  ;;  %v5083_v31 = vsel %vm1581_vm12, -1e+30, %v4795_v19 }
 0x6a0   : > { %v1525_v26 = vcvt.f32.s32 %v1524_v24  ;;  %v1716_v2 = vsel %vm859_vm2, %v5083_v31, -inf }
 0x6a1   : > { %1717 = vmax.xlane.f32.xlu0 %v1716_v2 }
 0x6a2   : > { %v1528_v48 = vadd.s32 %v1527_v60, %v1525_v26 }
 0x6a4   : > { %vm1578_vm13 = vcmp.eq.s32.totalorder %v4560_v12, %v1528_v48 }
 0x6a5   : > { %v5094_v30 = vsel %vm1578_vm13, -1e+30, %v4784_v61  ;;  %v5097_v19 = vsel %vm1578_vm13, 1.0, %v6390_v59  ;;  %v1556_v61 = vcvt.f32.s32 %v5003_v58 }
 0x6a6   : > { %v1707_v35 = vsel %vm859_vm2, %v5094_v30, -inf }
 0x6a7   : > { %1708 = vmax.xlane.f32.xlu1 %v1707_v35  ;;  %v1557_v24 = vshll.u32 %v1556_v61, 16 }
 0x6b7   : > { %510 = vperm.xlu0 %4350, %v4887_v38   ;;  %v5116_v38 = vsel %vm1581_vm12, 1.0, %v6390_v59 }
 0x6b8   : > { %474 = vperm.xlu1 %4351, %v5105_v8   ;;  %6404 = vst [vmem:[#allocation4_spill] sm:$0xff] %v5116_v38 }
 0x6bc   : > { %4352 = vset.pattern.permute.xlu1 %v6402_v53 }
 0x6bd   : > { %514 = vperm.xlu1 %4352, %v5062_v16  }
 0x6c1   : > { %v1554_v25 = vpop.xlane.xlu1 %1553  ;;  %4353 = vset.pattern.permute.xlu1 %v6403_v4 }
 0x6c2   : > { %v1555_v60 = vcvt.f32.s32 %v1554_v25 }
 0x6c4   : > { %v1558_v26 = vadd.s32 %v1557_v24, %v1555_v60 }
 0x6c6   : > { %vm1580_vm14 = vcmp.eq.s32.totalorder %v4560_v12, %v1558_v26 }
 0x6c7   : > { %v5119_v2 = vsel %vm1580_vm14, 1.0, %v6390_v59  ;;  %v5124_v58 = vsel %vm1580_vm14, -1e+30, %v4811_v13 }
 0x6c8   : > { %6405 = vst [vmem:[#allocation5_spill] sm:$0xff] %v5119_v2  ;;  %v1713_v48 = vsel %vm859_vm2, %v5124_v58, -inf }
 0x6e1   : > { %1714 = vmax.xlane.f32.xlu1 %v1713_v48 }
 0x6e5   : > { %v1700_v35 = vpop.xlane.xlu0 %1699 }
 0x6e6   : > { %vm1720_vm15 = vcmp.ge.f32.partialorder %v5012_v63, %v1700_v35 }
 0x6e7   : > { %v1728_v7 = vsel %vm1720_vm15, %v4560_v12, 64 }
 0x6e8   : > { %v5131_v61 = vsel %vm859_vm2, %v1728_v7, 2147483647 }
 0x6e9   : > { %v1752_v25 = vshra.s32 %v5131_v61, 16 }
 0x6eb   : > { %v5134_v24 = vcvt.s32.f32 %v1752_v25 }
 0x6ed   : > { %1755 = vmin.xlane.f32.xlu0 %v5134_v24 }
 0x6f5   : > { %v1706_v13 = vpop.xlane.xlu0 %1705 }
 0x6f6   : > { %vm1722_vm0 = vcmp.ge.f32.partialorder %v5024_v39, %v1706_v13 }
 0x6f7   : > { %v1730_v60 = vsel %vm1722_vm0, %v4560_v12, 64 }
 0x6f8   : > { %v5140_v26 = vsel %vm859_vm2, %v1730_v60, 2147483647 }
 0x6f9   : > { %v1782_v63 = vshra.s32 %v5140_v26, 16 }
 0x6fb   : > { %v1697_v48 = vpop.xlane.xlu1 %1696  ;;  %v5143_v35 = vcvt.s32.f32 %v1782_v63 }
 0x6fc   : > { %vm1719_vm1 = vcmp.ge.f32.partialorder %v5036_v22, %v1697_v48 }
 0x6fd   : > { %v1727_v7 = vsel %vm1719_vm1, %v4560_v12, 64  ;;  %1785 = vmin.xlane.f32.xlu0 %v5143_v35 }
 0x6fe   : > { %v5149_v25 = vsel %vm859_vm2, %v1727_v7, 2147483647  ;;  %v5165_v7 = vpop.permute.xlu0 %469 }
 0x6ff   : > { %v1703_v39 = vpop.xlane.xlu1 %1702  ;;  %v1737_v13 = vshra.s32 %v5149_v25, 16 }
 0x700   : > { %vm1721_vm3 = vcmp.ge.f32.partialorder %v5052_v11, %v1703_v39 }
 0x701   : > { %v1729_v60 = vsel %vm1721_vm3, %v4560_v12, 64  ;;  %v5154_v59 = vcvt.s32.f32 %v1737_v13 }
 0x702   : > { %v5157_v63 = vsel %vm859_vm2, %v1729_v60, 2147483647 }
 0x703   : > { %1740 = vmin.xlane.f32.xlu1 %v5154_v59  ;;  %v1767_v22 = vshra.s32 %v5157_v63, 16 }
 0x705   : > { %v5161_v48 = vcvt.s32.f32 %v1767_v22 }
 0x707   : > { %1770 = vmin.xlane.f32.xlu1 %v5161_v48 }
 0x718   : > { %566 = vperm.xlu1 %4353, %v5062_v16   ;;  %v529_v16 = vmul.f32 %v4940_v20, %v5000_v40 }
 0x72a   : > { %v1712_v11 = vpop.xlane.xlu0 %1711 }
 0x72b   : > { %vm1724_vm4 = vcmp.ge.f32.partialorder %v5074_v62, %v1712_v11  ;;  %v485_v11 = vmul.f32 %v4936_v9, %v4995_v27 }
 0x72c   : > { %v1732_v39 = vsel %vm1724_vm4, %v4560_v12, 64 }
 0x72d   : > { %v5170_v13 = vsel %vm859_vm2, %v1732_v39, 2147483647  ;;  %v581_v39 = vmul.f32 %v4947_v32, %v5017_v29  ;;  %v537_v14 = vadd.f32 %v529_v16, %v485_v11  ;;  %v582_v29 = vmul.f32 %v4947_v32, %v5069_v23 }
 0x72e   : > { %v1718_v60 = vpop.xlane.xlu0 %1717  ;;  %v1812_v53 = vshra.s32 %v5170_v13, 16 }
 0x72f   : > { %vm1726_vm5 = vcmp.ge.f32.partialorder %v5083_v31, %v1718_v60  ;;  %v589_v2 = vadd.f32 %v581_v39, %v537_v14 }
 0x730   : > { %v5173_v56 = vcvt.s32.f32 %v1812_v53  ;;  %v1734_v22 = vsel %vm1726_vm5, %v4560_v12, 64  ;;  %v486_v53 = vmul.f32 %v4936_v9, %v4998_v54 }
 0x731   : > { %v5189_v40 = vsel %vm859_vm2, %v1734_v22, 2147483647  ;;  %v5197_v16 = vadd.f32 %v4970_v0, %v589_v2 }
 0x732   : > { %1815 = vmin.xlane.f32.xlu0 %v5173_v56  ;;  %v1842_v54 = vshra.s32 %v5189_v40, 16 }
 0x734   : > { %v1709_v62 = vpop.xlane.xlu1 %1708  ;;  %v1844_v11 = vcvt.s32.f32 %v1842_v54 }
 0x735   : > { %vm1723_vm6 = vcmp.ge.f32.partialorder %v5094_v30, %v1709_v62 }
 0x736   : > { %v1731_v31 = vsel %vm1723_vm6, %v4560_v12, 64  ;;  %v511_v60 = vpop.permute.xlu0 %510 }
 0x737   : > { %v1795_v46 = vsel %vm859_vm2, %v1731_v31, 2147483647  ;;  %v530_v47 = vmul.f32 %v4940_v20, %v511_v60  ;;  %v1736_v60 = vand.u32 65535, %v5149_v25 }
 0x738   : > { %v1797_v27 = vshra.s32 %v1795_v46, 16 }
 0x739   : > { %v538_v30 = vadd.f32 %v530_v47, %v486_v53  ;;  %v5210_v47 = vpop.permute.xlu1 %474 }
 0x73a   : > { %v1799_v62 = vcvt.s32.f32 %v1797_v27 }
 0x73b   : > { %v590_v38 = vadd.f32 %v582_v29, %v538_v30  ;;  %v1738_v29 = vcvt.s32.f32 %v1736_v60 }
 0x73c   : > { %1800 = vmin.xlane.f32.xlu1 %v1799_v62 }
 0x73d   : > { %v5200_v22 = vadd.f32 %v4970_v0, %v590_v38  ;;  %v515_v14 = vpop.permute.xlu1 %514 }
 0x73f   : > { %v5204_v31 = vpack.c.bf16 %v5200_v22, %v5197_v16 }
 0x740   : > { %1845 = vmin.xlane.f32.xlu1 %v1844_v11 }
 0x741   : > { %4120 = vmatprep.subr.bf16.mxu1 %v5204_v31 }
 0x742   : > { %4121 = vmatpush3.bf16.msra.mxu1 %v5204_v31 }
 0x748   : > { %518 = vperm.xlu0 %4350, %v5105_v8  }
 0x74c   : > { %4354 = vset.pattern.permute.xlu0 %v6403_v4 }
 0x76e   : > { %v1715_v23 = vpop.xlane.xlu1 %1714 }
 0x76f   : > { %vm1725_vm7 = vcmp.ge.f32.partialorder %v5124_v58, %v1715_v23  ;;  %v1766_v58 = vand.u32 65535, %v5157_v63 }
 0x770   : > { %v1733_v38 = vsel %vm1725_vm7, %v4560_v12, 64 }
 0x771   : > { %v1825_v2 = vsel %vm859_vm2, %v1733_v38, 2147483647  ;;  %v1768_v38 = vcvt.s32.f32 %v1766_v58 }
 0x772   : > { %v1827_v39 = vshra.s32 %v1825_v2, 16 }
 0x774   : > { %v5215_v53 = vcvt.s32.f32 %v1827_v39 }
 0x776   : > { %1830 = vmin.xlane.f32.xlu1 %v5215_v53 }
 0x77a   : > { %v5220_v4 = vpop.xlane.xlu0 %1755 }
 0x77b   : > { %vm1757_vm11 = vcmp.eq.f32.partialorder %v5134_v24, %v5220_v4  ;;  %v1841_v24 = vand.u32 65535, %v5189_v40 }
 0x787   : > { %570 = vperm.xlu1 %4353, %v5105_v8   ;;  %v1781_v8 = vand.u32 65535, %v5140_v26  ;;  %v1811_v26 = vand.u32 65535, %v5170_v13 }
 0x789   : > { %v1783_v63 = vcvt.s32.f32 %v1781_v8 }
 0x78a   : > { %v5227_v54 = vpop.xlane.xlu0 %1785 }
 0x78b   : > { %vm1787_vm10 = vcmp.eq.f32.partialorder %v5143_v35, %v5227_v54 }
 0x78c   : > { %v1788_v39 = vsel %vm1787_vm10, %v1783_v63, inf  ;;  %v1843_v63 = vcvt.s32.f32 %v1841_v24 }
 0x790   : > { %v5222_v27 = vpop.xlane.xlu1 %1740 }
 0x791   : > { %vm1742_vm8 = vcmp.eq.f32.partialorder %v5154_v59, %v5222_v27  ;;  %v1751_v59 = vand.u32 65535, %v5131_v61 }
 0x792   : > { %v1743_v30 = vsel %vm1742_vm8, %v1738_v29, inf }
 0x793   : > { %1744 = vmin.xlane.f32.xlu0 %v1743_v30  ;;  %v1753_v60 = vcvt.s32.f32 %v1751_v59 }
 0x794   : > { %v5229_v23 = vpop.xlane.xlu1 %1770 }
 0x795   : > { %vm1772_vm9 = vcmp.eq.f32.partialorder %v5161_v48, %v5229_v23  ;;  %v1758_v29 = vsel %vm1757_vm11, %v1753_v60, inf  ;;  %v1813_v48 = vcvt.s32.f32 %v1811_v26 }
 0x796   : > { %v1773_v25 = vsel %vm1772_vm9, %v1768_v38, inf  ;;  %v1796_v38 = vand.u32 65535, %v1795_v46  ;;  %v487_v46 = vmul.f32 %v4936_v9, %v5165_v7 }
 0x797   : > { %1774 = vmin.xlane.f32.xlu0 %v1773_v25 }
 0x798   : > { %v567_v30 = vpop.permute.xlu1 %566  ;;  %v1798_v61 = vcvt.s32.f32 %v1796_v38 }
 0x799   : > { %v583_v59 = vmul.f32 %v4947_v32, %v567_v30 }
 0x79b   : > { %1789 = vmin.xlane.f32.xlu0 %v1788_v39 }
 0x7ab   : > { %1759 = vmin.xlane.f32.xlu1 %v1758_v29 }
 0x7bf   : > { %v5240_v58 = vpop.xlane.xlu0 %1815 }
 0x7c0   : > { %vm1817_vm12 = vcmp.eq.f32.partialorder %v5173_v56, %v5240_v58  ;;  %v531_v56 = vmul.f32 %v4940_v20, %v515_v14 }
 0x7c1   : > { %v1818_v35 = vsel %vm1817_vm12, %v1813_v48, inf }
 0x7c2   : > { %1819 = vmin.xlane.f32.xlu0 %v1818_v35  ;;  %v539_v60 = vadd.f32 %v531_v56, %v487_v46  ;;  %v488_v35 = vmul.f32 %v4936_v9, %v5210_v47  ;;  %v6407_v9 = vpack.c.bf16 %v4639_v28, %v4642_v34  ;;  %v6410_v28 = vpack.c.bf16 %v4763_v36, %v4760_v3 }
 0x7c3   : > { %v1747_v3 = vcvt.f32.s32 %v5222_v27  ;;  %v6419_v56 = vmov 0.0  }
 0x7c4   : > { %v591_v40 = vadd.f32 %v583_v59, %v539_v60 }
 0x7c7   : > { %v519_v14 = vpop.permute.xlu0 %518 }
 0x7c8   : > { %v532_v26 = vmul.f32 %v4940_v20, %v519_v14  ;;  %v6406_v20 = vpack.c.bf16 %v4620_v18, %v4617_v15  ;;  %v6408_v15 = vpack.c.bf16 %v4665_v44, %v4659_v43  ;;  %v6409_v18 = vpack.c.bf16 %v4737_v6, %v4743_v55 }
 0x7c9   : > { %v5244_v8 = vpop.xlane.xlu1 %1800  ;;  %v6411_v43 = vpack.c.bf16 %v4781_v50, %v4787_v1  ;;  %v6412_v6 = vpack.c.bf16 %v4808_v5, %v4814_v33  ;;  %v6413_v55 = vpack.c.bf16 %v5033_v17, %v5039_v41  ;;  %v1792_v50 = vcvt.f32.s32 %v5227_v54 }
 0x7ca   : > { %vm1802_vm13 = vcmp.eq.f32.partialorder %v1799_v62, %v5244_v8  ;;  %v5260_v62 = vadd.f32 %v4970_v0, %v591_v40  ;;  %v540_v38 = vadd.f32 %v532_v26, %v488_v35  ;;  %v1777_v5 = vcvt.f32.s32 %v5229_v23 }
 0x7cb   : > { %v1803_v25 = vsel %vm1802_vm13, %v1798_v61, inf  ;;  %v1748_v17 = vshll.u32 %v1747_v3, 16  ;;  %v6415_v41 = vpack.c.bf16 %v5091_v42, %v5097_v19  ;;  %v1793_v47 = vshll.u32 %v1792_v50, 16  ;;  %v6417_v19 = vld [vmem:[#allocation5_spill] sm:$0xff] }
 0x7cc   : > { %1804 = vmin.xlane.f32.xlu1 %v1803_v25  ;;  %v1778_v54 = vshll.u32 %v1777_v5, 16  ;;  %v1822_v14 = vcvt.f32.s32 %v5240_v58  ;;  %v2035_v5 = vld [vmem:[%s6374_s4 + $0x18] sm:$0xff] }
 0x7cd   : > { %v5248_v13 = vpop.xlane.xlu1 %1845 }
 0x7ce   : > { %vm1847_vm14 = vcmp.eq.f32.partialorder %v1844_v11, %v5248_v13  ;;  %v1826_v11 = vand.u32 65535, %v1825_v2  ;;  %v1823_v26 = vshll.u32 %v1822_v14, 16 }
 0x7cf   : > { %v1848_v39 = vsel %vm1847_vm14, %v1843_v63, inf }
 0x7d0   : > { %1849 = vmin.xlane.f32.xlu0 %v1848_v39  ;;  %v1828_v29 = vcvt.s32.f32 %v1826_v11 }
 0x7e6   : > { %617 = vrot.lane.b32.xlu0 %v4979_v49, %s4376_s13 }
 0x7ea   : > { %623 = vrot.lane.b32.xlu0 %v5197_v16, %s4376_s13 }
 0x7ee   : > { %627 = vrot.lane.b32.xlu0 %v5260_v62, %s4376_s13 }
 0x803   : > { %v5264_v7 = vpop.xlane.xlu1 %1830 }
 0x804   : > { %vm1832_vm15 = vcmp.eq.f32.partialorder %v5215_v53, %v5264_v7 }
 0x805   : > { %v1833_v48 = vsel %vm1832_vm15, %v1828_v29, inf }
 0x806   : > { %1834 = vmin.xlane.f32.xlu1 %v1833_v48  ;;  %v1807_v48 = vcvt.f32.s32 %v5244_v8  ;;  %v1852_v8 = vcvt.f32.s32 %v5248_v13 }
 0x807   : > { %v571_v30 = vpop.permute.xlu1 %570 }
 0x808   : > { %v584_v61 = vmul.f32 %v4947_v32, %v571_v30  ;;  %v6414_v32 = vpack.c.bf16 %v5049_v57, %v5055_v45 }
 0x80a   : > { %v592_v24 = vadd.f32 %v584_v61, %v540_v38  ;;  %v1808_v38 = vshll.u32 %v1807_v48, 16 }
 0x80c   : > { %v5273_v2 = vadd.f32 %v4970_v0, %v592_v24  ;;  %v1762_v0 = vcvt.f32.s32 %v5220_v4 }
 0x80e   : > { %v5277_v25 = vpack.c.bf16 %v5273_v2, %v5260_v62  ;;  %v1763_v45 = vshll.u32 %v1762_v0, 16 }
 0x810   : > { %4122 = vmatprep.subr.bf16.mxu1 %v5277_v25 }
 0x811   : > { %4123 = vmatpush3.bf16.msra.mxu1 %v5277_v25 }
 0x812   : > { %4132 = vmatprep.subr.bf16.mxu1 %v4986_v52 }
 0x814   : > { %4125 = vmatmul.mubr.msk.bf16.vlgmr.msra.gmra.mrb[0].mxu1 %vm859_vm2, %v6406_v20 }
 0x815   : > { %4128 = vmatprep.mubr.msk.bf16.mxu1 %vm859_vm2, %v6407_v9  ;;  %4133 = vmatpush3.bf16.msra.mxu1 %v4986_v52 }
 0x816   : > { %4134 = vmatprep.subr.bf16.mxu1 %v4990_v10 }
 0x817   : > { %615 = vrot.lane.b32.xlu1 %v4973_v51, %s4376_s13 }
 0x819   : > { %4135 = vmatpush3.bf16.msra.mxu1 %v4990_v10 }
 0x81a   : > { %4136 = vmatprep.subr.bf16.mxu1 %v5204_v31 }
 0x81b   : > { %619 = vrot.lane.b32.xlu1 %v4982_v37, %s4376_s13 }
 0x81c   : > { %4129 = vmatmul.mubr.msk.bf16.gmra.mrb[4].mxu1 %vm859_vm2, %v6408_v15 }
 0x81d   : > { %4137 = vmatpush3.bf16.msra.mxu1 %v5204_v31  ;;  %4140 = vmatprep.mubr.msk.bf16.mxu1 %vm859_vm2, %v6409_v18 }
 0x81e   : > { %4138 = vmatprep.subr.bf16.mxu1 %v5277_v25 }
 0x81f   : > { %621 = vrot.lane.b32.xlu1 %v4976_v21, %s4376_s13 }
 0x820   : > { %v1745_v34 = vpop.xlane.xlu0 %1744 }
 0x821   : > { %4139 = vmatpush3.bf16.msra.mxu1 %v5277_v25  ;;  %v1746_v1 = vcvt.f32.s32 %v1745_v34  ;;  %v1853_v34 = vshll.u32 %v1852_v8, 16 }
 0x822   : > { %4148 = vmatprep.subr.bf16.mxu1 %v4986_v52 }
 0x823   : > { %625 = vrot.lane.b32.xlu1 %v5200_v22, %s4376_s13  ;;  %v1749_v27 = vadd.s32 %v1748_v17, %v1746_v1 }
 0x824   : > { %4141 = vmatmul.mubr.msk.bf16.vlgmr.msra.gmra.mrb[8].mxu1 %vm859_vm2, %v6410_v28  ;;  %v1775_v44 = vpop.xlane.xlu0 %1774 }
 0x825   : > { %4144 = vmatprep.mubr.msk.bf16.mxu1 %vm859_vm2, %v6411_v43  ;;  %4149 = vmatpush3.bf16.msra.mxu1 %v4986_v52  ;;  %v1776_v53 = vcvt.f32.s32 %v1775_v44  ;;  %vm1855_vm0 = vcmp.eq.s32.totalorder %v4560_v12, %v1749_v27  ;;  %v1837_v43 = vcvt.f32.s32 %v5264_v7  ;;  %v2034_v7 = vld [vmem:[%s6374_s4 + $0x10] sm:$0xff]  ;;  %v2036_v27 = vld [vmem:[%s6374_s4 + $0x20] sm:$0xff] }
 0x826   : > { %4150 = vmatprep.subr.bf16.mxu1 %v4990_v10  ;;  %v3911_v46 = vsel %vm1855_vm0, 1.0, %v6419_v56 }
 0x827   : > { %629 = vrot.lane.b32.xlu1 %v5273_v2, %s4376_s13  ;;  %v1779_v4 = vadd.s32 %v1778_v54, %v1776_v53  ;;  %v1838_v3 = vshll.u32 %v1837_v43, 16 }
 0x828   : > { %v1790_v36 = vpop.xlane.xlu0 %1789 }
 0x829   : > { %4151 = vmatpush3.bf16.msra.mxu1 %v4990_v10  ;;  %v1791_v33 = vcvt.f32.s32 %v1790_v36  ;;  %vm1857_vm4 = vcmp.eq.s32.totalorder %v4560_v12, %v1779_v4 }
 0x82a   : > { %4152 = vmatprep.subr.bf16.mxu1 %v5204_v31  ;;  %v3913_v40 = vsel %vm1857_vm4, 1.0, %v6419_v56 }
 0x82b   : > { %v1794_v23 = vadd.s32 %v1793_v47, %v1791_v33 }
 0x82c   : > { %4145 = vmatmul.mubr.msk.bf16.gmra.mrb[12].mxu1 %vm859_vm2, %v6412_v6 }
 0x82d   : > { %4153 = vmatpush3.bf16.msra.mxu1 %v5204_v31  ;;  %4156 = vmatprep.mubr.msk.bf16.mxu1 %vm859_vm2, %v6413_v55  ;;  %vm1858_vm1 = vcmp.eq.s32.totalorder %v4560_v12, %v1794_v23  ;;  %v2032_v55 = vld [vmem:[%s6374_s4] sm:$0xff] }
 0x82e   : > { %4154 = vmatprep.subr.bf16.mxu1 %v5277_v25  ;;  %v3914_v59 = vsel %vm1858_vm1, 1.0, %v6419_v56 }
 0x82f   : > { %v1880_v11 = vpack.c.bf16 %v3914_v59, %v3913_v40 }
 0x831   : > { %4155 = vmatpush3.bf16.msra.mxu1 %v5277_v25 }
 0x832   : > { %4164 = vmatprep.subr.bf16.mxu1 %v4986_v52 }
 0x834   : > { %4157 = vmatmul.mubr.msk.bf16.vlgmr.msra.gmra.mrb[16].mxu1 %vm859_vm2, %v6414_v32  ;;  %v2046_v32 = vpack.c.bf16 %v2035_v5, %v2034_v7 }
 0x835   : > { %4160 = vmatprep.mubr.msk.bf16.mxu1 %vm859_vm2, %v6415_v41  ;;  %4165 = vmatpush3.bf16.msra.mxu1 %v4986_v52  ;;  %v6416_v52 = vld [vmem:[#allocation4_spill] sm:$0xff] }
 0x836   : > { %4166 = vmatprep.subr.bf16.mxu1 %v4990_v10  ;;  %v6418_v39 = vpack.c.bf16 %v6416_v52, %v6417_v19 }
 0x838   : > { %v1760_v57 = vpop.xlane.xlu1 %1759 }
 0x839   : > { %v1761_v63 = vcvt.f32.s32 %v1760_v57  ;;  %4167 = vmatpush3.bf16.msra.mxu1 %v4990_v10 }
 0x83a   : > { %4168 = vmatprep.subr.bf16.mxu1 %v5204_v31 }
 0x83b   : > { %v1764_v42 = vadd.s32 %v1763_v45, %v1761_v63  ;;  %v2038_v45 = vld [vmem:[%s6374_s4 + $0x30] sm:$0xff]  ;;  %v2039_v63 = vld [vmem:[%s6374_s4 + $0x38] sm:$0xff] }
 0x83c   : > { %4161 = vmatmul.mubr.msk.bf16.gmra.mrb[20].mxu1 %vm859_vm2, %v6418_v39 }
 0x83d   : > { %vm1856_vm3 = vcmp.eq.s32.totalorder %v4560_v12, %v1764_v42  ;;  %4169 = vmatpush3.bf16.msra.mxu1 %v5204_v31  ;;  %v2048_v42 = vpack.c.bf16 %v2039_v63, %v2038_v45 }
 0x83e   : > { %v3912_v10 = vsel %vm1856_vm3, 1.0, %v6419_v56  ;;  %4170 = vmatprep.subr.bf16.mxu1 %v5277_v25 }
 0x83f   : > { %v1879_v60 = vpack.c.bf16 %v3912_v10, %v3911_v46 }
 0x841   : > { %4171 = vmatpush3.bf16.msra.mxu1 %v5277_v25  ;;  %4172 = vmatprep.mubr.msk.bf16.mxu1 %vm859_vm2, %v1879_v60 }
 0x844   : > { %4173 = vmatmul.mubr.msk.bf16.vlgmr.msra.gmra.mrb[24].mxu1 %vm859_vm2, %v1880_v11 }
 0x84f   : > { %v1820_v31 = vpop.xlane.xlu0 %1819 }
 0x850   : > { %v1821_v29 = vcvt.f32.s32 %v1820_v31 }
 0x852   : > { %v1824_v35 = vadd.s32 %v1823_v26, %v1821_v29 }
 0x854   : > { %vm1860_vm5 = vcmp.eq.s32.totalorder %v4560_v12, %v1824_v35 }
 0x855   : > { %v3916_v20 = vsel %vm1860_vm5, 1.0, %v6419_v56 }
 0x859   : > { %v1805_v30 = vpop.xlane.xlu1 %1804 }
 0x85a   : > { %v1806_v61 = vcvt.f32.s32 %v1805_v30 }
 0x85c   : > { %v1809_v24 = vadd.s32 %v1808_v38, %v1806_v61 }
 0x85d   : > { %v1850_v25 = vpop.xlane.xlu0 %1849 }
 0x85e   : > { %vm1859_vm6 = vcmp.eq.s32.totalorder %v4560_v12, %v1809_v24  ;;  %v1851_v28 = vcvt.f32.s32 %v1850_v25 }
 0x85f   : > { %v3915_v9 = vsel %vm1859_vm6, 1.0, %v6419_v56 }
 0x860   : > { %v1881_v15 = vpack.c.bf16 %v3916_v20, %v3915_v9  ;;  %v1854_v44 = vadd.s32 %v1853_v34, %v1851_v28 }
 0x861   : > { %v618_v58 = vpop.permute.xlu0 %617 }
 0x862   : > { %v640_v18 = vsub.f32 %v4979_v49, %v618_v58  ;;  %4176 = vmatprep.mubr.msk.bf16.mxu1 %vm859_vm2, %v1881_v15  ;;  %v2033_v49 = vld [vmem:[%s6374_s4 + $0x8] sm:$0xff]  ;;  %vm1862_vm7 = vcmp.eq.s32.totalorder %v4560_v12, %v1854_v44 }
 0x863   : > { %v2045_v50 = vpack.c.bf16 %v2033_v49, %v2032_v55  ;;  %v3918_v0 = vsel %vm1862_vm7, 1.0, %v6419_v56 }
 0x864   : > { %1978 = vrot.lane.b32.xlu1 %v640_v18, %s4376_s13 }
 0x865   : > { %4180 = vmatprep.subr.bf16.mxu0 %v2045_v50  ;;  %v624_v47 = vpop.permute.xlu0 %623 }
 0x866   : > { %4181 = vmatpush3.bf16.msra.mxu0 %v2045_v50  ;;  %v643_v4 = vsub.f32 %v5197_v16, %v624_v47 }
 0x867   : > { %4182 = vmatprep.subr.bf16.mxu0 %v2046_v32 }
 0x869   : > { %v628_v52 = vpop.permute.xlu0 %627 }
 0x86a   : > { %4183 = vmatpush3.bf16.msra.mxu0 %v2046_v32  ;;  %v645_v39 = vsub.f32 %v5260_v62, %v628_v52 }
 0x893   : > { %v1835_v6 = vpop.xlane.xlu1 %1834 }
 0x894   : > { %v1836_v36 = vcvt.f32.s32 %v1835_v6 }
 0x896   : > { %v1839_v13 = vadd.s32 %v1838_v3, %v1836_v36 }
 0x897   : > { %v616_v1 = vpop.permute.xlu1 %615 }
 0x898   : > { %vm1861_vm8 = vcmp.eq.s32.totalorder %v4560_v12, %v1839_v13  ;;  %v639_v33 = vsub.f32 %v4973_v51, %v616_v1  ;;  %v2037_v51 = vld [vmem:[%s6374_s4 + $0x28] sm:$0xff] }
 0x899   : > { %v3917_v17 = vsel %vm1861_vm8, 1.0, %v6419_v56  ;;  %v2047_v23 = vpack.c.bf16 %v2037_v51, %v2036_v27 }
 0x89a   : > { %1976 = vrot.lane.b32.xlu0 %v639_v33, %s4376_s13  ;;  %v1882_v41 = vpack.c.bf16 %v3918_v0, %v3917_v17 }
 0x89b   : > { %v620_v53 = vpop.permute.xlu1 %619  ;;  %4184 = vmatprep.subr.bf16.mxu0 %v2047_v23 }
 0x89c   : > { %v641_v54 = vsub.f32 %v4982_v37, %v620_v53  ;;  %4177 = vmatmul.mubr.msk.bf16.gmra.mrb[28].mxu1 %vm859_vm2, %v1882_v41  ;;  %4185 = vmatpush3.bf16.msra.mxu0 %v2047_v23 }
 0x89d   : > { %4186 = vmatprep.subr.bf16.mxu0 %v2048_v42 }
 0x89e   : > { %1980 = vrot.lane.b32.xlu0 %v641_v54, %s4376_s13 }
 0x89f   : > { %v622_v57 = vpop.permute.xlu1 %621 }
 0x8a0   : > { %v642_v37 = vsub.f32 %v4976_v21, %v622_v57  ;;  %4187 = vmatpush3.bf16.msra.mxu0 %v2048_v42 }
 0x8a2   : > { %1984 = vrot.lane.b32.xlu0 %v643_v4, %s4376_s13  ;;  %1982 = vrot.lane.b32.xlu1 %v642_v37, %s4376_s13 }
 0x8a3   : > { %v626_v19 = vpop.permute.xlu1 %625 }
 0x8a4   : > { %v644_v46 = vsub.f32 %v5200_v22, %v626_v19 }
 0x8a6   : > { %1988 = vrot.lane.b32.xlu0 %v645_v39, %s4376_s13  ;;  %1986 = vrot.lane.b32.xlu1 %v644_v46, %s4376_s13 }
 0x8a7   : > { %v630_v16 = vpop.permute.xlu1 %629 }
 0x8a8   : > { %v646_v21 = vsub.f32 %v5273_v2, %v630_v16 }
 0x8aa   : > { %1990 = vrot.lane.b32.xlu1 %v646_v21, %s4376_s13 }
 0x8d6   : > { %v1979_v0 = vpop.permute.xlu1 %1978 }
 0x8e7   : > { %v4126_v10 = vpop.f32.mrb[0].mxu1 }
 0x8e8   : > { %v1094_v59 = vpop.f32.mrb[1].mxu1 }
 0x8e9   : > { %v4127_v60 = vpop.f32.mrb[2].mxu1 }
 0x8ea   : > { %v1097_v40 = vpop.f32.mrb[3].mxu1 }
 0x8ef   : > { %v4130_v11 = vpop.f32.mrb[4].mxu1 }
 0x8f0   : > { %v1110_v31 = vpop.f32.mrb[5].mxu1 }
 0x8f1   : > { %v4131_v14 = vpop.f32.mrb[6].mxu1 }
 0x8f2   : > { %v1113_v62 = vpop.f32.mrb[7].mxu1 }
 0x8f7   : > { %v4142_v29 = vpop.f32.mrb[8].mxu1 }
 0x8f8   : > { %v1400_v22 = vmax.f32 %v4126_v10, %v4142_v29  ;;  %v1367_v26 = vpop.f32.mrb[9].mxu1 }
 0x8f9   : > { %v1398_v48 = vmax.f32 %v1094_v59, %v1367_v26  ;;  %v4143_v35 = vpop.f32.mrb[10].mxu1 }
 0x8fa   : > { %v1401_v30 = vmax.f32 %v4127_v60, %v4143_v35  ;;  %v1370_v38 = vpop.f32.mrb[11].mxu1 }
 0x8fb   : > { %v1399_v61 = vmax.f32 %v1097_v40, %v1370_v38 }
 0x8ff   : > { %v4146_v24 = vpop.f32.mrb[12].mxu1 }
 0x900   : > { %v1404_v2 = vmax.f32 %v4130_v11, %v4146_v24  ;;  %v1383_v25 = vpop.f32.mrb[13].mxu1 }
 0x901   : > { %v1402_v20 = vmax.f32 %v1110_v31, %v1383_v25  ;;  %v4147_v9 = vpop.f32.mrb[14].mxu1 }
 0x902   : > { %v1405_v15 = vmax.f32 %v4131_v14, %v4147_v9  ;;  %v1386_v58 = vpop.f32.mrb[15].mxu1 }
 0x903   : > { %v1403_v18 = vmax.f32 %v1113_v62, %v1386_v58 }
 0x907   : > { %v4158_v8 = vpop.f32.mrb[16].mxu1 }
 0x908   : > { %v1681_v28 = vmax.f32 %v1400_v22, %v4158_v8  ;;  %v1648_v34 = vpop.f32.mrb[17].mxu1 }
 0x909   : > { %v1679_v43 = vmax.f32 %v1398_v48, %v1648_v34  ;;  %v4159_v44 = vpop.f32.mrb[18].mxu1 }
 0x90a   : > { %v1682_v6 = vmax.f32 %v1401_v30, %v4159_v44  ;;  %v1651_v55 = vpop.f32.mrb[19].mxu1 }
 0x90b   : > { %v1680_v49 = vmax.f32 %v1399_v61, %v1651_v55 }
 0x90c   : > { %v1977_v33 = vpop.permute.xlu0 %1976 }
 0x90f   : > { %v4162_v3 = vpop.f32.mrb[20].mxu1 }
 0x910   : > { %v5427_v36 = vmax.f32 %v1404_v2, %v4162_v3  ;;  %v1664_v50 = vpop.f32.mrb[21].mxu1  ;;  %v1981_v53 = vpop.permute.xlu0 %1980 }
 0x911   : > { %v5429_v13 = vmax.f32 %v1402_v20, %v1664_v50  ;;  %v4163_v1 = vpop.f32.mrb[22].mxu1 }
 0x912   : > { %v5431_v7 = vmax.f32 %v1405_v15, %v4163_v1  ;;  %v1667_v5 = vpop.f32.mrb[23].mxu1 }
 0x913   : > { %v5433_v32 = vmax.f32 %v1403_v18, %v1667_v5 }
 0x914   : > { %v1983_v45 = vpop.permute.xlu1 %1982  ;;  %v1985_v38 = vpop.permute.xlu0 %1984 }
 0x917   : > { %v4174_v17 = vpop.f32.mrb[24].mxu1 }
 0x918   : > { %v1962_v41 = vmax.f32 %v1681_v28, %v4174_v17  ;;  %v1929_v47 = vpop.f32.mrb[25].mxu1  ;;  %v1987_v61 = vpop.permute.xlu1 %1986 }
 0x919   : > { %v1960_v27 = vmax.f32 %v1679_v43, %v1929_v47  ;;  %v4175_v51 = vpop.f32.mrb[26].mxu1  ;;  %v1989_v20 = vpop.permute.xlu0 %1988 }
 0x91a   : > { %v2002_v54 = vadd.f32 %v1981_v53, %v1962_v41  ;;  %v1963_v23 = vmax.f32 %v1682_v6, %v4175_v51  ;;  %v1932_v57 = vpop.f32.mrb[27].mxu1 }
 0x91b   : > { %v2000_v63 = vadd.f32 %v1977_v33, %v1960_v27  ;;  %v1961_v4 = vmax.f32 %v1680_v49, %v1932_v57 }
 0x91c   : > { %vm2010_vm9 = vcmp.gt.f32.partialorder %v2002_v54, 0.0  ;;  %v2018_v37 = vmul.f32 0.2, %v2002_v54  ;;  %v2003_v42 = vadd.f32 %v1983_v45, %v1963_v23  ;;  %v1991_v28 = vpop.permute.xlu1 %1990 }
 0x91d   : > { %v2016_v52 = vmul.f32 0.2, %v2000_v63  ;;  %v2001_v19 = vadd.f32 %v1979_v0, %v1961_v4  ;;  %vm2008_vm10 = vcmp.gt.f32.partialorder %v2000_v63, 0.0 }
 0x91e   : > { %vm2011_vm11 = vcmp.gt.f32.partialorder %v2003_v42, 0.0  ;;  %v2019_v39 = vmul.f32 0.2, %v2003_v42  ;;  %v2026_v46 = vsel %vm2010_vm9, %v2002_v54, %v2018_v37 }
 0x91f   : > { %vm2009_vm12 = vcmp.gt.f32.partialorder %v2001_v19, 0.0  ;;  %v2017_v16 = vmul.f32 0.2, %v2001_v19  ;;  %v2024_v21 = vsel %vm2008_vm10, %v2000_v63, %v2016_v52  ;;  %v2239_v62 = vmul.f32 %v2026_v46, %v2026_v46 }
 0x920   : > { %v2027_v10 = vsel %vm2011_vm11, %v2003_v42, %v2019_v39  ;;  %v2237_v59 = vmul.f32 %v2024_v21, %v2024_v21  ;;  %v3923_v42 = vld [vmem:[%s6375_s5] ss:$0 sm:$0xff] }
 0x921   : > { %v5435_v60 = vpack.c.bf16 %v2027_v10, %v2026_v46  ;;  %v2025_v40 = vsel %vm2009_vm12, %v2001_v19, %v2017_v16  ;;  %v2251_v26 = vsel %vm859_vm2, %v2239_v62, 0.0  ;;  %v2240_v48 = vmul.f32 %v2027_v10, %v2027_v10 }
 0x922   : > { %v2245_v11 = vsel %vm859_vm2, %v2237_v59, 0.0  ;;  %v2041_v31 = vpack.c.bf16 %v2025_v40, %v2024_v21  ;;  %v2238_v14 = vmul.f32 %v2025_v40, %v2025_v40 }
 0x923   : > { %2246 = vadd.xlane.f32.xlu0 %v2245_v11  ;;  %v2254_v35 = vsel %vm859_vm2, %v2240_v48, 0.0  ;;  %v2059_v30 = vsel %vm859_vm2, %v5435_v60, 0 }
 0x924   : > { %4188 = vmatprep.mubr.msk.bf16.mxu0 %vm859_vm2, %v2041_v31  ;;  %4318 = vmatprep.subr.msk.bf16.mxu1 %vm859_vm2, %v2041_v31  ;;  %v2248_v29 = vsel %vm859_vm2, %v2238_v14, 0.0  ;;  %v2056_v22 = vsel %vm859_vm2, %v2041_v31, 0 }
 0x925   : > { %4204 = vmatprep.mubr.msk.bf16.mxu1 %vm859_vm2, %v2041_v31  ;;  %2249 = vadd.xlane.f32.xlu1 %v2248_v29 }
 0x926   : > { %4189 = vmatmul.mubr.msk.bf16.vlgmr.msra.gmra.mrb[8].mxu0 %vm859_vm2, %v5435_v60  ;;  %4197 = vmatpush3.bf16.xpose.msra.mxu1 %v2056_v22 }
 0x927   : > { %4319 = vmatprep.subr.msk.bf16.mxu1 %vm859_vm2, %v5435_v60  ;;  %2252 = vadd.xlane.f32.xlu0 %v2251_v26 }
 0x92b   : > { %2255 = vadd.xlane.f32.xlu0 %v2254_v35 }
 0x92e   : > { %4199 = vmatpush3.bf16.xpose.msra.mxu1 %v2059_v30 }
 0x96f   : > { %v4178_v24 = vpop.f32.mrb[28].mxu1 }
 0x970   : > { %v1966_v2 = vmax.f32 %v5427_v36, %v4178_v24  ;;  %v1945_v25 = vpop.f32.mrb[29].mxu1 }
 0x971   : > { %v1964_v9 = vmax.f32 %v5429_v13, %v1945_v25  ;;  %v4179_v15 = vpop.f32.mrb[30].mxu1 }
 0x972   : > { %v2006_v58 = vadd.f32 %v1989_v20, %v1966_v2  ;;  %v1967_v18 = vmax.f32 %v5431_v7, %v4179_v15  ;;  %v1948_v8 = vpop.f32.mrb[31].mxu1 }
 0x973   : > { %v2004_v34 = vadd.f32 %v1985_v38, %v1964_v9  ;;  %v1965_v43 = vmax.f32 %v5433_v32, %v1948_v8 }
 0x974   : > { %v2022_v44 = vmul.f32 0.2, %v2006_v58  ;;  %v2007_v6 = vadd.f32 %v1991_v28, %v1967_v18  ;;  %vm2014_vm13 = vcmp.gt.f32.partialorder %v2006_v58, 0.0 }
 0x975   : > { %vm2012_vm14 = vcmp.gt.f32.partialorder %v2004_v34, 0.0  ;;  %v2020_v55 = vmul.f32 0.2, %v2004_v34  ;;  %v2005_v49 = vadd.f32 %v1987_v61, %v1965_v43  ;;  %v6420_v43 = vld [vmem:[#allocation3_spill] sm:$0xff] }
 0x976   : > { %vm2015_vm15 = vcmp.gt.f32.partialorder %v2007_v6, 0.0  ;;  %v2023_v3 = vmul.f32 0.2, %v2007_v6  ;;  %v2030_v36 = vsel %vm2014_vm13, %v2006_v58, %v2022_v44 }
 0x977   : > { %v2028_v50 = vsel %vm2012_vm14, %v2004_v34, %v2020_v55  ;;  %vm2013_vm0 = vcmp.gt.f32.partialorder %v2005_v49, 0.0  ;;  %v2021_v13 = vmul.f32 0.2, %v2005_v49  ;;  %v2243_v1 = vmul.f32 %v2030_v36, %v2030_v36 }
 0x978   : > { %v2031_v5 = vsel %vm2015_vm15, %v2007_v6, %v2023_v3  ;;  %v2241_v17 = vmul.f32 %v2028_v50, %v2028_v50 }
 0x979   : > { %v2029_v7 = vsel %vm2013_vm0, %v2005_v49, %v2021_v13  ;;  %v2263_v33 = vsel %vm859_vm2, %v2243_v1, 0.0  ;;  %v2044_v0 = vpack.c.bf16 %v2031_v5, %v2030_v36  ;;  %v2244_v27 = vmul.f32 %v2031_v5, %v2031_v5 }
 0x97a   : > { %2264 = vadd.xlane.f32.xlu1 %v2263_v33  ;;  %v2043_v32 = vpack.c.bf16 %v2029_v7, %v2028_v50  ;;  %v2242_v41 = vmul.f32 %v2029_v7, %v2029_v7  ;;  %v2257_v51 = vsel %vm859_vm2, %v2241_v17, 0.0 }
 0x97b   : > { %v2266_v54 = vsel %vm859_vm2, %v2244_v27, 0.0  ;;  %v2065_v23 = vsel %vm859_vm2, %v2044_v0, 0 }
 0x97c   : > { %4192 = vmatprep.mubr.msk.bf16.mxu0 %vm859_vm2, %v2043_v32  ;;  %4320 = vmatprep.subr.msk.bf16.mxu1 %vm859_vm2, %v2043_v32  ;;  %v2260_v47 = vsel %vm859_vm2, %v2242_v41, 0.0  ;;  %v2062_v53 = vsel %vm859_vm2, %v2043_v32, 0 }
 0x97d   : > { %2261 = vadd.xlane.f32.xlu0 %v2260_v47  ;;  %4193 = vmatmul.mubr.msk.bf16.gmra.mrb[12].mxu0 %vm859_vm2, %v2044_v0 }
 0x97e   : > { %4201 = vmatpush3.bf16.xpose.msra.mxu1 %v2062_v53  ;;  %2258 = vadd.xlane.f32.xlu1 %v2257_v51 }
 0x97f   : > { %4321 = vmatprep.subr.msk.bf16.mxu1 %vm859_vm2, %v2044_v0 }
 0x981   : > { %2267 = vadd.xlane.f32.xlu0 %v2266_v54 }
 0x986   : > { %4203 = vmatpush3.bf16.xpose.msra.mxu1 %v2065_v23 }
 0x98d   : > { %4205 = vmatmul.mubr.msk.bf16.vlgmr.msra.gmra.mrb[32].mxu1 %vm859_vm2, %v5435_v60 }
 0x98e   : > { %4208 = vmatprep.mubr.msk.bf16.mxu1 %vm859_vm2, %v2043_v32 }
 0x995   : > { %4209 = vmatmul.mubr.msk.bf16.gmra.mrb[36].mxu1 %vm859_vm2, %v2044_v0 }
 0x9b0   : > { %v2247_v57 = vpop.xlane.xlu0 %2246 }
 0x9b1   : > { %2277 = vxpose.xlu1.b32.start [1/8] (short) (narrow) %v2247_v57, 8 }
 0x9b2   : > { %v2250_v45 = vpop.xlane.xlu1 %2249 }
 0x9b4   : > { %v2253_v63 = vpop.xlane.xlu0 %2252 }
 0x9b5   : > { %2278 = vxpose.xlu1.b32.cont [2/8] (short) (narrow) %v2250_v45, 8 }
 0x9b8   : > { %v2256_v4 = vpop.xlane.xlu0 %2255 }
 0x9b9   : > { %2279 = vxpose.xlu1.b32.cont [3/8] (short) (narrow) %v2253_v63, 8 }
 0x9bd   : > { %2280 = vxpose.xlu1.b32.cont [4/8] (short) (narrow) %v2256_v4, 8 }
 0x9f9   : > { %v4190_v37 = vpop.f32.mrb[8].mxu0 }
 0x9fa   : > { %v2101_v52 = vpop.f32.mrb[9].mxu0  ;;  %v5478_v10 = vadd.f32 %v4190_v37, %v3923_v42 }
 0x9fb   : > { %v4191_v19 = vpop.f32.mrb[10].mxu0  ;;  %v5472_v46 = vadd.f32 %v3923_v42, %v2101_v52 }
 0x9fc   : > { %v2104_v39 = vpop.f32.mrb[11].mxu0  ;;  %v5474_v16 = vadd.f32 %v4191_v19, %v3923_v42 }
 0x9fd   : > { %v5476_v21 = vadd.f32 %v3923_v42, %v2104_v39 }
 0x9fe   : > { %v5486_v60 = vpack.c.bf16 %v5474_v16, %v5478_v10 }
 0x9ff   : > { %v5482_v59 = vpack.c.bf16 %v5476_v21, %v5472_v46 }
 0xa01   : > { %4212 = vmatprep.subr.bf16.mxu0 %v5482_v59  ;;  %4244 = vmatprep.subr.bf16.mxu1 %v5482_v59 }
 0xa02   : > { %4213 = vmatpush3.bf16.msra.mxu0 %v5482_v59  ;;  %4245 = vmatpush3.bf16.msra.mxu1 %v5482_v59 }
 0xa03   : > { %4214 = vmatprep.subr.bf16.mxu0 %v5486_v60  ;;  %4246 = vmatprep.subr.bf16.mxu1 %v5486_v60 }
 0xa06   : > { %4215 = vmatpush3.bf16.msra.mxu0 %v5486_v60  ;;  %4247 = vmatpush3.bf16.msra.mxu1 %v5486_v60 }
 0xa07   : > { %v2265_v40 = vpop.xlane.xlu1 %2264 }
 0xa0a   : > { %v2262_v31 = vpop.xlane.xlu0 %2261 }
 0xa0b   : > { %v2259_v11 = vpop.xlane.xlu1 %2258 }
 0xa0c   : > { %2281 = vxpose.xlu1.b32.cont [5/8] (short) (narrow) %v2259_v11, 8 }
 0xa0e   : > { %v2268_v14 = vpop.xlane.xlu0 %2267 }
 0xa10   : > { %2282 = vxpose.xlu1.b32.cont [6/8] (short) (narrow) %v2262_v31, 8 }
 0xa14   : > { %2283 = vxpose.xlu1.b32.cont [7/8] (short) (narrow) %v2265_v40, 8 }
 0xa18   : > { %2284 = vxpose.xlu1.b32.end [8/8] (short) (narrow) %v2268_v14, 8 }
 0xa50   : > { %v4194_v62 = vpop.f32.mrb[12].mxu0 }
 0xa51   : > { %v2117_v29 = vpop.f32.mrb[13].mxu0  ;;  %v5502_v38 = vadd.f32 %v4194_v62, %v3923_v42 }
 0xa52   : > { %v4195_v22 = vpop.f32.mrb[14].mxu0  ;;  %v5496_v48 = vadd.f32 %v3923_v42, %v2117_v29 }
 0xa53   : > { %v2120_v26 = vpop.f32.mrb[15].mxu0  ;;  %v5498_v35 = vadd.f32 %v4195_v22, %v3923_v42 }
 0xa54   : > { %v5500_v30 = vadd.f32 %v3923_v42, %v2120_v26 }
 0xa55   : > { %v5510_v24 = vpack.c.bf16 %v5498_v35, %v5502_v38 }
 0xa56   : > { %v5506_v61 = vpack.c.bf16 %v5500_v30, %v5496_v48 }
 0xa58   : > { %4216 = vmatprep.subr.bf16.mxu0 %v5506_v61  ;;  %4248 = vmatprep.subr.bf16.mxu1 %v5506_v61 }
 0xa59   : > { %4217 = vmatpush3.bf16.msra.mxu0 %v5506_v61  ;;  %4249 = vmatpush3.bf16.msra.mxu1 %v5506_v61 }
 0xa5a   : > { %4218 = vmatprep.subr.bf16.mxu0 %v5510_v24  ;;  %4250 = vmatprep.subr.bf16.mxu1 %v5510_v24 }
 0xa5d   : > { %4219 = vmatpush3.bf16.msra.mxu0 %v5510_v24  ;;  %4251 = vmatpush3.bf16.msra.mxu1 %v5510_v24 }
 0xa5e   : > { %4228 = vmatprep.subr.bf16.mxu0 %v5482_v59  ;;  %4276 = vmatprep.subr.bf16.mxu1 %v6419_v56 }
 0xa60   : > { %v4206_v2 = vpop.f32.mrb[32].mxu1 }
 0xa61   : > { %v2206_v25 = vpop.f32.mrb[33].mxu1  ;;  %v2271_v34 = vmul.f32 2.0, %v4206_v2 }
 0xa62   : > { %v4207_v20 = vpop.f32.mrb[34].mxu1  ;;  %v2269_v6 = vmul.f32 2.0, %v2206_v25 }
 0xa63   : > { %v2209_v9 = vpop.f32.mrb[35].mxu1  ;;  %v2272_v36 = vmul.f32 2.0, %v4207_v20 }
 0xa64   : > { %v2270_v1 = vmul.f32 2.0, %v2209_v9 }
 0xa68   : > { %v4210_v15 = vpop.f32.mrb[36].mxu1 }
 0xa69   : > { %v2222_v58 = vpop.f32.mrb[37].mxu1  ;;  %v2275_v33 = vmul.f32 2.0, %v4210_v15 }
 0xa6a   : > { %v4211_v18 = vpop.f32.mrb[38].mxu1  ;;  %v2273_v32 = vmul.f32 2.0, %v2222_v58 }
 0xa6b   : > { %v2225_v8 = vpop.f32.mrb[39].mxu1  ;;  %v2276_v54 = vmul.f32 2.0, %v4211_v18 }
 0xa6c   : > { %v2274_v53 = vmul.f32 2.0, %v2225_v8 }
 0xa7c   : > { %v2293_v28 = vpop.trf.xlu1 }
 0xa7d   : > { %v2312_v44 = vrot.slane %v2293_v28, %v6420_v43 }
 0xa7f   : > { %v5523_v55 = vsub.f32 %v2271_v34, %v2312_v44  ;;  %v5527_v3 = vsub.f32 %v2269_v6, %v2312_v44  ;;  %v5531_v13 = vsub.f32 %v2272_v36, %v2312_v44  ;;  %v5535_v7 = vsub.f32 %v2270_v1, %v2312_v44 }
 0xa80   : > { %v5539_v17 = vsub.f32 %v2275_v33, %v2312_v44  ;;  %v5543_v47 = vsub.f32 %v2273_v32, %v2312_v44  ;;  %v5547_v51 = vsub.f32 %v2274_v53, %v2312_v44  ;;  %v5551_v57 = vsub.f32 %v2276_v54, %v2312_v44 }
 0xa81   : > { %v2331_v49 = vsel %vm859_vm2, %v5523_v55, -inf  ;;  %v2325_v50 = vsel %vm859_vm2, %v5527_v3, -inf  ;;  %v2334_v5 = vsel %vm859_vm2, %v5531_v13, -inf  ;;  %v2328_v0 = vsel %vm859_vm2, %v5535_v7, -inf }
 0xa82   : > { %2332 = vmax.xlane.f32.xlu0 %v2331_v49  ;;  %v2343_v41 = vsel %vm859_vm2, %v5539_v17, -inf  ;;  %v2337_v27 = vsel %vm859_vm2, %v5543_v47, -inf  ;;  %v2340_v23 = vsel %vm859_vm2, %v5547_v51, -inf  ;;  %v2346_v45 = vsel %vm859_vm2, %v5551_v57, -inf }
 0xa86   : > { %2326 = vmax.xlane.f32.xlu0 %v2325_v50 }
 0xa8a   : > { %2335 = vmax.xlane.f32.xlu0 %v2334_v5 }
 0xa8e   : > { %2329 = vmax.xlane.f32.xlu0 %v2328_v0 }
 0xa92   : > { %2344 = vmax.xlane.f32.xlu0 %v2343_v41 }
 0xa96   : > { %2338 = vmax.xlane.f32.xlu0 %v2337_v27 }
 0xa9a   : > { %2341 = vmax.xlane.f32.xlu0 %v2340_v23 }
 0xa9e   : > { %2347 = vmax.xlane.f32.xlu0 %v2346_v45 }
 0xb0f   : > { %v2333_v63 = vpop.xlane.xlu0 %2332 }
 0xb10   : > { %vm2351_vm1 = vcmp.ge.f32.partialorder %v5523_v55, %v2333_v63 }
 0xb11   : > { %v2359_v4 = vsel %vm2351_vm1, %v4560_v12, 64 }
 0xb12   : > { %v2395_v37 = vsel %vm859_vm2, %v2359_v4, 2147483647 }
 0xb13   : > { %v2327_v42 = vpop.xlane.xlu0 %2326  ;;  %v2397_v52 = vshra.s32 %v2395_v37, 16  ;;  %v2396_v45 = vand.u32 65535, %v2395_v37 }
 0xb14   : > { %vm2349_vm3 = vcmp.ge.f32.partialorder %v5527_v3, %v2327_v42 }
 0xb15   : > { %v2357_v19 = vsel %vm2349_vm3, %v4560_v12, 64  ;;  %v2399_v39 = vcvt.s32.f32 %v2397_v52  ;;  %v2398_v4 = vcvt.s32.f32 %v2396_v45 }
 0xb16   : > { %v2365_v40 = vsel %vm859_vm2, %v2357_v19, 2147483647 }
 0xb17   : > { %2400 = vmin.xlane.f32.xlu0 %v2399_v39  ;;  %v2336_v11 = vpop.xlane.xlu0 %2335  ;;  %v2367_v31 = vshra.s32 %v2365_v40, 16  ;;  %v2366_v42 = vand.u32 65535, %v2365_v40 }
 0xb18   : > { %vm2352_vm4 = vcmp.ge.f32.partialorder %v5531_v13, %v2336_v11 }
 0xb19   : > { %v2360_v14 = vsel %vm2352_vm4, %v4560_v12, 64  ;;  %v2369_v62 = vcvt.s32.f32 %v2367_v31  ;;  %v2368_v11 = vcvt.s32.f32 %v2366_v42 }
 0xb1a   : > { %v2410_v29 = vsel %vm859_vm2, %v2360_v14, 2147483647 }
 0xb1b   : > { %2370 = vmin.xlane.f32.xlu0 %v2369_v62  ;;  %v2330_v22 = vpop.xlane.xlu0 %2329  ;;  %v2412_v26 = vshra.s32 %v2410_v29, 16  ;;  %v2411_v31 = vand.u32 65535, %v2410_v29 }
 0xb1c   : > { %vm2350_vm5 = vcmp.ge.f32.partialorder %v5535_v7, %v2330_v22 }
 0xb1d   : > { %v2358_v2 = vsel %vm2350_vm5, %v4560_v12, 64  ;;  %v2414_v25 = vcvt.s32.f32 %v2412_v26  ;;  %v2413_v26 = vcvt.s32.f32 %v2411_v31 }
 0xb1e   : > { %v2380_v20 = vsel %vm859_vm2, %v2358_v2, 2147483647 }
 0xb1f   : > { %2415 = vmin.xlane.f32.xlu0 %v2414_v25  ;;  %v2345_v9 = vpop.xlane.xlu0 %2344  ;;  %v2382_v15 = vshra.s32 %v2380_v20, 16  ;;  %v2381_v2 = vand.u32 65535, %v2380_v20 }
 0xb20   : > { %vm2355_vm6 = vcmp.ge.f32.partialorder %v5539_v17, %v2345_v9 }
 0xb21   : > { %v2363_v58 = vsel %vm2355_vm6, %v4560_v12, 64  ;;  %v2384_v18 = vcvt.s32.f32 %v2382_v15  ;;  %v2383_v37 = vcvt.s32.f32 %v2381_v2 }
 0xb22   : > { %v2455_v8 = vsel %vm859_vm2, %v2363_v58, 2147483647 }
 0xb23   : > { %2385 = vmin.xlane.f32.xlu0 %v2384_v18  ;;  %v2339_v28 = vpop.xlane.xlu0 %2338  ;;  %v2457_v34 = vshra.s32 %v2455_v8, 16  ;;  %v2456_v58 = vand.u32 65535, %v2455_v8 }
 0xb24   : > { %vm2353_vm7 = vcmp.ge.f32.partialorder %v5543_v47, %v2339_v28 }
 0xb25   : > { %v2361_v44 = vsel %vm2353_vm7, %v4560_v12, 64  ;;  %v2459_v6 = vcvt.s32.f32 %v2457_v34  ;;  %v2458_v28 = vcvt.s32.f32 %v2456_v58 }
 0xb26   : > { %v2425_v49 = vsel %vm859_vm2, %v2361_v44, 2147483647 }
 0xb27   : > { %2460 = vmin.xlane.f32.xlu0 %v2459_v6  ;;  %v2342_v36 = vpop.xlane.xlu0 %2341  ;;  %v2427_v50 = vshra.s32 %v2425_v49, 16  ;;  %v2426_v34 = vand.u32 65535, %v2425_v49 }
 0xb28   : > { %vm2354_vm8 = vcmp.ge.f32.partialorder %v5547_v51, %v2342_v36 }
 0xb29   : > { %v2362_v1 = vsel %vm2354_vm8, %v4560_v12, 64  ;;  %v2429_v5 = vcvt.s32.f32 %v2427_v50  ;;  %v2428_v20 = vcvt.s32.f32 %v2426_v34 }
 0xb2a   : > { %v2440_v33 = vsel %vm859_vm2, %v2362_v1, 2147483647 }
 0xb2b   : > { %2430 = vmin.xlane.f32.xlu0 %v2429_v5  ;;  %v2348_v0 = vpop.xlane.xlu0 %2347  ;;  %v2442_v32 = vshra.s32 %v2440_v33, 16 }
 0xb2c   : > { %vm2356_vm9 = vcmp.ge.f32.partialorder %v5551_v57, %v2348_v0 }
 0xb2d   : > { %v2364_v41 = vsel %vm2356_vm9, %v4560_v12, 64  ;;  %v2444_v53 = vcvt.s32.f32 %v2442_v32 }
 0xb2e   : > { %v2470_v27 = vsel %vm859_vm2, %v2364_v41, 2147483647 }
 0xb2f   : > { %2445 = vmin.xlane.f32.xlu0 %v2444_v53  ;;  %v2472_v54 = vshra.s32 %v2470_v27, 16  ;;  %v2471_v36 = vand.u32 65535, %v2470_v27 }
 0xb31   : > { %v2474_v23 = vcvt.s32.f32 %v2472_v54 }
 0xb33   : > { %2475 = vmin.xlane.f32.xlu0 %v2474_v23 }
 0xba4   : > { %v2401_v63 = vpop.xlane.xlu0 %2400 }
 0xba5   : > { %vm2402_vm10 = vcmp.eq.f32.partialorder %v2399_v39, %v2401_v63 }
 0xba6   : > { %v2403_v52 = vsel %vm2402_vm10, %v2398_v4, inf }
 0xba7   : > { %2404 = vmin.xlane.f32.xlu0 %v2403_v52 }
 0xba8   : > { %v2371_v19 = vpop.xlane.xlu0 %2370 }
 0xba9   : > { %vm2372_vm11 = vcmp.eq.f32.partialorder %v2369_v62, %v2371_v19  ;;  %v2377_v32 = vcvt.f32.s32 %v2371_v19 }
 0xbaa   : > { %v2373_v14 = vsel %vm2372_vm11, %v2368_v11, inf }
 0xbab   : > { %2374 = vmin.xlane.f32.xlu0 %v2373_v14  ;;  %v2378_v4 = vshll.u32 %v2377_v32, 16 }
 0xbac   : > { %v2416_v22 = vpop.xlane.xlu0 %2415 }
 0xbad   : > { %vm2417_vm12 = vcmp.eq.f32.partialorder %v2414_v25, %v2416_v22  ;;  %v2441_v25 = vand.u32 65535, %v2440_v33  ;;  %v2407_v33 = vcvt.f32.s32 %v2401_v63  ;;  %v2422_v27 = vcvt.f32.s32 %v2416_v22 }
 0xbae   : > { %v2418_v9 = vsel %vm2417_vm12, %v2413_v26, inf }
 0xbaf   : > { %2419 = vmin.xlane.f32.xlu0 %v2418_v9  ;;  %v2423_v19 = vshll.u32 %v2422_v27, 16 }
 0xbb0   : > { %v2386_v15 = vpop.xlane.xlu0 %2385 }
 0xbb1   : > { %vm2387_vm13 = vcmp.eq.f32.partialorder %v2384_v18, %v2386_v15  ;;  %v2443_v18 = vcvt.s32.f32 %v2441_v25  ;;  %v2392_v11 = vcvt.f32.s32 %v2386_v15 }
 0xbb2   : > { %v2388_v40 = vsel %vm2387_vm13, %v2383_v37, inf }
 0xbb3   : > { %2389 = vmin.xlane.f32.xlu0 %v2388_v40  ;;  %v2393_v2 = vshll.u32 %v2392_v11, 16 }
 0xbb4   : > { %v5579_v39 = vpop.xlane.xlu0 %2460 }
 0xbb5   : > { %vm2462_vm14 = vcmp.eq.f32.partialorder %v2459_v6, %v5579_v39  ;;  %v2473_v6 = vcvt.s32.f32 %v2471_v36 }
 0xbb6   : > { %v2463_v62 = vsel %vm2462_vm14, %v2458_v28, inf }
 0xbb7   : > { %2464 = vmin.xlane.f32.xlu0 %v2463_v62 }
 0xbb8   : > { %v5582_v29 = vpop.xlane.xlu0 %2430 }
 0xbb9   : > { %vm2432_vm15 = vcmp.eq.f32.partialorder %v2429_v5, %v5582_v29  ;;  %v2408_v5 = vshll.u32 %v2407_v33, 16 }
 0xbba   : > { %v2433_v44 = vsel %vm2432_vm15, %v2428_v20, inf  ;;  %v2467_v20 = vcvt.f32.s32 %v5579_v39 }
 0xbbb   : > { %2434 = vmin.xlane.f32.xlu1 %v2433_v44 }
 0xbbc   : > { %v5585_v8 = vpop.xlane.xlu0 %2445  ;;  %v2468_v39 = vshll.u32 %v2467_v20, 16 }
 0xbbd   : > { %vm2447_vm0 = vcmp.eq.f32.partialorder %v2444_v53, %v5585_v8 }
 0xbbe   : > { %v2448_v50 = vsel %vm2447_vm0, %v2443_v18, inf  ;;  %v2452_v18 = vcvt.f32.s32 %v5585_v8 }
 0xbbf   : > { %2449 = vmin.xlane.f32.xlu0 %v2448_v50 }
 0xbc0   : > { %v5588_v49 = vpop.xlane.xlu0 %2475 }
 0xbc1   : > { %vm2477_vm1 = vcmp.eq.f32.partialorder %v2474_v23, %v5588_v49  ;;  %v2482_v8 = vcvt.f32.s32 %v5588_v49 }
 0xbc2   : > { %v2478_v1 = vsel %vm2477_vm1, %v2473_v6, inf }
 0xbc3   : > { %2479 = vmin.xlane.f32.xlu0 %v2478_v1 }
 0xc34   : > { %v2405_v0 = vpop.xlane.xlu0 %2404 }
 0xc35   : > { %v2406_v41 = vcvt.f32.s32 %v2405_v0  ;;  %v2453_v0 = vshll.u32 %v2452_v18, 16 }
 0xc37   : > { %v2409_v54 = vadd.s32 %v2408_v5, %v2406_v41 }
 0xc38   : > { %v2375_v45 = vpop.xlane.xlu0 %2374 }
 0xc39   : > { %v2376_v42 = vcvt.f32.s32 %v2375_v45  ;;  %vm2487_vm3 = vcmp.eq.s32.totalorder %v4560_v12, %v2409_v54 }
 0xc3a   : > { %v5595_v53 = vsel %vm2487_vm3, -1e+30, %v5523_v55 }
 0xc3b   : > { %v2379_v23 = vadd.s32 %v2378_v4, %v2376_v42  ;;  %v2604_v63 = vsel %vm859_vm2, %v5595_v53, -inf  ;;  %v2483_v42 = vshll.u32 %v2482_v8, 16 }
 0xc3c   : > { %2605 = vmax.xlane.f32.xlu0 %v2604_v63  ;;  %v2420_v52 = vpop.xlane.xlu0 %2419 }
 0xc3d   : > { %v2421_v31 = vcvt.f32.s32 %v2420_v52  ;;  %vm2485_vm4 = vcmp.eq.s32.totalorder %v4560_v12, %v2379_v23 }
 0xc3e   : > { %v5603_v14 = vsel %vm2485_vm4, -1e+30, %v5527_v3  ;;  %v2437_v3 = vcvt.f32.s32 %v5582_v29  ;;  %v3932_v28 = vsel %vm2485_vm4, 1.0, %v6419_v56  ;;  %v3934_v29 = vsel %vm2487_vm3, 1.0, %v6419_v56 }
 0xc3f   : > { %v2424_v22 = vadd.s32 %v2423_v19, %v2421_v31  ;;  %v2598_v55 = vsel %vm859_vm2, %v5603_v14, -inf }
 0xc40   : > { %2599 = vmax.xlane.f32.xlu0 %v2598_v55  ;;  %v2390_v26 = vpop.xlane.xlu0 %2389  ;;  %v2438_v6 = vshll.u32 %v2437_v3, 16 }
 0xc41   : > { %v2391_v9 = vcvt.f32.s32 %v2390_v26  ;;  %vm2488_vm5 = vcmp.eq.s32.totalorder %v4560_v12, %v2424_v22 }
 0xc42   : > { %v5609_v15 = vsel %vm2488_vm5, -1e+30, %v5531_v13  ;;  %v3935_v40 = vsel %vm2488_vm5, 1.0, %v6419_v56 }
 0xc43   : > { %v2394_v37 = vadd.s32 %v2393_v2, %v2391_v9  ;;  %v2607_v58 = vsel %vm859_vm2, %v5609_v15, -inf  ;;  %v2510_v36 = vpack.c.bf16 %v3935_v40, %v3934_v29 }
 0xc44   : > { %2608 = vmax.xlane.f32.xlu0 %v2607_v58  ;;  %v2465_v34 = vpop.xlane.xlu0 %2464 }
 0xc45   : > { %vm2486_vm6 = vcmp.eq.s32.totalorder %v4560_v12, %v2394_v37 }
 0xc46   : > { %v5620_v62 = vsel %vm2486_vm6, -1e+30, %v5535_v7  ;;  %v3933_v13 = vsel %vm2486_vm6, 1.0, %v6419_v56  ;;  %v2466_v7 = vcvt.f32.s32 %v2465_v34 }
 0xc47   : > { %v2601_v25 = vsel %vm859_vm2, %v5620_v62, -inf  ;;  %v2509_v44 = vpack.c.bf16 %v3933_v13, %v3932_v28 }
 0xc48   : > { %v2435_v50 = vpop.xlane.xlu1 %2434  ;;  %2602 = vmax.xlane.f32.xlu0 %v2601_v25  ;;  %v2469_v32 = vadd.s32 %v2468_v39, %v2466_v7 }
 0xc49   : > { %v2436_v1 = vcvt.f32.s32 %v2435_v50  ;;  %4220 = vmatprep.mubr.msk.bf16.mxu0 %vm859_vm2, %v2509_v44 }
 0xc4a   : > { %4221 = vmatmul.mubr.msk.bf16.vlgmr.msra.gmra.mrb[16].mxu0 %vm859_vm2, %v2510_v36  ;;  %vm2491_vm9 = vcmp.eq.s32.totalorder %v4560_v12, %v2469_v32 }
 0xc4b   : > { %v2439_v33 = vadd.s32 %v2438_v6, %v2436_v1  ;;  %4229 = vmatpush3.bf16.msra.mxu0 %v5482_v59  ;;  %v5655_v31 = vsel %vm2491_vm9, -1e+30, %v5539_v17  ;;  %v3938_v22 = vsel %vm2491_vm9, 1.0, %v6419_v56 }
 0xc4c   : > { %4230 = vmatprep.subr.bf16.mxu0 %v5486_v60  ;;  %v2450_v5 = vpop.xlane.xlu0 %2449  ;;  %v2616_v26 = vsel %vm859_vm2, %v5655_v31, -inf }
 0xc4d   : > { %vm2489_vm7 = vcmp.eq.s32.totalorder %v4560_v12, %v2439_v33  ;;  %v2451_v41 = vcvt.f32.s32 %v2450_v5 }
 0xc4e   : > { %v5637_v54 = vsel %vm2489_vm7, -1e+30, %v5543_v47  ;;  %v3936_v49 = vsel %vm2489_vm7, 1.0, %v6419_v56 }
 0xc4f   : > { %v2454_v45 = vadd.s32 %v2453_v0, %v2451_v41  ;;  %4231 = vmatpush3.bf16.msra.mxu0 %v5486_v60  ;;  %v2610_v4 = vsel %vm859_vm2, %v5637_v54, -inf }
 0xc50   : > { %4232 = vmatprep.subr.bf16.mxu0 %v5506_v61  ;;  %2611 = vmax.xlane.f32.xlu0 %v2610_v4  ;;  %v2480_v27 = vpop.xlane.xlu0 %2479 }
 0xc51   : > { %v2481_v23 = vcvt.f32.s32 %v2480_v27  ;;  %vm2490_vm8 = vcmp.eq.s32.totalorder %v4560_v12, %v2454_v45 }
 0xc52   : > { %v5647_v47 = vsel %vm2490_vm8, -1e+30, %v5547_v51  ;;  %v3937_v63 = vsel %vm2490_vm8, 1.0, %v6419_v56 }
 0xc53   : > { %v2484_v52 = vadd.s32 %v2483_v42, %v2481_v23  ;;  %4233 = vmatpush3.bf16.msra.mxu0 %v5506_v61  ;;  %v2613_v19 = vsel %vm859_vm2, %v5647_v47, -inf  ;;  %v2511_v11 = vpack.c.bf16 %v3937_v63, %v3936_v49 }
 0xc54   : > { %4234 = vmatprep.subr.bf16.mxu0 %v5510_v24  ;;  %2614 = vmax.xlane.f32.xlu0 %v2613_v19 }
 0xc55   : > { %vm2492_vm10 = vcmp.eq.s32.totalorder %v4560_v12, %v2484_v52  ;;  %4224 = vmatprep.mubr.msk.bf16.mxu0 %vm859_vm2, %v2511_v11 }
 0xc56   : > { %v3939_v51 = vsel %vm2492_vm10, 1.0, %v6419_v56  ;;  %v5662_v55 = vsel %vm2492_vm10, -1e+30, %v5551_v57 }
 0xc57   : > { %4235 = vmatpush3.bf16.msra.mxu0 %v5510_v24  ;;  %v2512_v2 = vpack.c.bf16 %v3939_v51, %v3938_v22  ;;  %v2619_v17 = vsel %vm859_vm2, %v5662_v55, -inf }
 0xc58   : > { %4260 = vmatprep.subr.bf16.mxu0 %v5482_v59  ;;  %2617 = vmax.xlane.f32.xlu0 %v2616_v26 }
 0xc59   : > { %2620 = vmax.xlane.f32.xlu1 %v2619_v17  ;;  %4225 = vmatmul.mubr.msk.bf16.gmra.mrb[20].mxu0 %vm859_vm2, %v2512_v2 }
 0xcc9   : > { %v2606_v9 = vpop.xlane.xlu0 %2605 }
 0xcca   : > { %vm2624_vm11 = vcmp.ge.f32.partialorder %v5595_v53, %v2606_v9 }
 0xccb   : > { %v2632_v57 = vsel %vm2624_vm11, %v4560_v12, 64 }
 0xccc   : > { %v5676_v3 = vsel %vm859_vm2, %v2632_v57, 2147483647 }
 0xccd   : > { %v2600_v37 = vpop.xlane.xlu0 %2599  ;;  %v2670_v13 = vshra.s32 %v5676_v3, 16 }
 0xcce   : > { %vm2622_vm12 = vcmp.ge.f32.partialorder %v5603_v14, %v2600_v37 }
 0xccf   : > { %v2630_v58 = vsel %vm2622_vm12, %v4560_v12, 64  ;;  %v2672_v18 = vcvt.s32.f32 %v2670_v13 }
 0xcd0   : > { %v2638_v40 = vsel %vm859_vm2, %v2630_v58, 2147483647 }
 0xcd1   : > { %v2640_v28 = vshra.s32 %v2638_v40, 16  ;;  %v2609_v34 = vpop.xlane.xlu0 %2608 }
 0xcd2   : > { %vm2625_vm13 = vcmp.ge.f32.partialorder %v5609_v15, %v2609_v34 }
 0xcd3   : > { %v2642_v20 = vcvt.s32.f32 %v2640_v28  ;;  %v2633_v29 = vsel %vm2625_vm13, %v4560_v12, 64 }
 0xcd4   : > { %v5685_v36 = vsel %vm859_vm2, %v2633_v29, 2147483647  ;;  %v2639_v29 = vand.u32 65535, %v2638_v40 }
 0xcd5   : > { %2643 = vmin.xlane.f32.xlu0 %v2642_v20  ;;  %v2603_v25 = vpop.xlane.xlu0 %2602  ;;  %v2685_v7 = vshra.s32 %v5685_v36, 16 }
 0xcd6   : > { %vm2623_vm14 = vcmp.ge.f32.partialorder %v5620_v62, %v2603_v25  ;;  %v2669_v25 = vand.u32 65535, %v5676_v3 }
 0xcd7   : > { %v2631_v44 = vsel %vm2623_vm14, %v4560_v12, 64  ;;  %v2687_v0 = vcvt.s32.f32 %v2685_v7 }
 0xcd8   : > { %v2653_v50 = vsel %vm859_vm2, %v2631_v44, 2147483647 }
 0xcd9   : > { %v2655_v6 = vshra.s32 %v2653_v50, 16  ;;  %2673 = vmin.xlane.f32.xlu0 %v2672_v18 }
 0xcdb   : > { %v2657_v1 = vcvt.s32.f32 %v2655_v6  ;;  %v2641_v6 = vcvt.s32.f32 %v2639_v29 }
 0xcdd   : > { %2658 = vmin.xlane.f32.xlu1 %v2657_v1  ;;  %v2612_v39 = vpop.xlane.xlu0 %2611 }
 0xcde   : > { %vm2626_vm15 = vcmp.ge.f32.partialorder %v5637_v54, %v2612_v39  ;;  %v2654_v39 = vand.u32 65535, %v2653_v50 }
 0xcdf   : > { %v2634_v33 = vsel %vm2626_vm15, %v4560_v12, 64 }
 0xce0   : > { %v2698_v5 = vsel %vm859_vm2, %v2634_v33, 2147483647 }
 0xce1   : > { %v2700_v8 = vshra.s32 %v2698_v5, 16  ;;  %2688 = vmin.xlane.f32.xlu1 %v2687_v0  ;;  %v2615_v32 = vpop.xlane.xlu0 %2614  ;;  %v2699_v40 = vand.u32 65535, %v2698_v5 }
 0xce2   : > { %vm2627_vm0 = vcmp.ge.f32.partialorder %v5647_v47, %v2615_v32 }
 0xce3   : > { %v2635_v41 = vsel %vm2627_vm0, %v4560_v12, 64  ;;  %v2702_v45 = vcvt.s32.f32 %v2700_v8  ;;  %v2671_v8 = vcvt.s32.f32 %v2669_v25 }
 0xce4   : > { %v2713_v4 = vsel %vm859_vm2, %v2635_v41, 2147483647  ;;  %v2684_v41 = vand.u32 65535, %v5685_v36 }
 0xce5   : > { %v2715_v27 = vshra.s32 %v2713_v4, 16  ;;  %2703 = vmin.xlane.f32.xlu0 %v2702_v45  ;;  %v2618_v42 = vpop.xlane.xlu0 %2617 }
 0xce6   : > { %v2621_v23 = vpop.xlane.xlu1 %2620  ;;  %vm2628_vm1 = vcmp.ge.f32.partialorder %v5655_v31, %v2618_v42  ;;  %v2656_v42 = vcvt.s32.f32 %v2654_v39 }
 0xce7   : > { %vm2629_vm3 = vcmp.ge.f32.partialorder %v5662_v55, %v2621_v23  ;;  %v2636_v49 = vsel %vm2628_vm1, %v4560_v12, 64  ;;  %v2717_v63 = vcvt.s32.f32 %v2715_v27 }
 0xce8   : > { %v2637_v52 = vsel %vm2629_vm3, %v4560_v12, 64  ;;  %v2728_v19 = vsel %vm859_vm2, %v2636_v49, 2147483647  ;;  %v2686_v49 = vcvt.s32.f32 %v2684_v41 }
 0xce9   : > { %v2743_v11 = vsel %vm859_vm2, %v2637_v52, 2147483647  ;;  %v2730_v51 = vshra.s32 %v2728_v19, 16  ;;  %2718 = vmin.xlane.f32.xlu1 %v2717_v63  ;;  %v2714_v52 = vand.u32 65535, %v2713_v4 }
 0xcea   : > { %v2745_v22 = vshra.s32 %v2743_v11, 16  ;;  %v2744_v25 = vand.u32 65535, %v2743_v11 }
 0xceb   : > { %v2732_v26 = vcvt.s32.f32 %v2730_v51  ;;  %v2701_v51 = vcvt.s32.f32 %v2699_v40  ;;  %v2716_v36 = vcvt.s32.f32 %v2714_v52 }
 0xcec   : > { %v2747_v2 = vcvt.s32.f32 %v2745_v22  ;;  %v2729_v22 = vand.u32 65535, %v2728_v19  ;;  %v2746_v4 = vcvt.s32.f32 %v2744_v25 }
 0xced   : > { %2733 = vmin.xlane.f32.xlu0 %v2732_v26 }
 0xcee   : > { %2748 = vmin.xlane.f32.xlu1 %v2747_v2 }
 0xd1d   : > { %v5701_v17 = vpop.f32.mrb[16].mxu0 }
 0xd1e   : > { %v5703_v9 = vpop.f32.mrb[17].mxu0 }
 0xd1f   : > { %v5705_v57 = vpop.f32.mrb[18].mxu0 }
 0xd20   : > { %v5707_v37 = vpop.f32.mrb[19].mxu0 }
 0xd2c   : > { %v5709_v58 = vpop.f32.mrb[20].mxu0 }
 0xd2d   : > { %v5711_v28 = vpop.f32.mrb[21].mxu0 }
 0xd2e   : > { %v5713_v34 = vpop.f32.mrb[22].mxu0 }
 0xd2f   : > { %v5715_v13 = vpop.f32.mrb[23].mxu0 }
 0xd62   : > { %v2644_v44 = vpop.xlane.xlu0 %2643 }
 0xd63   : > { %vm2645_vm4 = vcmp.eq.f32.partialorder %v2642_v20, %v2644_v44 }
 0xd64   : > { %v2646_v7 = vsel %vm2645_vm4, %v2641_v6, inf }
 0xd65   : > { %2647 = vmin.xlane.f32.xlu0 %v2646_v7  ;;  %v2650_v7 = vcvt.f32.s32 %v2644_v44 }
 0xd66   : > { %v2674_v33 = vpop.xlane.xlu0 %2673 }
 0xd67   : > { %vm2675_vm5 = vcmp.eq.f32.partialorder %v2672_v18, %v2674_v33  ;;  %v2651_v39 = vshll.u32 %v2650_v7, 16 }
 0xd68   : > { %v2676_v32 = vsel %vm2675_vm5, %v2671_v8, inf }
 0xd69   : > { %2677 = vmin.xlane.f32.xlu0 %v2676_v32 }
 0xd6a   : > { %v2659_v27 = vpop.xlane.xlu1 %2658 }
 0xd6b   : > { %vm2660_vm6 = vcmp.eq.f32.partialorder %v2657_v1, %v2659_v27 }
 0xd6c   : > { %v2661_v23 = vsel %vm2660_vm6, %v2656_v42, inf }
 0xd6d   : > { %2662 = vmin.xlane.f32.xlu1 %v2661_v23  ;;  %v2665_v23 = vcvt.f32.s32 %v2659_v27 }
 0xd6e   : > { %v2689_v3 = vpop.xlane.xlu1 %2688 }
 0xd6f   : > { %vm2690_vm7 = vcmp.eq.f32.partialorder %v2687_v0, %v2689_v3  ;;  %v2731_v0 = vcvt.s32.f32 %v2729_v22 }
 0xd70   : > { %v2691_v20 = vsel %vm2690_vm7, %v2686_v49, inf }
 0xd71   : > { %2692 = vmin.xlane.f32.xlu1 %v2691_v20  ;;  %v2695_v20 = vcvt.f32.s32 %v2689_v3 }
 0xd72   : > { %v2704_v50 = vpop.xlane.xlu0 %2703 }
 0xd73   : > { %vm2705_vm8 = vcmp.eq.f32.partialorder %v2702_v45, %v2704_v50  ;;  %v2696_v22 = vshll.u32 %v2695_v20, 16 }
 0xd74   : > { %v2706_v18 = vsel %vm2705_vm8, %v2701_v51, inf }
 0xd75   : > { %2707 = vmin.xlane.f32.xlu0 %v2706_v18 }
 0xd76   : > { %v5719_v29 = vpop.xlane.xlu1 %2718 }
 0xd77   : > { %vm2720_vm9 = vcmp.eq.f32.partialorder %v2717_v63, %v5719_v29  ;;  %v2680_v63 = vcvt.f32.s32 %v2674_v33  ;;  %v2666_v33 = vshll.u32 %v2665_v23, 16 }
 0xd78   : > { %v2721_v1 = vsel %vm2720_vm9, %v2716_v36, inf  ;;  %v2710_v36 = vcvt.f32.s32 %v2704_v50 }
 0xd79   : > { %2722 = vmin.xlane.f32.xlu1 %v2721_v1  ;;  %v2681_v42 = vshll.u32 %v2680_v63, 16 }
 0xd7a   : > { %v5722_v5 = vpop.xlane.xlu0 %2733  ;;  %v2711_v7 = vshll.u32 %v2710_v36, 16 }
 0xd7b   : > { %v5724_v6 = vpop.xlane.xlu1 %2748  ;;  %vm2735_vm10 = vcmp.eq.f32.partialorder %v2732_v26, %v5722_v5 }
 0xd7c   : > { %vm2750_vm11 = vcmp.eq.f32.partialorder %v2747_v2, %v5724_v6  ;;  %v2736_v45 = vsel %vm2735_vm10, %v2731_v0, inf  ;;  %v2755_v23 = vcvt.f32.s32 %v5724_v6 }
 0xd7d   : > { %v2751_v19 = vsel %vm2750_vm11, %v2746_v4, inf  ;;  %2737 = vmin.xlane.f32.xlu0 %v2736_v45 }
 0xd7e   : > { %2752 = vmin.xlane.f32.xlu1 %v2751_v19  ;;  %v2725_v19 = vcvt.f32.s32 %v5719_v29 }
 0xdf2   : > { %v2648_v11 = vpop.xlane.xlu0 %2647 }
 0xdf3   : > { %v2649_v8 = vcvt.f32.s32 %v2648_v11 }
 0xdf5   : > { %v2652_v32 = vadd.s32 %v2651_v39, %v2649_v8 }
 0xdf6   : > { %v2678_v41 = vpop.xlane.xlu0 %2677 }
 0xdf7   : > { %vm2758_vm12 = vcmp.eq.s32.totalorder %v4560_v12, %v2652_v32  ;;  %v2679_v40 = vcvt.f32.s32 %v2678_v41  ;;  %v2726_v41 = vshll.u32 %v2725_v19, 16 }
 0xdf8   : > { %v5732_v26 = vsel %vm2758_vm12, -1e+30, %v5603_v14  ;;  %v3944_v3 = vsel %vm2758_vm12, 1.0, %v6419_v56 }
 0xdf9   : > { %v2682_v2 = vadd.s32 %v2681_v42, %v2679_v40  ;;  %v2879_v44 = vsel %vm859_vm2, %v5732_v26, -inf  ;;  %v2740_v40 = vcvt.f32.s32 %v5722_v5 }
 0xdfa   : > { %v2663_v49 = vpop.xlane.xlu1 %2662  ;;  %2880 = vmax.xlane.f32.xlu0 %v2879_v44 }
 0xdfb   : > { %vm2760_vm13 = vcmp.eq.s32.totalorder %v4560_v12, %v2682_v2  ;;  %v2664_v52 = vcvt.f32.s32 %v2663_v49  ;;  %v2741_v5 = vshll.u32 %v2740_v40, 16 }
 0xdfc   : > { %v5740_v27 = vsel %vm2760_vm13, -1e+30, %v5595_v53 }
 0xdfd   : > { %v2667_v51 = vadd.s32 %v2666_v33, %v2664_v52  ;;  %v2885_v14 = vsel %vm859_vm2, %v5740_v27, -inf  ;;  %v2756_v33 = vshll.u32 %v2755_v23, 16 }
 0xdfe   : > { %v2693_v18 = vpop.xlane.xlu1 %2692  ;;  %2886 = vmax.xlane.f32.xlu0 %v2885_v14 }
 0xdff   : > { %vm2759_vm14 = vcmp.eq.s32.totalorder %v4560_v12, %v2667_v51  ;;  %v2694_v25 = vcvt.f32.s32 %v2693_v18 }
 0xe00   : > { %v3945_v1 = vsel %vm2759_vm14, 1.0, %v6419_v56  ;;  %v5750_v53 = vsel %vm2759_vm14, -1e+30, %v5620_v62  ;;  %v3946_v62 = vsel %vm2760_vm13, 1.0, %v6419_v56 }
 0xe01   : > { %v2782_v0 = vpack.c.bf16 %v3945_v1, %v3944_v3  ;;  %v2697_v4 = vadd.s32 %v2696_v22, %v2694_v25  ;;  %v2882_v45 = vsel %vm859_vm2, %v5750_v53, -inf }
 0xe02   : > { %2883 = vmax.xlane.f32.xlu1 %v2882_v45  ;;  %v2708_v50 = vpop.xlane.xlu0 %2707 }
 0xe03   : > { %vm2761_vm15 = vcmp.eq.s32.totalorder %v4560_v12, %v2697_v4  ;;  %v2709_v11 = vcvt.f32.s32 %v2708_v50  ;;  %4236 = vmatprep.mubr.msk.bf16.mxu0 %vm859_vm2, %v2782_v0 }
 0xe04   : > { %v3947_v39 = vsel %vm2761_vm15, 1.0, %v6419_v56  ;;  %v5762_v63 = vsel %vm2761_vm15, -1e+30, %v5609_v15 }
 0xe05   : > { %v2783_v8 = vpack.c.bf16 %v3947_v39, %v3946_v62  ;;  %v2712_v32 = vadd.s32 %v2711_v7, %v2709_v11  ;;  %v2888_v29 = vsel %vm859_vm2, %v5762_v63, -inf }
 0xe06   : > { %2889 = vmax.xlane.f32.xlu1 %v2888_v29  ;;  %v2723_v42 = vpop.xlane.xlu1 %2722 }
 0xe07   : > { %vm2762_vm0 = vcmp.eq.s32.totalorder %v4560_v12, %v2712_v32  ;;  %v2724_v2 = vcvt.f32.s32 %v2723_v42  ;;  %4237 = vmatmul.mubr.msk.bf16.vlgmr.msra.gmra.mrb[24].mxu0 %vm859_vm2, %v2783_v8 }
 0xe08   : > { %4261 = vmatpush3.bf16.msra.mxu0 %v5482_v59  ;;  %v5772_v15 = vsel %vm2762_vm0, -1e+30, %v5637_v54  ;;  %v3948_v51 = vsel %vm2762_vm0, 1.0, %v6419_v56 }
 0xe09   : > { %v2727_v44 = vadd.s32 %v2726_v41, %v2724_v2  ;;  %4262 = vmatprep.subr.bf16.mxu0 %v5486_v60  ;;  %v2891_v49 = vsel %vm859_vm2, %v5772_v15, -inf }
 0xe0a   : > { %2892 = vmax.xlane.f32.xlu0 %v2891_v49  ;;  %v2738_v6 = vpop.xlane.xlu0 %2737 }
 0xe0b   : > { %vm2763_vm1 = vcmp.eq.s32.totalorder %v4560_v12, %v2727_v44  ;;  %v2753_v20 = vpop.xlane.xlu1 %2752  ;;  %v2739_v52 = vcvt.f32.s32 %v2738_v6 }
 0xe0c   : > { %v3949_v59 = vsel %vm2763_vm1, 1.0, %v6419_v56  ;;  %v2754_v54 = vcvt.f32.s32 %v2753_v20  ;;  %4263 = vmatpush3.bf16.msra.mxu0 %v5486_v60  ;;  %v5782_v14 = vsel %vm2763_vm1, -1e+30, %v5647_v47 }
 0xe0d   : > { %v2784_v18 = vpack.c.bf16 %v3949_v59, %v3948_v51  ;;  %v2742_v22 = vadd.s32 %v2741_v5, %v2739_v52  ;;  %4264 = vmatprep.subr.bf16.mxu0 %v5506_v61  ;;  %v2894_v36 = vsel %vm859_vm2, %v5782_v14, -inf }
 0xe0e   : > { %v2757_v25 = vadd.s32 %v2756_v33, %v2754_v54  ;;  %2895 = vmax.xlane.f32.xlu1 %v2894_v36 }
 0xe0f   : > { %vm2764_vm3 = vcmp.eq.s32.totalorder %v4560_v12, %v2742_v22  ;;  %4240 = vmatprep.mubr.msk.bf16.mxu0 %vm859_vm2, %v2784_v18 }
 0xe10   : > { %vm2765_vm4 = vcmp.eq.s32.totalorder %v4560_v12, %v2757_v25  ;;  %v3950_v60 = vsel %vm2764_vm3, 1.0, %v6419_v56  ;;  %4265 = vmatpush3.bf16.msra.mxu0 %v5506_v61  ;;  %v5793_v47 = vsel %vm2764_vm3, -1e+30, %v5655_v31 }
 0xe11   : > { %v3951_v3 = vsel %vm2765_vm4, 1.0, %v6419_v56  ;;  %4266 = vmatprep.subr.bf16.mxu0 %v5510_v24  ;;  %v5798_v1 = vsel %vm2765_vm4, -1e+30, %v5662_v55  ;;  %v2897_v0 = vsel %vm859_vm2, %v5793_v47, -inf }
 0xe12   : > { %v2785_v4 = vpack.c.bf16 %v3951_v3, %v3950_v60  ;;  %v2900_v45 = vsel %vm859_vm2, %v5798_v1, -inf  ;;  %2898 = vmax.xlane.f32.xlu0 %v2897_v0 }
 0xe13   : > { %2901 = vmax.xlane.f32.xlu1 %v2900_v45 }
 0xe14   : > { %4241 = vmatmul.mubr.msk.bf16.gmra.mrb[28].mxu0 %vm859_vm2, %v2785_v4 }
 0xe15   : > { %4267 = vmatpush3.bf16.msra.mxu0 %v5510_v24 }
 0xe87   : > { %v2881_v61 = vpop.xlane.xlu0 %2880 }
 0xe88   : > { %vm2903_vm5 = vcmp.ge.f32.partialorder %v5732_v26, %v2881_v61 }
 0xe89   : > { %v2911_v31 = vsel %vm2903_vm5, %v4560_v12, 64 }
 0xe8a   : > { %v5809_v55 = vsel %vm859_vm2, %v2911_v31, 2147483647 }
 0xe8b   : > { %v2921_v19 = vshra.s32 %v5809_v55, 16  ;;  %v2887_v50 = vpop.xlane.xlu0 %2886 }
 0xe8c   : > { %vm2905_vm6 = vcmp.ge.f32.partialorder %v5740_v27, %v2887_v50 }
 0xe8d   : > { %v2913_v7 = vsel %vm2905_vm6, %v4560_v12, 64  ;;  %v5814_v11 = vcvt.s32.f32 %v2921_v19 }
 0xe8e   : > { %v5817_v62 = vsel %vm859_vm2, %v2913_v7, 2147483647 }
 0xe8f   : > { %v2951_v24 = vshra.s32 %v5817_v62, 16  ;;  %v2884_v39 = vpop.xlane.xlu1 %2883  ;;  %2924 = vmin.xlane.f32.xlu0 %v5814_v11 }
 0xe90   : > { %vm2904_vm7 = vcmp.ge.f32.partialorder %v5750_v53, %v2884_v39 }
 0xe91   : > { %v2912_v8 = vsel %vm2904_vm7, %v4560_v12, 64  ;;  %v5823_v32 = vcvt.s32.f32 %v2951_v24 }
 0xe92   : > { %v5826_v29 = vsel %vm859_vm2, %v2912_v8, 2147483647 }
 0xe93   : > { %v2936_v41 = vshra.s32 %v5826_v29, 16  ;;  %v2890_v42 = vpop.xlane.xlu1 %2889  ;;  %2954 = vmin.xlane.f32.xlu0 %v5823_v32 }
 0xe94   : > { %vm2906_vm8 = vcmp.ge.f32.partialorder %v5762_v63, %v2890_v42 }
 0xe95   : > { %v2914_v23 = vsel %vm2906_vm8, %v4560_v12, 64  ;;  %v5832_v40 = vcvt.s32.f32 %v2936_v41 }
 0xe96   : > { %v5835_v2 = vsel %vm859_vm2, %v2914_v23, 2147483647 }
 0xe97   : > { %v2966_v44 = vshra.s32 %v5835_v2, 16  ;;  %2939 = vmin.xlane.f32.xlu1 %v5832_v40  ;;  %v2893_v49 = vpop.xlane.xlu0 %2892 }
 0xe98   : > { %vm2907_vm9 = vcmp.ge.f32.partialorder %v5772_v15, %v2893_v49 }
 0xe99   : > { %v2915_v6 = vsel %vm2907_vm9, %v4560_v12, 64  ;;  %v5841_v33 = vcvt.s32.f32 %v2966_v44 }
 0xe9a   : > { %v5844_v5 = vsel %vm859_vm2, %v2915_v6, 2147483647 }
 0xe9b   : > { %v2981_v20 = vshra.s32 %v5844_v5, 16  ;;  %2969 = vmin.xlane.f32.xlu1 %v5841_v33  ;;  %v2896_v52 = vpop.xlane.xlu1 %2895 }
 0xe9c   : > { %vm2908_vm10 = vcmp.ge.f32.partialorder %v5782_v14, %v2896_v52 }
 0xe9d   : > { %v2916_v51 = vsel %vm2908_vm10, %v4560_v12, 64  ;;  %v5850_v59 = vcvt.s32.f32 %v2981_v20  ;;  %v2935_v20 = vand.u32 65535, %v5826_v29 }
 0xe9e   : > { %v5853_v54 = vsel %vm859_vm2, %v2916_v51, 2147483647 }
 0xe9f   : > { %v2996_v18 = vshra.s32 %v5853_v54, 16  ;;  %2984 = vmin.xlane.f32.xlu0 %v5850_v59  ;;  %v2899_v22 = vpop.xlane.xlu0 %2898 }
 0xea0   : > { %v2902_v36 = vpop.xlane.xlu1 %2901  ;;  %vm2909_vm11 = vcmp.ge.f32.partialorder %v5793_v47, %v2899_v22  ;;  %v2965_v22 = vand.u32 65535, %v5835_v2 }
 0xea1   : > { %vm2910_vm12 = vcmp.ge.f32.partialorder %v5798_v1, %v2902_v36  ;;  %v2917_v25 = vsel %vm2909_vm11, %v4560_v12, 64  ;;  %v5860_v60 = vcvt.s32.f32 %v2996_v18  ;;  %v2920_v36 = vand.u32 65535, %v5809_v55 }
 0xea2   : > { %v2918_v3 = vsel %vm2910_vm12, %v4560_v12, 64  ;;  %v5864_v0 = vsel %vm859_vm2, %v2917_v25, 2147483647  ;;  %v2950_v25 = vand.u32 65535, %v5817_v62  ;;  %v2937_v55 = vcvt.s32.f32 %v2935_v20 }
 0xea3   : > { %v5867_v4 = vsel %vm859_vm2, %v2918_v3, 2147483647  ;;  %v3011_v45 = vshra.s32 %v5864_v0, 16  ;;  %2999 = vmin.xlane.f32.xlu1 %v5860_v60 }
 0xea4   : > { %v3026_v61 = vshra.s32 %v5867_v4, 16  ;;  %v2952_v23 = vcvt.s32.f32 %v2950_v25 }
 0xea5   : > { %v5872_v31 = vcvt.s32.f32 %v3011_v45  ;;  %v2922_v45 = vcvt.s32.f32 %v2920_v36 }
 0xea6   : > { %v5874_v19 = vcvt.s32.f32 %v3026_v61 }
 0xea7   : > { %3014 = vmin.xlane.f32.xlu0 %v5872_v31 }
 0xea8   : > { %3029 = vmin.xlane.f32.xlu1 %v5874_v19 }
 0xeda   : > { %v5878_v50 = vpop.f32.mrb[24].mxu0 }
 0xedb   : > { %v2865_v7 = vmax.f32 %v5701_v17, %v5878_v50  ;;  %v5882_v24 = vpop.f32.mrb[25].mxu0 }
 0xedc   : > { %v2863_v39 = vmax.f32 %v5703_v9, %v5882_v24  ;;  %v5886_v8 = vpop.f32.mrb[26].mxu0 }
 0xedd   : > { %v5890_v42 = vpop.f32.mrb[27].mxu0 }
 0xee7   : > { %v5894_v44 = vpop.f32.mrb[28].mxu0 }
 0xee8   : > { %v5898_v6 = vpop.f32.mrb[29].mxu0  ;;  %v6423_v50 = vmax.f32 %v5709_v58, %v5894_v44 }
 0xee9   : > { %v5902_v52 = vpop.f32.mrb[30].mxu0  ;;  %v6424_v24 = vmax.f32 %v5711_v28, %v5898_v6 }
 0xeea   : > { %v5906_v18 = vpop.f32.mrb[31].mxu0 }
 0xf1c   : > { %v2925_v3 = vpop.xlane.xlu0 %2924 }
 0xf1d   : > { %vm2926_vm13 = vcmp.eq.f32.partialorder %v5814_v11, %v2925_v3  ;;  %v2980_v11 = vand.u32 65535, %v5844_v5  ;;  %v3025_v5 = vand.u32 65535, %v5867_v4  ;;  %v2931_v4 = vcvt.f32.s32 %v2925_v3 }
 0xf1e   : > { %v2927_v61 = vsel %vm2926_vm13, %v2922_v45, inf  ;;  %v2967_v45 = vcvt.s32.f32 %v2965_v22 }
 0xf1f   : > { %2928 = vmin.xlane.f32.xlu0 %v2927_v61 }
 0xf20   : > { %v2955_v49 = vpop.xlane.xlu0 %2954 }
 0xf21   : > { %vm2956_vm14 = vcmp.eq.f32.partialorder %v5823_v32, %v2955_v49  ;;  %v2995_v32 = vand.u32 65535, %v5853_v54 }
 0xf22   : > { %v2957_v51 = vsel %vm2956_vm14, %v2952_v23, inf }
 0xf23   : > { %2958 = vmin.xlane.f32.xlu0 %v2957_v51  ;;  %v2982_v51 = vcvt.s32.f32 %v2980_v11  ;;  %v2997_v25 = vcvt.s32.f32 %v2995_v32  ;;  %v2961_v11 = vcvt.f32.s32 %v2955_v49 }
 0xf24   : > { %v2940_v41 = vpop.xlane.xlu1 %2939 }
 0xf25   : > { %vm2941_vm15 = vcmp.eq.f32.partialorder %v5832_v40, %v2940_v41  ;;  %v3010_v40 = vand.u32 65535, %v5864_v0 }
 0xf26   : > { %v2942_v62 = vsel %vm2941_vm15, %v2937_v55, inf }
 0xf27   : > { %2943 = vmin.xlane.f32.xlu1 %v2942_v62  ;;  %v3012_v54 = vcvt.s32.f32 %v3010_v40  ;;  %v2932_v62 = vshll.u32 %v2931_v4, 16 }
 0xf28   : > { %v2970_v36 = vpop.xlane.xlu1 %2969 }
 0xf29   : > { %vm2971_vm0 = vcmp.eq.f32.partialorder %v5841_v33, %v2970_v36 }
 0xf2a   : > { %v2972_v29 = vsel %vm2971_vm0, %v2967_v45, inf }
 0xf2b   : > { %2973 = vmin.xlane.f32.xlu1 %v2972_v29 }
 0xf2c   : > { %v2985_v23 = vpop.xlane.xlu0 %2984 }
 0xf2d   : > { %vm2986_vm1 = vcmp.eq.f32.partialorder %v5850_v59, %v2985_v23  ;;  %v3027_v59 = vcvt.s32.f32 %v3025_v5  ;;  %v2976_v5 = vcvt.f32.s32 %v2970_v36 }
 0xf2e   : > { %v2987_v2 = vsel %vm2986_vm1, %v2982_v51, inf  ;;  %v2962_v51 = vshll.u32 %v2961_v11, 16 }
 0xf2f   : > { %2988 = vmin.xlane.f32.xlu0 %v2987_v2  ;;  %v2946_v2 = vcvt.f32.s32 %v2940_v41 }
 0xf30   : > { %v5922_v20 = vpop.xlane.xlu1 %2999 }
 0xf31   : > { %vm3001_vm3 = vcmp.eq.f32.partialorder %v5860_v60, %v5922_v20  ;;  %v2947_v49 = vshll.u32 %v2946_v2, 16 }
 0xf32   : > { %v3002_v33 = vsel %vm3001_vm3, %v2997_v25, inf }
 0xf33   : > { %3003 = vmin.xlane.f32.xlu1 %v3002_v33 }
 0xf34   : > { %v5927_v22 = vpop.xlane.xlu0 %3014 }
 0xf35   : > { %v5929_v61 = vpop.xlane.xlu1 %3029  ;;  %vm3016_vm4 = vcmp.eq.f32.partialorder %v5872_v31, %v5927_v22 }
 0xf36   : > { %vm3031_vm5 = vcmp.eq.f32.partialorder %v5874_v19, %v5929_v61  ;;  %v3017_v0 = vsel %vm3016_vm4, %v3012_v54, inf }
 0xf37   : > { %v3032_v55 = vsel %vm3031_vm5, %v3027_v59, inf  ;;  %3018 = vmin.xlane.f32.xlu0 %v3017_v0  ;;  %v2977_v0 = vshll.u32 %v2976_v5, 16 }
 0xf38   : > { %3033 = vmin.xlane.f32.xlu1 %v3032_v55  ;;  %v2991_v55 = vcvt.f32.s32 %v2985_v23 }
 0xfac   : > { %v2929_v60 = vpop.xlane.xlu0 %2928 }
 0xfad   : > { %v2930_v45 = vcvt.f32.s32 %v2929_v60 }
 0xfaf   : > { %v2933_v29 = vadd.s32 %v2932_v62, %v2930_v45 }
 0xfb0   : > { %v2959_v32 = vpop.xlane.xlu0 %2958 }
 0xfb1   : > { %v2960_v40 = vcvt.f32.s32 %v2959_v32  ;;  %vm3039_vm6 = vcmp.eq.s32.totalorder %v4560_v12, %v2933_v29  ;;  %v3006_v32 = vcvt.f32.s32 %v5922_v20 }
 0xfb2   : > { %v5939_v31 = vsel %vm3039_vm6, -1e+30, %v5732_v26  ;;  %v3956_v36 = vsel %vm3039_vm6, 1.0, %v6419_v56 }
 0xfb3   : > { %v2963_v19 = vadd.s32 %v2962_v51, %v2960_v40  ;;  %v3160_v3 = vsel %vm859_vm2, %v5939_v31, -inf  ;;  %v2992_v51 = vshll.u32 %v2991_v55, 16 }
 0xfb4   : > { %v2944_v25 = vpop.xlane.xlu1 %2943  ;;  %3161 = vmax.xlane.f32.xlu0 %v3160_v3 }
 0xfb5   : > { %v2945_v33 = vcvt.f32.s32 %v2944_v25  ;;  %vm3041_vm7 = vcmp.eq.s32.totalorder %v4560_v12, %v2963_v19 }
 0xfb6   : > { %v5947_v41 = vsel %vm3041_vm7, -1e+30, %v5740_v27 }
 0xfb7   : > { %v2948_v54 = vadd.s32 %v2947_v49, %v2945_v33  ;;  %v3166_v26 = vsel %vm859_vm2, %v5947_v41, -inf  ;;  %v3007_v49 = vshll.u32 %v3006_v32, 16  ;;  %v3036_v33 = vcvt.f32.s32 %v5929_v61 }
 0xfb8   : > { %v2974_v59 = vpop.xlane.xlu1 %2973  ;;  %3167 = vmax.xlane.f32.xlu0 %v3166_v26 }
 0xfb9   : > { %v2975_v4 = vcvt.f32.s32 %v2974_v59  ;;  %vm3040_vm8 = vcmp.eq.s32.totalorder %v4560_v12, %v2948_v54  ;;  %v3021_v54 = vcvt.f32.s32 %v5927_v22  ;;  %v3037_v55 = vshll.u32 %v3036_v33, 16 }
 0xfba   : > { %v5956_v60 = vsel %vm3040_vm8, -1e+30, %v5750_v53  ;;  %v3957_v27 = vsel %vm3040_vm8, 1.0, %v6419_v56  ;;  %v3958_v53 = vsel %vm3041_vm7, 1.0, %v6419_v56 }
 0xfbb   : > { %v2978_v62 = vadd.s32 %v2977_v0, %v2975_v4  ;;  %v3163_v11 = vsel %vm859_vm2, %v5956_v60, -inf  ;;  %v3063_v45 = vpack.c.bf16 %v3957_v27, %v3956_v36  ;;  %v3022_v4 = vshll.u32 %v3021_v54, 16 }
 0xfbc   : > { %3164 = vmax.xlane.f32.xlu1 %v3163_v11  ;;  %v2989_v23 = vpop.xlane.xlu0 %2988 }
 0xfbd   : > { %v2990_v2 = vcvt.f32.s32 %v2989_v23  ;;  %4252 = vmatprep.mubr.msk.bf16.mxu1 %vm859_vm2, %v3063_v45  ;;  %vm3042_vm9 = vcmp.eq.s32.totalorder %v4560_v12, %v2978_v62 }
 0xfbe   : > { %v5968_v29 = vsel %vm3042_vm9, -1e+30, %v5762_v63  ;;  %v3959_v40 = vsel %vm3042_vm9, 1.0, %v6419_v56 }
 0xfbf   : > { %v2993_v3 = vadd.s32 %v2992_v51, %v2990_v2  ;;  %v3169_v20 = vsel %vm859_vm2, %v5968_v29, -inf  ;;  %v3064_v25 = vpack.c.bf16 %v3959_v40, %v3958_v53 }
 0xfc0   : > { %3170 = vmax.xlane.f32.xlu1 %v3169_v20  ;;  %v3004_v5 = vpop.xlane.xlu1 %3003 }
 0xfc1   : > { %v3005_v26 = vcvt.f32.s32 %v3004_v5  ;;  %4253 = vmatmul.mubr.msk.bf16.vlgmr.msra.gmra.mrb[40].mxu1 %vm859_vm2, %v3064_v25  ;;  %vm3043_vm10 = vcmp.eq.s32.totalorder %v4560_v12, %v2993_v3 }
 0xfc2   : > { %v3156_v63 = vsel %vm3043_vm10, -1e+30, %v5772_v15  ;;  %v3960_v22 = vsel %vm3043_vm10, 1.0, %v6419_v56 }
 0xfc3   : > { %v3008_v19 = vadd.s32 %v3007_v49, %v3005_v26  ;;  %v3172_v59 = vsel %vm859_vm2, %v3156_v63, -inf }
 0xfc4   : > { %3173 = vmax.xlane.f32.xlu0 %v3172_v59  ;;  %v3019_v0 = vpop.xlane.xlu0 %3018 }
 0xfc5   : > { %v3034_v36 = vpop.xlane.xlu1 %3033  ;;  %v3020_v27 = vcvt.f32.s32 %v3019_v0  ;;  %vm3044_vm11 = vcmp.eq.s32.totalorder %v4560_v12, %v3008_v19 }
 0xfc6   : > { %v3035_v61 = vcvt.f32.s32 %v3034_v36  ;;  %v3157_v62 = vsel %vm3044_vm11, -1e+30, %v5782_v14  ;;  %v3961_v11 = vsel %vm3044_vm11, 1.0, %v6419_v56 }
 0xfc7   : > { %v3023_v45 = vadd.s32 %v3022_v4, %v3020_v27  ;;  %v3175_v15 = vsel %vm859_vm2, %v3157_v62, -inf  ;;  %v3065_v32 = vpack.c.bf16 %v3961_v11, %v3960_v22 }
 0xfc8   : > { %v3038_v23 = vadd.s32 %v3037_v55, %v3035_v61  ;;  %3176 = vmax.xlane.f32.xlu1 %v3175_v15 }
 0xfc9   : > { %4256 = vmatprep.mubr.msk.bf16.mxu1 %vm859_vm2, %v3065_v32  ;;  %vm3045_vm12 = vcmp.eq.s32.totalorder %v4560_v12, %v3023_v45 }
 0xfca   : > { %vm3046_vm13 = vcmp.eq.s32.totalorder %v4560_v12, %v3038_v23  ;;  %v3158_v51 = vsel %vm3045_vm12, -1e+30, %v5793_v47  ;;  %v3962_v2 = vsel %vm3045_vm12, 1.0, %v6419_v56 }
 0xfcb   : > { %v3159_v14 = vsel %vm3046_vm13, -1e+30, %v5798_v1  ;;  %v3963_v53 = vsel %vm3046_vm13, 1.0, %v6419_v56  ;;  %v3178_v40 = vsel %vm859_vm2, %v3158_v51, -inf }
 0xfcc   : > { %v3181_v3 = vsel %vm859_vm2, %v3159_v14, -inf  ;;  %3179 = vmax.xlane.f32.xlu0 %v3178_v40  ;;  %v3066_v20 = vpack.c.bf16 %v3963_v53, %v3962_v2 }
 0xfcd   : > { %3182 = vmax.xlane.f32.xlu1 %v3181_v3 }
 0xfce   : > { %4257 = vmatmul.mubr.msk.bf16.gmra.mrb[44].mxu1 %vm859_vm2, %v3066_v20 }
0x1041   : > { %v3162_v25 = vpop.xlane.xlu0 %3161 }
0x1042   : > { %vm3184_vm14 = vcmp.ge.f32.partialorder %v5939_v31, %v3162_v25 }
0x1043   : > { %v3192_v47 = vsel %vm3184_vm14, %v4560_v12, 64 }
0x1044   : > { %v5997_v49 = vsel %vm859_vm2, %v3192_v47, 2147483647 }
0x1045   : > { %v3202_v1 = vshra.s32 %v5997_v49, 16  ;;  %v3168_v5 = vpop.xlane.xlu0 %3167  ;;  %v3201_v58 = vand.u32 65535, %v5997_v49 }
0x1046   : > { %vm3186_vm15 = vcmp.ge.f32.partialorder %v5947_v41, %v3168_v5 }
0x1047   : > { %v3194_v33 = vsel %vm3186_vm15, %v4560_v12, 64  ;;  %v6002_v54 = vcvt.s32.f32 %v3202_v1  ;;  %v3203_v28 = vcvt.s32.f32 %v3201_v58 }
0x1048   : > { %v6005_v26 = vsel %vm859_vm2, %v3194_v33, 2147483647 }
0x1049   : > { %v3232_v19 = vshra.s32 %v6005_v26, 16  ;;  %v3165_v31 = vpop.xlane.xlu1 %3164  ;;  %3205 = vmin.xlane.f32.xlu0 %v6002_v54  ;;  %v3231_v44 = vand.u32 65535, %v6005_v26 }
0x104a   : > { %vm3185_vm0 = vcmp.ge.f32.partialorder %v5956_v60, %v3165_v31 }
0x104b   : > { %v3193_v59 = vsel %vm3185_vm0, %v4560_v12, 64  ;;  %v6011_v0 = vcvt.s32.f32 %v3232_v19 }
0x104c   : > { %v6014_v41 = vsel %vm859_vm2, %v3193_v59, 2147483647 }
0x104d   : > { %v3217_v55 = vshra.s32 %v6014_v41, 16  ;;  %v3171_v4 = vpop.xlane.xlu1 %3170  ;;  %3235 = vmin.xlane.f32.xlu0 %v6011_v0 }
0x104e   : > { %vm3187_vm1 = vcmp.ge.f32.partialorder %v5968_v29, %v3171_v4 }
0x104f   : > { %v3195_v36 = vsel %vm3187_vm1, %v4560_v12, 64  ;;  %v6020_v27 = vcvt.s32.f32 %v3217_v55 }
0x1050   : > { %v6023_v60 = vsel %vm859_vm2, %v3195_v36, 2147483647  ;;  %v6421_v36 = vmax.f32 %v5705_v57, %v5886_v8  ;;  %v6425_v8 = vmax.f32 %v5713_v34, %v5902_v52  ;;  %v3216_v34 = vand.u32 65535, %v6014_v41 }
0x1051   : > { %v3247_v61 = vshra.s32 %v6023_v60, 16  ;;  %3220 = vmin.xlane.f32.xlu1 %v6020_v27  ;;  %v3174_v22 = vpop.xlane.xlu0 %3173 }
0x1052   : > { %vm3188_vm3 = vcmp.ge.f32.partialorder %v3156_v63, %v3174_v22  ;;  %v3218_v49 = vcvt.s32.f32 %v3216_v34 }
0x1053   : > { %v3196_v11 = vsel %vm3188_vm3, %v4560_v12, 64  ;;  %v6028_v45 = vcvt.s32.f32 %v3247_v61 }
0x1054   : > { %v6031_v15 = vsel %vm859_vm2, %v3196_v11, 2147483647  ;;  %v6422_v11 = vmax.f32 %v5707_v37, %v5890_v42  ;;  %v6426_v42 = vmax.f32 %v5715_v13, %v5906_v18  ;;  %v3246_v13 = vand.u32 65535, %v6023_v60 }
0x1055   : > { %v3262_v29 = vshra.s32 %v6031_v15, 16  ;;  %3250 = vmin.xlane.f32.xlu1 %v6028_v45  ;;  %v3177_v32 = vpop.xlane.xlu1 %3176 }
0x1056   : > { %vm3189_vm4 = vcmp.ge.f32.partialorder %v3157_v62, %v3177_v32 }
0x1057   : > { %v3197_v23 = vsel %vm3189_vm4, %v4560_v12, 64  ;;  %v6036_v2 = vcvt.s32.f32 %v3262_v29 }
0x1058   : > { %v6039_v53 = vsel %vm859_vm2, %v3197_v23, 2147483647 }
0x1059   : > { %v3277_v63 = vshra.s32 %v6039_v53, 16  ;;  %3265 = vmin.xlane.f32.xlu0 %v6036_v2  ;;  %v3180_v40 = vpop.xlane.xlu0 %3179 }
0x105a   : > { %v3183_v3 = vpop.xlane.xlu1 %3182  ;;  %vm3190_vm5 = vcmp.ge.f32.partialorder %v3158_v51, %v3180_v40  ;;  %v3233_v40 = vcvt.s32.f32 %v3231_v44 }
0x105b   : > { %vm3191_vm6 = vcmp.ge.f32.partialorder %v3159_v14, %v3183_v3  ;;  %v3198_v20 = vsel %vm3190_vm5, %v4560_v12, 64  ;;  %v6044_v25 = vcvt.s32.f32 %v3277_v63 }
0x105c   : > { %v3199_v62 = vsel %vm3191_vm6, %v4560_v12, 64  ;;  %v6048_v47 = vsel %vm859_vm2, %v3198_v20, 2147483647 }
0x105d   : > { %v6051_v1 = vsel %vm859_vm2, %v3199_v62, 2147483647  ;;  %v3292_v5 = vshra.s32 %v6048_v47, 16  ;;  %3280 = vmin.xlane.f32.xlu1 %v6044_v25  ;;  %v3248_v62 = vcvt.s32.f32 %v3246_v13 }
0x105e   : > { %v3307_v33 = vshra.s32 %v6051_v1, 16 }
0x105f   : > { %v6056_v51 = vcvt.s32.f32 %v3292_v5 }
0x1060   : > { %v6058_v14 = vcvt.s32.f32 %v3307_v33 }
0x1061   : > { %3295 = vmin.xlane.f32.xlu0 %v6056_v51 }
0x1062   : > { %3310 = vmin.xlane.f32.xlu1 %v6058_v14 }
0x1094   : > { %v4254_v19 = vpop.f32.mrb[40].mxu1 }
0x1095   : > { %v6065_v31 = vmax.f32 %v2865_v7, %v4254_v19  ;;  %v3113_v59 = vpop.f32.mrb[41].mxu1 }
0x1096   : > { %v6070_v55 = vmax.f32 %v2863_v39, %v3113_v59  ;;  %v4255_v4 = vpop.f32.mrb[42].mxu1 }
0x1097   : > { %v6075_v61 = vmax.f32 %v6421_v36, %v4255_v4  ;;  %v3116_v22 = vpop.f32.mrb[43].mxu1 }
0x1098   : > { %v6080_v29 = vmax.f32 %v6422_v11, %v3116_v22 }
0x10a1   : > { %v4258_v17 = vpop.f32.mrb[44].mxu1 }
0x10a2   : > { %v6085_v7 = vmax.f32 %v6423_v50, %v4258_v17  ;;  %v3129_v9 = vpop.f32.mrb[45].mxu1 }
0x10a3   : > { %v6090_v39 = vmax.f32 %v6424_v24, %v3129_v9  ;;  %v4259_v57 = vpop.f32.mrb[46].mxu1 }
0x10a4   : > { %v6095_v32 = vmax.f32 %v6425_v8, %v4259_v57  ;;  %v3132_v37 = vpop.f32.mrb[47].mxu1 }
0x10a5   : > { %v6100_v23 = vmax.f32 %v6426_v42, %v3132_v37 }
0x10d6   : > { %v3206_v63 = vpop.xlane.xlu0 %3205 }
0x10d7   : > { %vm3207_vm7 = vcmp.eq.f32.partialorder %v6002_v54, %v3206_v63  ;;  %v3261_v54 = vand.u32 65535, %v6031_v15  ;;  %v3306_v15 = vand.u32 65535, %v6051_v1  ;;  %v3212_v1 = vcvt.f32.s32 %v3206_v63 }
0x10d8   : > { %v3208_v6 = vsel %vm3207_vm7, %v3203_v28, inf }
0x10d9   : > { %3209 = vmin.xlane.f32.xlu0 %v3208_v6  ;;  %v3263_v33 = vcvt.s32.f32 %v3261_v54  ;;  %v3213_v11 = vshll.u32 %v3212_v1, 16 }
0x10da   : > { %v3236_v52 = vpop.xlane.xlu0 %3235 }
0x10db   : > { %vm3237_vm8 = vcmp.eq.f32.partialorder %v6011_v0, %v3236_v52  ;;  %v3276_v0 = vand.u32 65535, %v6039_v53  ;;  %v3242_v17 = vcvt.f32.s32 %v3236_v52 }
0x10dc   : > { %v3238_v3 = vsel %vm3237_vm8, %v3233_v40, inf  ;;  %vm4377_vm8 = vmmov 0  }
0x10dd   : > { %3239 = vmin.xlane.f32.xlu0 %v3238_v3  ;;  %v3278_v59 = vcvt.s32.f32 %v3276_v0  ;;  %v3243_v8 = vshll.u32 %v3242_v17, 16  ;;  %4284 = vmatprep.mubr.msk.bf16.mxu1 %vm4377_vm8, %v6419_v56 }
0x10de   : > { %v3221_v18 = vpop.xlane.xlu1 %3220 }
0x10df   : > { %vm3222_vm9 = vcmp.eq.f32.partialorder %v6020_v27, %v3221_v18  ;;  %v3291_v27 = vand.u32 65535, %v6048_v47  ;;  %v3227_v50 = vcvt.f32.s32 %v3221_v18 }
0x10e0   : > { %v3223_v26 = vsel %vm3222_vm9, %v3218_v49, inf }
0x10e1   : > { %3224 = vmin.xlane.f32.xlu1 %v3223_v26  ;;  %v3293_v36 = vcvt.s32.f32 %v3291_v27  ;;  %v3228_v37 = vshll.u32 %v3227_v50, 16 }
0x10e2   : > { %v3251_v20 = vpop.xlane.xlu1 %3250 }
0x10e3   : > { %vm3252_vm10 = vcmp.eq.f32.partialorder %v6028_v45, %v3251_v20  ;;  %v3257_v42 = vcvt.f32.s32 %v3251_v20 }
0x10e4   : > { %v3253_v41 = vsel %vm3252_vm10, %v3248_v62, inf }
0x10e5   : > { %3254 = vmin.xlane.f32.xlu1 %v3253_v41  ;;  %v3258_v34 = vshll.u32 %v3257_v42, 16 }
0x10e6   : > { %v3266_v5 = vpop.xlane.xlu0 %3265 }
0x10e7   : > { %vm3267_vm11 = vcmp.eq.f32.partialorder %v6036_v2, %v3266_v5  ;;  %v3308_v2 = vcvt.s32.f32 %v3306_v15  ;;  %v3272_v40 = vcvt.f32.s32 %v3266_v5 }
0x10e8   : > { %v3268_v60 = vsel %vm3267_vm11, %v3263_v33, inf }
0x10e9   : > { %3269 = vmin.xlane.f32.xlu0 %v3268_v60  ;;  %v3273_v26 = vshll.u32 %v3272_v40, 16 }
0x10ea   : > { %v3281_v19 = vpop.xlane.xlu1 %3280 }
0x10eb   : > { %vm3282_vm12 = vcmp.eq.f32.partialorder %v6044_v25, %v3281_v19  ;;  %v3287_v54 = vcvt.f32.s32 %v3281_v19 }
0x10ec   : > { %v3283_v4 = vsel %vm3282_vm12, %v3278_v59, inf }
0x10ed   : > { %3284 = vmin.xlane.f32.xlu1 %v3283_v4  ;;  %v3288_v60 = vshll.u32 %v3287_v54, 16 }
0x10ee   : > { %v6116_v45 = vpop.xlane.xlu0 %3295 }
0x10ef   : > { %v6118_v53 = vpop.xlane.xlu1 %3310  ;;  %vm3297_vm13 = vcmp.eq.f32.partialorder %v6056_v51, %v6116_v45  ;;  %v3302_v27 = vcvt.f32.s32 %v6116_v45 }
0x10f0   : > { %vm3312_vm14 = vcmp.eq.f32.partialorder %v6058_v14, %v6118_v53  ;;  %v3298_v47 = vsel %vm3297_vm13, %v3293_v36, inf  ;;  %v3317_v19 = vcvt.f32.s32 %v6118_v53 }
0x10f1   : > { %v3313_v22 = vsel %vm3312_vm14, %v3308_v2, inf  ;;  %3299 = vmin.xlane.f32.xlu0 %v3298_v47  ;;  %v3303_v36 = vshll.u32 %v3302_v27, 16 }
0x10f2   : > { %3314 = vmin.xlane.f32.xlu1 %v3313_v22  ;;  %v3318_v22 = vshll.u32 %v3317_v19, 16 }
0x1103   : > { %2142 = vrot.lane.b32.xlu1 %v5476_v21, %s4376_s13 }
0x1107   : > { %2144 = vrot.lane.b32.xlu1 %v5478_v10, %s4376_s13  ;;  %2140 = vrot.lane.b32.xlu0 %v5472_v46, %s4376_s13 }
0x110b   : > { %2146 = vrot.lane.b32.xlu1 %v5474_v16, %s4376_s13  ;;  %2148 = vrot.lane.b32.xlu0 %v5496_v48, %s4376_s13 }
0x110f   : > { %2150 = vrot.lane.b32.xlu1 %v5500_v30, %s4376_s13  ;;  %2152 = vrot.lane.b32.xlu0 %v5502_v38, %s4376_s13 }
0x1113   : > { %2154 = vrot.lane.b32.xlu1 %v5498_v35, %s4376_s13 }
0x1166   : > { %v3210_v25 = vpop.xlane.xlu0 %3209 }
0x1167   : > { %v3211_v51 = vcvt.f32.s32 %v3210_v25 }
0x1169   : > { %v3214_v9 = vadd.s32 %v3213_v11, %v3211_v51 }
0x116a   : > { %v3240_v14 = vpop.xlane.xlu0 %3239 }
0x116b   : > { %v3241_v24 = vcvt.f32.s32 %v3240_v14  ;;  %vm3320_vm15 = vcmp.eq.s32.totalorder %v4560_v12, %v3214_v9 }
0x116c   : > { %v3968_v52 = vsel %vm3320_vm15, 1.0, %v6419_v56 }
0x116d   : > { %v3244_v44 = vadd.s32 %v3243_v8, %v3241_v24 }
0x116e   : > { %v3225_v57 = vpop.xlane.xlu1 %3224 }
0x116f   : > { %v3226_v58 = vcvt.f32.s32 %v3225_v57  ;;  %vm3322_vm1 = vcmp.eq.s32.totalorder %v4560_v12, %v3244_v44 }
0x1170   : > { %v3970_v62 = vsel %vm3322_vm1, 1.0, %v6419_v56  ;;  %vm3604_vm1 = vcmask 130048  }
0x1171   : > { %v3229_v28 = vadd.s32 %v3228_v37, %v3226_v58 }
0x1172   : > { %v3255_v6 = vpop.xlane.xlu1 %3254 }
0x1173   : > { %vm3321_vm0 = vcmp.eq.s32.totalorder %v4560_v12, %v3229_v28  ;;  %v3256_v63 = vcvt.f32.s32 %v3255_v6 }
0x1174   : > { %v3969_v3 = vsel %vm3321_vm0, 1.0, %v6419_v56 }
0x1175   : > { %v3344_v13 = vpack.c.bf16 %v3969_v3, %v3968_v52  ;;  %v3259_v18 = vadd.s32 %v3258_v34, %v3256_v63  ;;  %v3522_v3 = vld [vmem:[%s6376_s6 + $0x20] sm:$0xff] }
0x1176   : > { %v3270_v49 = vpop.xlane.xlu0 %3269 }
0x1177   : > { %vm3323_vm3 = vcmp.eq.s32.totalorder %v4560_v12, %v3259_v18  ;;  %v3271_v20 = vcvt.f32.s32 %v3270_v49  ;;  %4268 = vmatprep.mubr.msk.bf16.mxu0 %vm859_vm2, %v3344_v13  ;;  %v3523_v13 = vld [vmem:[%s6376_s6 + $0x28] sm:$0xff]  ;;  %v3524_v49 = vld [vmem:[%s6376_s6 + $0x30] sm:$0xff] }
0x1178   : > { %v3971_v41 = vsel %vm3323_vm3, 1.0, %v6419_v56  ;;  %v3530_v18 = vpack.c.bf16 %v3523_v13, %v3522_v3  ;;  %vm3763_vm3 = vcmask 392192  }
0x1179   : > { %v3345_v0 = vpack.c.bf16 %v3971_v41, %v3970_v62  ;;  %v3274_v5 = vadd.s32 %v3273_v26, %v3271_v20  ;;  %v3525_v26 = vld [vmem:[%s6376_s6 + $0x38] sm:$0xff] }
0x117a   : > { %v3285_v33 = vpop.xlane.xlu1 %3284  ;;  %v3531_v54 = vpack.c.bf16 %v3525_v26, %v3524_v49 }
0x117b   : > { %v3286_v59 = vcvt.f32.s32 %v3285_v33  ;;  %4269 = vmatmul.mubr.msk.bf16.vlgmr.msra.gmra.mrb[32].mxu0 %vm859_vm2, %v3345_v0  ;;  %vm3324_vm4 = vcmp.eq.s32.totalorder %v4560_v12, %v3274_v5 }
0x117c   : > { %v3972_v25 = vsel %vm3324_vm4, 1.0, %v6419_v56 }
0x117d   : > { %v3289_v15 = vadd.s32 %v3288_v60, %v3286_v59 }
0x117e   : > { %v3300_v4 = vpop.xlane.xlu0 %3299 }
0x117f   : > { %vm3325_vm5 = vcmp.eq.s32.totalorder %v4560_v12, %v3289_v15  ;;  %v3315_v2 = vpop.xlane.xlu1 %3314  ;;  %v3301_v47 = vcvt.f32.s32 %v3300_v4 }
0x1180   : > { %v3973_v1 = vsel %vm3325_vm5, 1.0, %v6419_v56  ;;  %v3316_v45 = vcvt.f32.s32 %v3315_v2 }
0x1181   : > { %v3346_v51 = vpack.c.bf16 %v3973_v1, %v3972_v25  ;;  %v3304_v14 = vadd.s32 %v3303_v36, %v3301_v47 }
0x1182   : > { %v3319_v11 = vadd.s32 %v3318_v22, %v3316_v45  ;;  %v2141_v17 = vpop.permute.xlu0 %2140 }
0x1183   : > { %vm3326_vm6 = vcmp.eq.s32.totalorder %v4560_v12, %v3304_v14  ;;  %v2143_v53 = vpop.permute.xlu1 %2142  ;;  %v2164_v50 = vsub.f32 %v5472_v46, %v2141_v17  ;;  %4272 = vmatprep.mubr.msk.bf16.mxu0 %vm859_vm2, %v3346_v51  ;;  %v6427_v46 = vmov 0  }
0x1184   : > { %vm3327_vm7 = vcmp.eq.s32.totalorder %v4560_v12, %v3319_v11  ;;  %v3974_v9 = vsel %vm3326_vm6, 1.0, %v6419_v56  ;;  %v2165_v24 = vsub.f32 %v5476_v21, %v2143_v53 }
0x1185   : > { %v3975_v57 = vsel %vm3327_vm7, 1.0, %v6419_v56  ;;  %3441 = vrot.lane.b32.xlu0 %v2164_v50, %s4376_s13 }
0x1186   : > { %v3347_v8 = vpack.c.bf16 %v3975_v57, %v3974_v9  ;;  %3443 = vrot.lane.b32.xlu1 %v2165_v24, %s4376_s13  ;;  %v2149_v42 = vpop.permute.xlu0 %2148 }
0x1187   : > { %v2145_v37 = vpop.permute.xlu1 %2144  ;;  %v2168_v21 = vsub.f32 %v5496_v48, %v2149_v42  ;;  %v3519_v48 = vld [vmem:[%s6376_s6 + $0x8] sm:$0xff] }
0x1188   : > { %v2166_v58 = vsub.f32 %v5478_v10, %v2145_v37  ;;  %4273 = vmatmul.mubr.msk.bf16.gmra.mrb[36].mxu0 %vm859_vm2, %v3347_v8 }
0x1189   : > { %3742 = vmatprep.mubr.bf16.mxu0 %v6427_v46 }
0x118a   : > { %3445 = vrot.lane.b32.xlu0 %v2166_v58, %s4376_s13  ;;  %v2153_v28 = vpop.permute.xlu0 %2152 }
0x118b   : > { %v2147_v12 = vpop.permute.xlu1 %2146  ;;  %v2170_v34 = vsub.f32 %v5502_v38, %v2153_v28 }
0x118c   : > { %v2167_v44 = vsub.f32 %v5474_v16, %v2147_v12  ;;  %v3518_v16 = vld [vmem:[%s6376_s6] sm:$0xff] }
0x118d   : > { %v3528_v38 = vpack.c.bf16 %v3519_v48, %v3518_v16 }
0x118e   : > { %3447 = vrot.lane.b32.xlu1 %v2167_v44, %s4376_s13  ;;  %3449 = vrot.lane.b32.xlu0 %v2168_v21, %s4376_s13 }
0x118f   : > { %v2151_v6 = vpop.permute.xlu1 %2150  ;;  %4277 = vmatpush3.bf16.msra.mxu1 %v3528_v38 }
0x1190   : > { %v2169_v10 = vsub.f32 %v5500_v30, %v2151_v6  ;;  %4278 = vmatprep.subr.bf16.mxu1 %v6419_v56  ;;  %v3520_v30 = vld [vmem:[%s6376_s6 + $0x10] sm:$0xff] }
0x1192   : > { %3451 = vrot.lane.b32.xlu1 %v2169_v10, %s4376_s13  ;;  %3453 = vrot.lane.b32.xlu0 %v2170_v34, %s4376_s13 }
0x1193   : > { %v2155_v40 = vpop.permute.xlu1 %2154 }
0x1194   : > { %v2171_v63 = vsub.f32 %v5498_v35, %v2155_v40  ;;  %v3521_v35 = vld [vmem:[%s6376_s6 + $0x18] sm:$0xff] }
0x1195   : > { %v3529_v52 = vpack.c.bf16 %v3521_v35, %v3520_v30 }
0x1196   : > { %3455 = vrot.lane.b32.xlu1 %v2171_v63, %s4376_s13 }
0x1197   : > { %4279 = vmatpush3.bf16.msra.mxu1 %v3529_v52 }
0x1198   : > { %4280 = vmatprep.subr.bf16.mxu1 %v6419_v56 }
0x119b   : > { %4281 = vmatpush3.bf16.msra.mxu1 %v3530_v18 }
0x119c   : > { %4282 = vmatprep.subr.bf16.mxu1 %v6419_v56 }
0x119f   : > { %4283 = vmatpush3.bf16.msra.mxu1 %v3531_v54 }
0x11a0   : > { %4288 = vmatprep.subr.bf16.mxu1 %v6419_v56 }
0x11f7   : > { %v3442_v20 = vpop.permute.xlu0 %3441 }
0x11f8   : > { %v3444_v41 = vpop.permute.xlu1 %3443 }
0x11fc   : > { %v3446_v27 = vpop.permute.xlu0 %3445 }
0x1200   : > { %v3448_v4 = vpop.permute.xlu1 %3447  ;;  %v3450_v2 = vpop.permute.xlu0 %3449 }
0x1204   : > { %v3452_v25 = vpop.permute.xlu1 %3451  ;;  %v3454_v17 = vpop.permute.xlu0 %3453 }
0x1208   : > { %v3456_v8 = vpop.permute.xlu1 %3455 }
0x124e   : > { %v4270_v62 = vpop.f32.mrb[32].mxu0 }
0x124f   : > { %v3427_v0 = vmax.f32 %v6065_v31, %v4270_v62  ;;  %v3394_v5 = vpop.f32.mrb[33].mxu0 }
0x1250   : > { %v3425_v33 = vmax.f32 %v6070_v55, %v3394_v5  ;;  %v4271_v60 = vpop.f32.mrb[34].mxu0 }
0x1251   : > { %v3428_v59 = vmax.f32 %v6075_v61, %v4271_v60  ;;  %v3397_v19 = vpop.f32.mrb[35].mxu0  ;;  %v3467_v36 = vadd.f32 %v3446_v27, %v3427_v0 }
0x1252   : > { %v3426_v15 = vmax.f32 %v6080_v29, %v3397_v19  ;;  %v3465_v22 = vadd.f32 %v3442_v20, %v3425_v33  ;;  %v3600_v19 = vld [vmem:[%s6378_s8 + $0x8] sm:$0xff] }
0x1253   : > { %v3483_v47 = vmul.f32 0.2, %v3467_v36  ;;  %vm3475_vm9 = vcmp.gt.f32.partialorder %v3467_v36, 0.0  ;;  %v3468_v1 = vadd.f32 %v3448_v4, %v3428_v59  ;;  %v3599_v59 = vld [vmem:[%s6378_s8] sm:$0xff] }
0x1254   : > { %v3466_v45 = vadd.f32 %v3444_v41, %v3426_v15  ;;  %v3481_v14 = vmul.f32 0.2, %v3465_v22  ;;  %vm3473_vm10 = vcmp.gt.f32.partialorder %v3465_v22, 0.0  ;;  %v3603_v15 = vpack.c.bf16 %v3600_v19, %v3599_v59  ;;  %v3526_v4 = vld [vmem:[%s6377_s7] sm:$0x1]  ;;  %v3675_v19 = vld [vmem:[%s6380_s10 + $0xd0] sm:$0xff] }
0x1255   : > { %v3491_v51 = vsel %vm3475_vm9, %v3467_v36, %v3483_v47  ;;  %v3484_v61 = vmul.f32 0.2, %v3468_v1  ;;  %vm3476_vm11 = vcmp.gt.f32.partialorder %v3468_v1, 0.0  ;;  %v3673_v59 = vld [vmem:[%s6380_s10 + $0xc0] sm:$0xff] }
0x1256   : > { %v3482_v50 = vmul.f32 0.2, %v3466_v45  ;;  %v3499_v37 = vsel %vm859_vm2, %v3491_v51, -inf  ;;  %vm3474_vm12 = vcmp.gt.f32.partialorder %v3466_v45, 0.0  ;;  %v3489_v58 = vsel %vm3473_vm10, %v3465_v22, %v3481_v14  ;;  %v6428_v14 = vld [vmem:[#allocation2_spill] sm:$0xff] }
0x1257   : > { %v3492_v21 = vsel %vm3476_vm11, %v3468_v1, %v3484_v61  ;;  %v3497_v63 = vsel %vm859_vm2, %v3489_v58, -inf  ;;  %v3655_v58 = vld [vmem:[%s6380_s10 + $0x30] sm:$0xff] }
0x1258   : > { %v3490_v28 = vsel %vm3474_vm12, %v3466_v45, %v3482_v50  ;;  %v3500_v38 = vsel %vm859_vm2, %v3492_v21, -inf  ;;  %v4378_v45 = vmov 1966171168   ;;  %v3649_v50 = vld [vmem:[%s6380_s10] sm:$0xff] }
0x1259   : > { %v3498_v3 = vsel %vm859_vm2, %v3490_v28, -inf  ;;  %v3659_v28 = vld [vmem:[%s6380_s10 + $0x50] sm:$0xff] }
0x125b   : > { %v4274_v31 = vpop.f32.mrb[36].mxu0 }
0x125c   : > { %v3431_v55 = vmax.f32 %v6085_v7, %v4274_v31  ;;  %v3410_v11 = vpop.f32.mrb[37].mxu0  ;;  %v3581_v31 = vunpack.c.l.s4 %v4378_v45 }
0x125d   : > { %v3429_v29 = vmax.f32 %v6090_v39, %v3410_v11  ;;  %v4275_v53 = vpop.f32.mrb[38].mxu0 }
0x125e   : > { %v3471_v9 = vadd.f32 %v3454_v17, %v3431_v55  ;;  %v3432_v24 = vmax.f32 %v6095_v32, %v4275_v53  ;;  %v3413_v57 = vpop.f32.mrb[39].mxu0  ;;  %v3582_v51 = vunpack.c.0.s8 %v3581_v31  ;;  %v3652_v53 = vld [vmem:[%s6380_s10 + $0x18] sm:$0xff] }
0x125f   : > { %v3469_v42 = vadd.f32 %v3450_v2, %v3429_v29  ;;  %v3430_v7 = vmax.f32 %v6100_v23, %v3413_v57  ;;  %v3650_v29 = vld [vmem:[%s6380_s10 + $0x8] sm:$0xff] }
0x1260   : > { %vm3479_vm13 = vcmp.gt.f32.partialorder %v3471_v9, 0.0  ;;  %v3487_v46 = vmul.f32 0.2, %v3471_v9  ;;  %v3472_v12 = vadd.f32 %v3456_v8, %v3432_v24  ;;  %v6241_v55 = vsub.s32 %v3582_v51, %v6428_v14  ;;  %v3651_v24 = vld [vmem:[%s6380_s10 + $0x10] sm:$0xff]  ;;  %v3654_v57 = vld [vmem:[%s6380_s10 + $0x28] sm:$0xff]  ;;  %v3656_v8 = vld [vmem:[%s6380_s10 + $0x38] sm:$0xff] }
0x1261   : > { %vm3477_vm14 = vcmp.gt.f32.partialorder %v3469_v42, 0.0  ;;  %v3485_v39 = vmul.f32 0.2, %v3469_v42  ;;  %v3470_v44 = vadd.f32 %v3452_v25, %v3430_v7  ;;  %v3653_v7 = vld [vmem:[%s6380_s10 + $0x20] sm:$0xff] }
0x1262   : > { %v3495_v6 = vsel %vm3479_vm13, %v3471_v9, %v3487_v46  ;;  %vm3480_vm15 = vcmp.gt.f32.partialorder %v3472_v12, 0.0  ;;  %v3488_v32 = vmul.f32 0.2, %v3472_v12  ;;  %v3684_v9 = vpack.c.bf16 %v3652_v53, %v3650_v29  ;;  %v3658_v46 = vld [vmem:[%s6380_s10 + $0x48] sm:$0xff]  ;;  %v3681_v53 = vld [vmem:[%s6381_s11] sm:$0x3] }
0x1263   : > { %v3505_v34 = vsel %vm859_vm2, %v3495_v6, -inf  ;;  %v3493_v10 = vsel %vm3477_vm14, %v3469_v42, %v3485_v39  ;;  %vm3478_vm0 = vcmp.gt.f32.partialorder %v3470_v44, 0.0  ;;  %v3486_v40 = vmul.f32 0.2, %v3470_v44  ;;  %v3575_v6 = vld [vmem:[%s421_s15] sm:$0x1] }
0x1264   : > { %v3506_v23 = vmax.f32 %v3499_v37, %v3505_v34  ;;  %v3501_v16 = vsel %vm859_vm2, %v3493_v10, -inf  ;;  %v3496_v48 = vsel %vm3480_vm15, %v3472_v12, %v3488_v32  ;;  %v3683_v37 = vpack.c.bf16 %v3651_v24, %v3649_v50  ;;  %3710 = vmatprep.subr.bf16.mxu0 %v3684_v9  ;;  %v3660_v12 = vld [vmem:[%s6380_s10 + $0x58] sm:$0xff]  ;;  %v3662_v32 = vld [vmem:[%s6380_s10 + $0x68] sm:$0xff] }
0x1265   : > { %v3502_v30 = vmax.f32 %v3497_v63, %v3501_v16  ;;  %v3507_v35 = vsel %vm859_vm2, %v3496_v48, -inf  ;;  %v3494_v52 = vsel %vm3478_vm0, %v3470_v44, %v3486_v40  ;;  %v3686_v42 = vpack.c.bf16 %v3656_v8, %v3654_v57  ;;  %v3657_v44 = vld [vmem:[%s6380_s10 + $0x40] sm:$0xff]  ;;  %v3664_v34 = vld [vmem:[%s6380_s10 + $0x78] sm:$0xff]  ;;  %v3663_v48 = vld [vmem:[%s6380_s10 + $0x70] sm:$0xff] }
0x1266   : > { %v3508_v13 = vmax.f32 %v3500_v38, %v3507_v35  ;;  %v3503_v18 = vsel %vm859_vm2, %v3494_v52, -inf  ;;  %3711 = vmatpush1.bf16.msra.mxu0 %v3683_v37  ;;  %v3685_v21 = vpack.c.bf16 %v3655_v58, %v3653_v7  ;;  %v3688_v39 = vpack.c.bf16 %v3660_v12, %v3658_v46  ;;  %v3661_v16 = vld [vmem:[%s6380_s10 + $0x60] sm:$0xff]  ;;  %v3666_v38 = vld [vmem:[%s6380_s10 + $0x88] sm:$0xff] }
0x1267   : > { %v3504_v49 = vmax.f32 %v3498_v3, %v3503_v18  ;;  %3712 = vmatprep.subr.bf16.mxu0 %v3686_v42  ;;  %v3687_v40 = vpack.c.bf16 %v3659_v28, %v3657_v44  ;;  %v3689_v52 = vpack.c.bf16 %v3663_v48, %v3661_v16  ;;  %v3665_v18 = vld [vmem:[%s6380_s10 + $0x80] sm:$0xff]  ;;  %v3703_v50 = vrot.slane %v3681_v53, %v6420_v43 }
0x1268   : > { %v3510_v26 = vmax.f32 %v3506_v23, %v3508_v13  ;;  %v3690_v23 = vpack.c.bf16 %v3664_v34, %v3662_v32  ;;  %v6429_v9 = vsub.s32 1, %v6428_v14 }
0x1269   : > { %v3509_v54 = vmax.f32 %v3502_v30, %v3504_v49  ;;  %v3668_v30 = vld [vmem:[%s6380_s10 + $0x98] sm:$0xff]  ;;  %v3667_v49 = vld [vmem:[%s6380_s10 + $0x90] sm:$0xff] }
0x126a   : > { %3713 = vmatpush1.bf16.msra.mxu0 %v3685_v21  ;;  %v3692_v13 = vpack.c.bf16 %v3668_v30, %v3666_v38  ;;  %v3707_v24 = vrot.slane %v3681_v53, %v6429_v9 }
0x126b   : > { %v3511_v20 = vmax.f32 %v3509_v54, %v3510_v26  ;;  %3714 = vmatprep.subr.bf16.mxu0 %v3688_v39  ;;  %v3670_v26 = vld [vmem:[%s6380_s10 + $0xa8] sm:$0xff]  ;;  %v3672_v54 = vld [vmem:[%s6380_s10 + $0xb8] sm:$0xff] }
0x126d   : > { %v3512_v62 = vrot.slane %v3511_v20, 4 }
0x126e   : > { %3715 = vmatpush1.bf16.msra.mxu0 %v3687_v40 }
0x126f   : > { %v3513_v41 = vmax.f32 %v3511_v20, %v3512_v62  ;;  %3716 = vmatprep.subr.bf16.mxu0 %v3690_v23  ;;  %v3691_v20 = vpack.c.bf16 %v3667_v49, %v3665_v18  ;;  %v3694_v62 = vpack.c.bf16 %v3672_v54, %v3670_v26 }
0x1271   : > { %v3514_v0 = vrot.slane %v3513_v41, 2 }
0x1272   : > { %3717 = vmatpush1.bf16.msra.mxu0 %v3689_v52 }
0x1273   : > { %v3515_v5 = vmax.f32 %v3513_v41, %v3514_v0  ;;  %3718 = vmatprep.subr.bf16.mxu0 %v3692_v13  ;;  %v3669_v41 = vld [vmem:[%s6380_s10 + $0xa0] sm:$0xff]  ;;  %v3671_v0 = vld [vmem:[%s6380_s10 + $0xb0] sm:$0xff] }
0x1275   : > { %v3516_v33 = vrot.slane %v3515_v5, 1 }
0x1276   : > { %3719 = vmatpush1.bf16.msra.mxu0 %v3691_v20 }
0x1277   : > { %v3517_v60 = vmax.f32 %v3515_v5, %v3516_v33  ;;  %v3674_v5 = vld [vmem:[%s6380_s10 + $0xc8] sm:$0xff]  ;;  %v3676_v33 = vld [vmem:[%s6380_s10 + $0xd8] sm:$0xff]  ;;  %3720 = vmatprep.subr.bf16.mxu0 %v3694_v62 }
0x1279   : > { %v3527_v27 = vpack.c.bf16 %v3517_v60, %v3517_v60  ;;  %v3693_v60 = vpack.c.bf16 %v3671_v0, %v3669_v41 }
0x127b   : > { %4285 = vmatmul.mubr.msk.bf16.vlgmr.msra.gmra.mrb[48].mxu1 %vm859_vm2, %v3527_v27  ;;  %v3696_v27 = vpack.c.bf16 %v3676_v33, %v3674_v5  ;;  %3721 = vmatpush1.bf16.msra.mxu0 %v3693_v60 }
0x127c   : > { %4290 = vmatprep.mubr.msk.bf16.mxu1 %vm4377_vm8, %v6419_v56  ;;  %4289 = vmatpush3.bf16.msra.mxu1 %v3603_v15  ;;  %v3695_v15 = vpack.c.bf16 %v3675_v19, %v3673_v59 }
0x127d   : > { %3722 = vmatprep.subr.bf16.mxu0 %v3696_v27 }
0x127f   : > { %3723 = vmatpush1.bf16.msra.mxu0 %v3695_v15 }
0x134e   : > { %v3569_v36 = vpop.f32.mrb[48].mxu1 }
0x134f   : > { %v6237_v2 = vadd.f32 %v3569_v36, %v3526_v4  ;;  %v4286_v47 = vpop.f32.mrb[49].mxu1  ;;  %v3678_v4 = vld [vmem:[%s6380_s10 + $0xe8] sm:$0xff]  ;;  %v3680_v36 = vld [vmem:[%s6380_s10 + $0xf8] sm:$0xff] }
0x1350   : > { %v3572_v22 = vpop.f32.mrb[50].mxu1  ;;  %v3698_v47 = vpack.c.bf16 %v3680_v36, %v3678_v4 }
0x1351   : > { %v3576_v56 = vmul.f32 0.5, %v6237_v2  ;;  %v4287_v25 = vpop.f32.mrb[51].mxu1  ;;  %v3677_v22 = vld [vmem:[%s6380_s10 + $0xe0] sm:$0xff] }
0x1352   : > { %3724 = vmatprep.subr.bf16.mxu0 %v3698_v47 }
0x1353   : > { %v3577_v1 = vmul.f32 1.442695, %v3576_v56  ;;  %v3679_v56 = vld [vmem:[%s6380_s10 + $0xf0] sm:$0xff] }
0x1354   : > { %v3697_v25 = vpack.c.bf16 %v3679_v56, %v3677_v22 }
0x1355   : > { %4355 = vpow2.f32 %v3577_v1  ;;  %v3601_v1 = vld [vmem:[%s6379_s9] sm:$0x1] }
0x1356   : > { %3725 = vmatpush1.bf16.msra.mxu0 %v3697_v25 }
0x135f   : > { %v4356_v11 = vpop.eup %4355 }
0x1360   : > { %v3586_v17 = vrot.slane %v4356_v11, %v6241_v55 }
0x1362   : > { %v3593_v61 = vrot.slane %v3586_v17, %v6241_v55 }
0x1364   : > { %3594 = vrot.lane.b32.xlu0 %v3593_v61, %s4379_s26 }
0x13d6   : > { %v3595_v10 = vpop.permute.xlu0 %3594 }
0x13d7   : > { %v3597_v63 = vmul.f32 %v3595_v10, %v3575_v6  ;;  %v6430_v6 = vlaneseq }
0x13d9   : > { %v3598_v35 = vadd.f32 %v3597_v63, %v6237_v2  ;;  %vm3785_vm4 = vcmp.lt.s32.totalorder %v6430_v6, 256 }
0x13db   : > { %v3602_v3 = vpack.c.bf16 %v3598_v35, %v3598_v35  ;;  %3752 = vrot.lane.b32.xlu1 %v3598_v35, %s4380_s19 }
0x13dd   : > { %4291 = vmatmul.mubr.msk.bf16.vlgmr.msra.gmra.mrb[52].mxu1 %vm3604_vm1, %v3602_v3 }
0x144d   : > { %v3753_v46 = vpop.permute.xlu1 %3752 }
0x144e   : > { %v3764_v12 = vsel %vm3763_vm3, %v6237_v2, %v3753_v46 }
0x14b0   : > { %v3642_v45 = vpop.f32.mrb[52].mxu1 }
0x14b1   : > { %v3643_v31 = vadd.f32 %v3642_v45, %v3601_v1  ;;  %v4292_v51 = vpop.f32.mrb[53].mxu1 }
0x14b2   : > { %v3645_v11 = vpop.f32.mrb[54].mxu1 }
0x14b3   : > { %v3648_v17 = vmax.f32 %v3643_v31, 0.0  ;;  %v4293_v61 = vpop.f32.mrb[55].mxu1 }
0x14b5   : > { %v3682_v29 = vpack.c.bf16 %v3648_v17, %v3648_v17 }
0x14b7   : > { %3743 = vmatmul.mubr.bf16.vlgmr.msra.gmra.mrb[40].mxu0 %v3682_v29 }
0x158a   : > { %v3744_v57 = vpop.f32.mrb[40].mxu0 }
0x158b   : > { %v3745_v8 = vadd.f32 %v3744_v57, %v3703_v50  ;;  %v3746_v37 = vpop.f32.mrb[41].mxu0 }
0x158c   : > { %v3747_v42 = vadd.f32 %v3746_v37, %v3707_v24  ;;  %v3748_v7 = vpop.f32.mrb[42].mxu0 }
0x158d   : > { %v3749_v58 = vpop.f32.mrb[43].mxu0  ;;  %3757 = vrot.lane.b32.xlu0 %v3745_v8, %s4376_s13 }
0x158e   : > { %3759 = vrot.lane.b32.xlu1 %v3747_v42, %s4376_s13 }
0x15ff   : > { %v3758_v21 = vpop.permute.xlu0 %3757 }
0x1600   : > { %v3765_v43 = vsel %vm859_vm2, %v3764_v12, %v3758_v21  ;;  %v3760_v14 = vpop.permute.xlu1 %3759 }
0x1601   : > { %v3761_v39 = vsel %vm859_vm2, %v3758_v21, %v3760_v14 }
0x1602   : > { %v3767_v44 = vcombine.low %v3765_v43, %v3761_v39 }
0x1604   : > { %v3774_v28 = vrot.slane %v3767_v44, %v6241_v55 }
0x1606   : > { %v3781_v32 = vrot.slane %v3774_v28, %v6241_v55 }
0x1608   : > { %3787 = vst.msk [vmem:[%s425_s27] sm:$0x3] %vm3785_vm4, %v3781_v32 }
0x1609 PF: > { %s22_s21 = sadd.s32 1, %s4370_s21  }
0x160a   : > { %p19_p4 = scmp.ge.s32.totalorder %s22_s21, 4  }
0x160c   :  { %21 = sbr.rel (!%p19_p4) target bundleno = 1 (0x1), region = 101 }

</bundles_post_ra>
